<compile_context>
chip_gen: v5e
topology: v5e:2x2
jax: 0.10.0
libtpu: 0.0.40
codegen_flags: <defaults>
</compile_context>

<pallas_src>
import math
from functools import partial

import numpy as np
import jax
import jax.numpy as jnp
from jax.experimental import pallas as pl
from jax.experimental.pallas import tpu as pltpu

# ------------------------- configuration -------------------------
ATOM_TYPE_DIM = 16
K_COMPLEX = 4                         # num_attention_heads_complex
NUM_HEADS = 1                         # heads of node / lattice attention layers
ATT_LAYERS = 2
D_COORDS = 3 * 2 * K_COMPLEX          # 24
D_NODES = ATOM_TYPE_DIM + D_COORDS    # 40
D_LATTICE = 6 + 1                     # 7 (lattice_norm(6) + num_atoms)
D_KV = D_NODES + D_LATTICE            # 47
HID_JOINT = 32
HID_LATT = 32
OUT_ATOM = 8
SLAB_WIDTH = 256                      # lane width of the packed weight slab
ROWS_PER_STEP = 256                   # target node rows per grid step


# ------------------------- in-kernel helpers -------------------------
def _silu(x):
    return x * jax.nn.sigmoid(x)


def _layernorm(x, g, b):
    mu = jnp.mean(x, axis=-1, keepdims=True)
    d = x - mu
    var = jnp.mean(d * d, axis=-1, keepdims=True)
    return d * jax.lax.rsqrt(var + 1e-5) * g + b


# ------------------------- the single fused kernel -------------------------
def _fused_forward_kernel(frac_ref, atoms_ref, mask_ref, lat_ref, w_ref,
                          nodes_out_ref, latt_out_ref, *, widx, tb, maxn):
    def gw(name):                      # static slice out of the packed weight slab
        s, r, c = widx[name]
        return w_ref[s:s + r, :c]

    big_neg = jnp.float32(-1e30)
    n_rows = tb * maxn

    frac = frac_ref[...].reshape(n_rows, 3)
    atoms = atoms_ref[...].reshape(n_rows, ATOM_TYPE_DIM)
    maskf = mask_ref[...]              # (tb, 1, maxn), 1.0 == padded key
    lat_in = lat_ref[...].reshape(tb, 8)
    l6 = lat_in[:, :6]
    na = lat_in[:, 6:7]

    # atom / lattice layer norms + num_atoms embedding column
    atoms_n = _layernorm(atoms, gw("atom_ln_g"), gw("atom_ln_b"))
    lat = jnp.concatenate(
        [_layernorm(l6, gw("latt_ln_g"), gw("latt_ln_b")), na], axis=-1)   # (tb, 7)

    # periodic features: one tiny matmul holds the 2*pi*(i+1) factors
    ang = jnp.dot(frac, gw("freq"), preferred_element_type=jnp.float32)    # (n_rows, 12)
    sin_f = jnp.sin(ang)
    cos_f = jnp.cos(ang)

    # ---- AttentionSinCos_Layer: one packed [q|k|v] RHS per LHS operand ----
    E = D_NODES
    qkv = (jnp.dot(atoms_n, gw("sc_w_atoms"), preferred_element_type=jnp.float32)
           + jnp.dot(sin_f, gw("sc_w_sin"), preferred_element_type=jnp.float32)
           + jnp.dot(cos_f, gw("sc_w_cos"), preferred_element_type=jnp.float32)
           + gw("sc_b"))                                                   # (n_rows, 120)
    lat_kv = jnp.dot(lat, gw("sc_w_lat"), preferred_element_type=jnp.float32)  # (tb, 80)
    qkv3 = qkv.reshape(tb, maxn, 3 * E)
    q3 = qkv3[:, :, :E]
    k3 = qkv3[:, :, E:2 * E] + lat_kv[:, None, :E]
    v3 = qkv3[:, :, 2 * E:] + lat_kv[:, None, E:]

    dh = E // K_COMPLEX
    scale = 1.0 / math.sqrt(dh)
    acc = jnp.zeros((n_rows, E), jnp.float32)
    for h in range(K_COMPLEX):
        lo, hi = h * dh, (h + 1) * dh
        s = jnp.einsum("bqd,bkd->bqk", q3[:, :, lo:hi], k3[:, :, lo:hi],
                       preferred_element_type=jnp.float32) * scale
        s = jnp.where(maskf > 0.5, big_neg, s)
        s = s - jnp.max(s, axis=-1, keepdims=True)
        e = jnp.exp(s)
        p = e / jnp.sum(e, axis=-1, keepdims=True)
        o = jnp.einsum("bqk,bkd->bqd", p, v3[:, :, lo:hi],
                       preferred_element_type=jnp.float32)
        acc = acc + jnp.dot(o.reshape(n_rows, dh), gw(f"sc_out{h}"),
                            preferred_element_type=jnp.float32)
    node = acc + gw("sc_out_b")                                            # (n_rows, 40)

    # ---- AttentionMultihead_Layer (num_heads=1, norm=True) ----
    def _mh_layer(pref, q2, node_n2, lat2):
        e_dim = q2.shape[-1]
        qq = (jnp.dot(q2, gw(pref + "wq"), preferred_element_type=jnp.float32)
              + gw(pref + "wq_b"))                                         # (Rq, 2E)
        q = qq[:, :e_dim]
        q_mha = qq[:, e_dim:]
        kv = jnp.dot(node_n2, gw(pref + "kv_node"), preferred_element_type=jnp.float32)
        lat_kv2 = (jnp.dot(lat2, gw(pref + "kv_lat"), preferred_element_type=jnp.float32)
                   + gw(pref + "kv_b"))                                    # (tb, 2E)
        kv3 = kv.reshape(tb, maxn, 2 * e_dim) + lat_kv2[:, None, :]
        kk3 = kv3[:, :, :e_dim]
        vv3 = kv3[:, :, e_dim:]
        qrows = q2.shape[0] // tb
        q_mha3 = q_mha.reshape(tb, qrows, e_dim)
        s = jnp.einsum("bqd,bkd->bqk", q_mha3, kk3,
                       preferred_element_type=jnp.float32) * (1.0 / math.sqrt(e_dim))
        s = jnp.where(maskf > 0.5, big_neg, s)
        s = s - jnp.max(s, axis=-1, keepdims=True)
        e = jnp.exp(s)
        p = e / jnp.sum(e, axis=-1, keepdims=True)
        o = jnp.einsum("bqk,bkd->bqd", p, vv3,
                       preferred_element_type=jnp.float32).reshape(tb * qrows, e_dim)
        attn = (jnp.dot(o, gw(pref + "out"), preferred_element_type=jnp.float32)
                + gw(pref + "out_b"))
        q1 = q + attn
        r = _layernorm(q1, gw(pref + "postln_g"), gw(pref + "postln_b"))
        r = _silu(jnp.dot(r, gw(pref + "mlp1"), preferred_element_type=jnp.float32)
                  + gw(pref + "mlp1_b"))
        r = (jnp.dot(r, gw(pref + "mlp2"), preferred_element_type=jnp.float32)
             + gw(pref + "mlp2_b"))
        return q1 + r

    # ---- stacked lattice / node attention layers ----
    for l in range(ATT_LAYERS):
        node_n = _layernorm(node, gw(f"ln_nn_g{l}"), gw(f"ln_nn_b{l}"))
        lat = _mh_layer(f"lat{l}_", lat, node_n, lat)
        lat = _layernorm(lat, gw(f"ln_ll_g{l}"), gw(f"ln_ll_b{l}"))
        node = _mh_layer(f"nod{l}_", node_n, node_n, lat)

    # ---- joint final MLP (row-wise; commutes with un-padding) ----
    x = _silu(jnp.dot(node, gw("j_l1"), preferred_element_type=jnp.float32) + gw("j_l1_b"))
    x = _layernorm(x, gw("j_ln1_g"), gw("j_ln1_b"))
    x = jnp.dot(x, gw("j_l2"), preferred_element_type=jnp.float32) + gw("j_l2_b")
    x = _silu(_layernorm(x, gw("j_ln2_g"), gw("j_ln2_b")))
    x = jnp.dot(x, gw("j_l3"), preferred_element_type=jnp.float32) + gw("j_l3_b")
    x = _silu(_layernorm(x, gw("j_ln3_g"), gw("j_ln3_b")))
    x = jnp.dot(x, gw("j_l4"), preferred_element_type=jnp.float32) + gw("j_l4_b")  # (n_rows,128)
    nodes_out_ref[...] = x.reshape(tb, maxn, 128)

    # ---- lattice MLP ----
    y = _silu(jnp.dot(lat, gw("lm_l1"), preferred_element_type=jnp.float32) + gw("lm_l1_b"))
    y = jnp.dot(y, gw("lm_l2"), preferred_element_type=jnp.float32) + gw("lm_l2_b")  # (tb, 128)
    latt_out_ref[...] = y.reshape(tb, 1, 128)


# ------------------------- weight slab builder -------------------------
class _SlabBuilder:
    def __init__(self, width):
        self.width = width
        self.chunks = []
        self.index = {}
        self.cursor = 0

    def add(self, name, mat):
        mat = np.asarray(mat, np.float32)
        if mat.ndim == 1:
            mat = mat.reshape(1, -1)
        r, c = mat.shape
        assert c <= self.width, (name, mat.shape)
        pad = (-self.cursor) % 8                      # 8-align every row start
        if pad:
            self.chunks.append(np.zeros((pad, self.width), np.float32))
            self.cursor += pad
        buf = np.zeros((r, self.width), np.float32)
        buf[:, :c] = mat
        self.chunks.append(buf)
        self.index[name] = (self.cursor, r, c)
        self.cursor += r

    def finalize(self):
        slab = np.concatenate(self.chunks, axis=0)
        pad = (-slab.shape[0]) % 8
        if pad:
            slab = np.concatenate([slab, np.zeros((pad, self.width), np.float32)])
        return jnp.asarray(slab), dict(self.index)


# ------------------------- parameter preparation (fold once at init) -------------------------
def prepare_params(p):
    """Compose / transpose / pack the torch-layout parameters into one (R,256) slab."""
    sb = _SlabBuilder(SLAB_WIDTH)
    A = lambda x: np.asarray(x, np.float32)

    sb.add("atom_ln_g", p["atom_norm"]["g"]); sb.add("atom_ln_b", p["atom_norm"]["b"])
    sb.add("latt_ln_g", p["lattice_norm"]["g"]); sb.add("latt_ln_b", p["lattice_norm"]["b"])

    # periodic frequency matrix: ang = frac @ freq  (absorbs 2*pi*(i+1))
    freq = np.hstack([np.eye(3, dtype=np.float32) * (2.0 * np.pi * (i + 1))
                      for i in range(K_COMPLEX)])                         # (3, 12)
    sb.add("freq", freq)

    # ---- sincos layer: compose Wq_out/Wk_out/Wv_out with MHA in-projections,
    #      de-interleave periodic rows, pack [q|k|v] per LHS operand ----
    sc = p["sincos"]; mha = sc["mha"]; e = D_NODES
    bq, bk, bv = A(mha["in_bias"])[:e], A(mha["in_bias"])[e:2 * e], A(mha["in_bias"])[2 * e:]
    q_t = (A(mha["q_proj"]) @ A(sc["Wq_out"]["w"])).T                      # (40, 40)
    q_b = A(sc["Wq_out"]["b"]) @ A(mha["q_proj"]).T + bq
    k_t = (A(mha["k_proj"]) @ A(sc["Wk_out"]["w"])).T                      # (47, 40)
    k_b = A(sc["Wk_out"]["b"]) @ A(mha["k_proj"]).T + bk
    v_t = (A(mha["v_proj"]) @ A(sc["Wv_out"]["w"])).T
    v_b = A(sc["Wv_out"]["b"]) @ A(mha["v_proj"]).T + bv
    a, pp = ATOM_TYPE_DIM, ATOM_TYPE_DIM + D_COORDS
    sb.add("sc_w_atoms", np.hstack([q_t[:a], k_t[:a], v_t[:a]]))           # (16, 120)
    sb.add("sc_w_sin", np.hstack([q_t[a:pp:2], k_t[a:pp:2], v_t[a:pp:2]])) # (12, 120)
    sb.add("sc_w_cos", np.hstack([q_t[a + 1:pp:2], k_t[a + 1:pp:2], v_t[a + 1:pp:2]]))
    sb.add("sc_w_lat", np.hstack([k_t[pp:], v_t[pp:]]))                    # (7, 80)
    sb.add("sc_b", np.concatenate([q_b, k_b, v_b]))
    out_t = A(mha["out_w"]).T
    dh = e // K_COMPLEX
    for h in range(K_COMPLEX):                                             # per-head out blocks
        sb.add(f"sc_out{h}", out_t[h * dh:(h + 1) * dh])
    sb.add("sc_out_b", mha["out_b"])

    def add_multihead(pref, layer, e_dim):
        m = layer["mha"]
        b_q, b_k, b_v = (A(m["in_bias"])[:e_dim], A(m["in_bias"])[e_dim:2 * e_dim],
                         A(m["in_bias"])[2 * e_dim:])
        wq_t = A(layer["Wq"]["w"]).T
        qproj_t = A(m["q_proj"]).T
        sb.add(pref + "wq", np.hstack([wq_t, wq_t @ qproj_t]))             # (E, 2E)
        qb = A(layer["Wq"]["b"])
        sb.add(pref + "wq_b", np.concatenate([qb, qb @ qproj_t + b_q]))
        kt = (A(m["k_proj"]) @ A(layer["Wk"]["w"])).T                      # (47, E)
        vt = (A(m["v_proj"]) @ A(layer["Wv"]["w"])).T
        kb = A(layer["Wk"]["b"]) @ A(m["k_proj"]).T + b_k
        vb = A(layer["Wv"]["b"]) @ A(m["v_proj"]).T + b_v
        kv_t = np.hstack([kt, vt])                                         # (47, 2E)
        sb.add(pref + "kv_node", kv_t[:D_NODES])
        sb.add(pref + "kv_lat", kv_t[D_NODES:])
        sb.add(pref + "kv_b", np.concatenate([kb, vb]))
        sb.add(pref + "out", A(m["out_w"]).T)
        sb.add(pref + "out_b", m["out_b"])
        sb.add(pref + "postln_g", layer["post_ln"]["g"])
        sb.add(pref + "postln_b", layer["post_ln"]["b"])
        sb.add(pref + "mlp1", A(layer["mlp1"]["w"]).T)
        sb.add(pref + "mlp1_b", layer["mlp1"]["b"])
        sb.add(pref + "mlp2", A(layer["mlp2"]["w"]).T)
        sb.add(pref + "mlp2_b", layer["mlp2"]["b"])

    for l in range(ATT_LAYERS):
        sb.add(f"ln_nn_g{l}", p["ln_nn"][l]["g"]); sb.add(f"ln_nn_b{l}", p["ln_nn"][l]["b"])
        sb.add(f"ln_ll_g{l}", p["ln_ll"][l]["g"]); sb.add(f"ln_ll_b{l}", p["ln_ll"][l]["b"])
        add_multihead(f"lat{l}_", p["att_lattice"][l], D_LATTICE)
        add_multihead(f"nod{l}_", p["att_nodes"][l], D_NODES)

    jp = p["joint"]
    sb.add("j_l1", A(jp["l1"]["w"]).T); sb.add("j_l1_b", jp["l1"]["b"])
    sb.add("j_ln1_g", jp["ln1"]["g"]); sb.add("j_ln1_b", jp["ln1"]["b"])
    sb.add("j_l2", A(jp["l2"]["w"]).T); sb.add("j_l2_b", jp["l2"]["b"])
    sb.add("j_ln2_g", jp["ln2"]["g"]); sb.add("j_ln2_b", jp["ln2"]["b"])
    sb.add("j_l3", A(jp["l3"]["w"]).T); sb.add("j_l3_b", jp["l3"]["b"])
    sb.add("j_ln3_g", jp["ln3"]["g"]); sb.add("j_ln3_b", jp["ln3"]["b"])
    # final projections: zero-pad output columns to 128 -> lane-dense stores
    l4_t = A(jp["l4"]["w"]).T
    l4_tp = np.zeros((l4_t.shape[0], 128), np.float32); l4_tp[:, :l4_t.shape[1]] = l4_t
    sb.add("j_l4", l4_tp)
    l4_b = np.zeros((128,), np.float32); l4_b[:OUT_ATOM + 3] = A(jp["l4"]["b"])
    sb.add("j_l4_b", l4_b)

    lp = p["lattice_mlp"]
    sb.add("lm_l1", A(lp["l1"]["w"]).T); sb.add("lm_l1_b", lp["l1"]["b"])
    l2_t = A(lp["l2"]["w"]).T
    l2_tp = np.zeros((l2_t.shape[0], 128), np.float32); l2_tp[:, :l2_t.shape[1]] = l2_t
    sb.add("lm_l2", l2_tp)
    l2_b = np.zeros((128,), np.float32); l2_b[:6] = A(lp["l2"]["b"])
    sb.add("lm_l2_b", l2_b)

    return sb.finalize()        # (slab (R,256) jnp array, index dict)


# ------------------------- jitted forward (one pallas_call) -------------------------
def build_forward(widx):
    @partial(jax.jit, static_argnames=("maxn_p",))
    def _fwd(wslab, atoms, frac_coords, num_atoms, lattice6, maxn_p):
        total = atoms.shape[0]
        B = num_atoms.shape[0]
        TB = max(1, min(B, max(1, ROWS_PER_STEP // maxn_p)))   # crystals per grid step
        n_steps = -(-B // TB)
        B_pad = n_steps * TB

        # transform_to_batch, fully on device (only the maxn bucket is static)
        num_i = num_atoms.astype(jnp.int32)
        offs = jnp.concatenate([jnp.zeros((1,), jnp.int32), jnp.cumsum(num_i)[:-1]])
        idx = jnp.clip(offs[:, None] + jnp.arange(maxn_p, dtype=jnp.int32)[None, :],
                       0, total - 1)                                       # (B, maxn_p)
        valid = jnp.arange(maxn_p, dtype=jnp.int32)[None, :] < num_i[:, None]
        frac_pad = jnp.where(valid[..., None], frac_coords[idx], 0.0)
        atoms_pad = jnp.where(valid[..., None], atoms[idx], 0.0)
        maskf = jnp.where(valid, 0.0, 1.0).astype(jnp.float32)[:, None, :]  # (B,1,maxn_p)
        lat_in = jnp.concatenate([lattice6, num_i.astype(jnp.float32)[:, None],
                                  jnp.zeros((B, 1), jnp.float32)], axis=1)[:, None, :]
        if B_pad > B:                                   # pad batch with copies (ignored later)
            pad = B_pad - B
            padb = lambda x: jnp.concatenate([x, x[:pad]], axis=0)
            frac_pad, atoms_pad, maskf, lat_in = map(padb, (frac_pad, atoms_pad, maskf, lat_in))

        kernel = partial(_fused_forward_kernel, widx=widx, tb=TB, maxn=maxn_p)
        nodes_pad, latt = pl.pallas_call(
            kernel,
            grid=(B_pad // TB,),
            in_specs=[
                pl.BlockSpec((TB, maxn_p, 3), lambda b: (b, 0, 0)),
                pl.BlockSpec((TB, maxn_p, ATOM_TYPE_DIM), lambda b: (b, 0, 0)),
                pl.BlockSpec((TB, 1, maxn_p), lambda b: (b, 0, 0)),
                pl.BlockSpec((TB, 1, 8), lambda b: (b, 0, 0)),
                pl.BlockSpec(wslab.shape, lambda b: (0, 0)),    # one weight slab, DMA'd once
            ],
            out_specs=(pl.BlockSpec((TB, maxn_p, 128), lambda b: (b, 0, 0)),
                       pl.BlockSpec((TB, 1, 128), lambda b: (b, 0, 0))),
            out_shape=(jax.ShapeDtypeStruct((B_pad, maxn_p, 128), jnp.float32),
                       jax.ShapeDtypeStruct((B_pad, 1, 128), jnp.float32)),
            compiler_params=pltpu.CompilerParams(dimension_semantics=("parallel",)),
        )(frac_pad, atoms_pad, maskf, lat_in, wslab)

        # transform_from_batch_singular, on device
        cum = jnp.cumsum(num_i)
        j = jnp.arange(total, dtype=jnp.int32)
        b_idx = jnp.searchsorted(cum, j, side="right").astype(jnp.int32)
        start = cum[b_idx] - num_i[b_idx]
        flat_idx = b_idx * maxn_p + (j - start)
        nodes_flat = nodes_pad.reshape(B_pad * maxn_p, 128)[flat_idx]
        return (nodes_flat[:, :OUT_ATOM],
                nodes_flat[:, OUT_ATOM:OUT_ATOM + 3],
                latt[:B, 0, :6])
    return _fwd


class PallasAttentionSinCos:
    """Forward-only Pallas port of AttentionSinCos_Separate_jointMLP."""

    def __init__(self, torch_layout_params):
        self.wslab, self.widx = prepare_params(torch_layout_params)
        self._fwd = build_forward(self.widx)

    def __call__(self, atoms, frac_coords, num_atoms, L, t=None):
        del t                                           # unused by the torch module
        na_list = [int(n) for n in num_atoms]
        maxn_p = max(8, -(-max(na_list) // 8) * 8)      # bucket maxn to a multiple of 8
        na = jnp.asarray(np.asarray(na_list, np.int32))
        return self._fwd(self.wslab, atoms, frac_coords, na, L, maxn_p=maxn_p)


# ------------------------- deterministic torch-layout parameter init -------------------------
def _dense(key, dout, din, w_scale=0.1):
    kw, kb = jax.random.split(key)
    return {"w": jax.random.normal(kw, (dout, din), jnp.float32) * w_scale,
            "b": jax.random.normal(kb, (dout,), jnp.float32) * 0.01}


def _ln_params(d):
    return {"g": jnp.ones((d,), jnp.float32), "b": jnp.zeros((d,), jnp.float32)}


def _mha_params(key, edim, kdim, vdim):
    ks = jax.random.split(key, 5)
    return {"q_proj": jax.random.normal(ks[0], (edim, edim), jnp.float32) * 0.1,
            "k_proj": jax.random.normal(ks[1], (edim, kdim), jnp.float32) * 0.1,
            "v_proj": jax.random.normal(ks[2], (edim, vdim), jnp.float32) * 0.1,
            "in_bias": jax.random.normal(ks[3], (3 * edim,), jnp.float32) * 0.01,
            "out_w": jax.random.normal(ks[4], (edim, edim), jnp.float32) * 0.1,
            "out_b": jnp.zeros((edim,), jnp.float32)}


def _att_layer_params(key, edim, kvdim, hidden):
    ks = jax.random.split(key, 6)
    return {"Wq": _dense(ks[0], edim, edim),
            "Wk": _dense(ks[1], kvdim, kvdim),
            "Wv": _dense(ks[2], kvdim, kvdim),
            "mha": _mha_params(ks[3], edim, kvdim, kvdim),
            "post_ln": _ln_params(edim),
            "mlp1": _dense(ks[4], hidden, edim),
            "mlp2": _dense(ks[5], edim, hidden)}


def init_params(key):
    keys = iter(jax.random.split(key, 16))
    p = {"atom_norm": _ln_params(ATOM_TYPE_DIM), "lattice_norm": _ln_params(6)}
    ks = jax.random.split(next(keys), 4)
    p["sincos"] = {"Wq_out": _dense(ks[0], D_NODES, D_NODES),
                   "Wk_out": _dense(ks[1], D_KV, D_KV),
                   "Wv_out": _dense(ks[2], D_KV, D_KV),
                   "mha": _mha_params(ks[3], D_NODES, D_KV, D_KV)}
    p["att_nodes"] = [_att_layer_params(next(keys), D_NODES, D_KV, 4 * D_NODES)
                      for _ in range(ATT_LAYERS)]
    p["att_lattice"] = [_att_layer_params(next(keys), D_LATTICE, D_KV, 4 * D_LATTICE)
                        for _ in range(ATT_LAYERS)]
    p["ln_nn"] = [_ln_params(D_NODES) for _ in range(ATT_LAYERS)]
    p["ln_ll"] = [_ln_params(D_LATTICE) for _ in range(ATT_LAYERS)]
    p["joint"] = {"l1": _dense(next(keys), HID_JOINT, D_NODES), "ln1": _ln_params(HID_JOINT),
                  "l2": _dense(next(keys), HID_JOINT, HID_JOINT), "ln2": _ln_params(HID_JOINT),
                  "l3": _dense(next(keys), HID_JOINT, HID_JOINT), "ln3": _ln_params(HID_JOINT),
                  "l4": _dense(next(keys), OUT_ATOM + 3, HID_JOINT)}
    p["lattice_mlp"] = {"l1": _dense(next(keys), HID_LATT, D_LATTICE),
                        "l2": _dense(next(keys), 6, HID_LATT)}
    return p


# ------------------------- main -------------------------
if __name__ == "__main__":
    key = jax.random.PRNGKey(0)
    kp, ka, kf, kl = jax.random.split(key, 4)

    num_atoms_list = [3, 5]                  # B = 2 crystals, total 8 atoms
    total_atoms = sum(num_atoms_list)

    torch_layout_params = init_params(kp)
    model = PallasAttentionSinCos(torch_layout_params)

    atoms = jax.random.normal(ka, (total_atoms, ATOM_TYPE_DIM), jnp.float32)
    frac_coords = jax.random.uniform(kf, (total_atoms, 3), jnp.float32)
    L = jax.random.normal(kl, (len(num_atoms_list), 6), jnp.float32)
    t = jnp.zeros(())                        # unused by the module's forward

    pred_atom, pred_frac, pred_latt = model(atoms, frac_coords, num_atoms_list, L, t)
    jax.block_until_ready((pred_atom, pred_frac, pred_latt))

    assert pred_atom.shape == (total_atoms, OUT_ATOM)
    assert pred_frac.shape == (total_atoms, 3)
    assert pred_latt.shape == (len(num_atoms_list), 6)
    assert bool(jnp.all(jnp.isfinite(pred_atom)))
    assert bool(jnp.all(jnp.isfinite(pred_frac)))
    assert bool(jnp.all(jnp.isfinite(pred_latt)))
    print("KERNEL_OK")
</pallas_src>

<mosaic_0001>
module attributes {stable_mosaic.version = 11 : i64} {
  func.func @_fused_forward_kernel(%arg0: i32, %arg1: memref<2x8x3xf32, #tpu.memory_space<vmem>>, %arg2: memref<2x8x16xf32, #tpu.memory_space<vmem>>, %arg3: memref<2x1x8xf32, #tpu.memory_space<vmem>>, %arg4: memref<2x1x8xf32, #tpu.memory_space<vmem>>, %arg5: memref<1600x256xf32, #tpu.memory_space<vmem>>, %arg6: memref<2x8x128xf32, #tpu.memory_space<vmem>>, %arg7: memref<2x1x128xf32, #tpu.memory_space<vmem>>) attributes {dimension_semantics = [#tpu.dimension_semantics<parallel>], iteration_bounds = array<i64: 1>, scalar_prefetch = 0 : i64, scratch_operands = 0 : i64, tpu.core_type = #tpu.core_type<tc>, window_params = [{transform_indices = @transform_0, window_bounds = array<i64: 2, 8, 3>}, {transform_indices = @transform_1, window_bounds = array<i64: 2, 8, 16>}, {transform_indices = @transform_2, window_bounds = array<i64: 2, 1, 8>}, {transform_indices = @transform_3, window_bounds = array<i64: 2, 1, 8>}, {pipeline_mode = #tpu.pipeline_mode<synchronous>, transform_indices = @transform_4, window_bounds = array<i64: 1600, 256>}, {transform_indices = @transform_5, window_bounds = array<i64: 2, 8, 128>}, {transform_indices = @transform_6, window_bounds = array<i64: 2, 1, 128>}]} {
    %c0 = arith.constant 0 : index
    %c0_0 = arith.constant 0 : index
    %c0_1 = arith.constant 0 : index
    %0 = vector.load %arg1[%c0, %c0_0, %c0_1] : memref<2x8x3xf32, #tpu.memory_space<vmem>>, vector<2x8x3xf32>
    %1 = vector.shape_cast %0 : vector<2x8x3xf32> to vector<16x3xf32>
    %c0_2 = arith.constant 0 : index
    %c0_3 = arith.constant 0 : index
    %c0_4 = arith.constant 0 : index
    %2 = vector.load %arg2[%c0_2, %c0_3, %c0_4] : memref<2x8x16xf32, #tpu.memory_space<vmem>>, vector<2x8x16xf32>
    %3 = vector.shape_cast %2 : vector<2x8x16xf32> to vector<16x16xf32>
    %c0_5 = arith.constant 0 : index
    %c0_6 = arith.constant 0 : index
    %c0_7 = arith.constant 0 : index
    %4 = vector.load %arg3[%c0_5, %c0_6, %c0_7] : memref<2x1x8xf32, #tpu.memory_space<vmem>>, vector<2x1x8xf32>
    %c0_8 = arith.constant 0 : index
    %c0_9 = arith.constant 0 : index
    %c0_10 = arith.constant 0 : index
    %5 = vector.load %arg4[%c0_8, %c0_9, %c0_10] : memref<2x1x8xf32, #tpu.memory_space<vmem>>, vector<2x1x8xf32>
    %6 = vector.shape_cast %5 : vector<2x1x8xf32> to vector<2x8xf32>
    %7 = vector.extract_strided_slice %6 {offsets = [0, 0], sizes = [2, 6], strides = [1, 1]} : vector<2x8xf32> to vector<2x6xf32>
    %8 = vector.extract_strided_slice %6 {offsets = [0, 6], sizes = [2, 1], strides = [1, 1]} : vector<2x8xf32> to vector<2x1xf32>
    %c0_11 = arith.constant 0 : index
    %c0_12 = arith.constant 0 : index
    %9 = vector.load %arg5[%c0_11, %c0_12] : memref<1600x256xf32, #tpu.memory_space<vmem>>, vector<1x16xf32>
    %c8 = arith.constant 8 : index
    %c0_13 = arith.constant 0 : index
    %10 = vector.load %arg5[%c8, %c0_13] : memref<1600x256xf32, #tpu.memory_space<vmem>>, vector<1x16xf32>
    %cst = arith.constant dense<0.000000e+00> : vector<16xf32>
    %11 = vector.multi_reduction <add>, %3, %cst [1] : vector<16x16xf32> to vector<16xf32>
    %12 = vector.shape_cast %11 : vector<16xf32> to vector<16x1xf32>
    %cst_14 = arith.constant 1.600000e+01 : f32
    %13 = vector.broadcast %cst_14 : f32 to vector<16x1xf32>
    %14 = arith.divf %12, %13 : vector<16x1xf32>
    %15 = vector.broadcast %14 : vector<16x1xf32> to vector<16x16xf32>
    %16 = arith.subf %3, %15 : vector<16x16xf32>
    %17 = arith.mulf %16, %16 : vector<16x16xf32>
    %cst_15 = arith.constant dense<0.000000e+00> : vector<16xf32>
    %18 = vector.multi_reduction <add>, %17, %cst_15 [1] : vector<16x16xf32> to vector<16xf32>
    %19 = vector.shape_cast %18 : vector<16xf32> to vector<16x1xf32>
    %cst_16 = arith.constant 1.600000e+01 : f32
    %20 = vector.broadcast %cst_16 : f32 to vector<16x1xf32>
    %21 = arith.divf %19, %20 : vector<16x1xf32>
    %cst_17 = arith.constant 9.99999974E-6 : f32
    %22 = vector.broadcast %cst_17 : f32 to vector<16x1xf32>
    %23 = arith.addf %21, %22 : vector<16x1xf32>
    %24 = math.rsqrt %23 : vector<16x1xf32>
    %25 = vector.broadcast %24 : vector<16x1xf32> to vector<16x16xf32>
    %26 = arith.mulf %16, %25 : vector<16x16xf32>
    %27 = vector.broadcast %9 : vector<1x16xf32> to vector<16x16xf32>
    %28 = arith.mulf %26, %27 : vector<16x16xf32>
    %29 = vector.broadcast %10 : vector<1x16xf32> to vector<16x16xf32>
    %30 = arith.addf %28, %29 : vector<16x16xf32>
    %c16 = arith.constant 16 : index
    %c0_18 = arith.constant 0 : index
    %31 = vector.load %arg5[%c16, %c0_18] : memref<1600x256xf32, #tpu.memory_space<vmem>>, vector<1x6xf32>
    %c24 = arith.constant 24 : index
    %c0_19 = arith.constant 0 : index
    %32 = vector.load %arg5[%c24, %c0_19] : memref<1600x256xf32, #tpu.memory_space<vmem>>, vector<1x6xf32>
    %cst_20 = arith.constant dense<0.000000e+00> : vector<2xf32>
    %33 = vector.multi_reduction <add>, %7, %cst_20 [1] : vector<2x6xf32> to vector<2xf32>
    %34 = vector.shape_cast %33 : vector<2xf32> to vector<2x1xf32>
    %cst_21 = arith.constant 6.000000e+00 : f32
    %35 = vector.broadcast %cst_21 : f32 to vector<2x1xf32>
    %36 = arith.divf %34, %35 : vector<2x1xf32>
    %37 = vector.broadcast %36 : vector<2x1xf32> to vector<2x6xf32>
    %38 = arith.subf %7, %37 : vector<2x6xf32>
    %39 = arith.mulf %38, %38 : vector<2x6xf32>
    %cst_22 = arith.constant dense<0.000000e+00> : vector<2xf32>
    %40 = vector.multi_reduction <add>, %39, %cst_22 [1] : vector<2x6xf32> to vector<2xf32>
    %41 = vector.shape_cast %40 : vector<2xf32> to vector<2x1xf32>
    %cst_23 = arith.constant 6.000000e+00 : f32
    %42 = vector.broadcast %cst_23 : f32 to vector<2x1xf32>
    %43 = arith.divf %41, %42 : vector<2x1xf32>
    %cst_24 = arith.constant 9.99999974E-6 : f32
    %44 = vector.broadcast %cst_24 : f32 to vector<2x1xf32>
    %45 = arith.addf %43, %44 : vector<2x1xf32>
    %46 = math.rsqrt %45 : vector<2x1xf32>
    %47 = vector.broadcast %46 : vector<2x1xf32> to vector<2x6xf32>
    %48 = arith.mulf %38, %47 : vector<2x6xf32>
    %49 = vector.broadcast %31 : vector<1x6xf32> to vector<2x6xf32>
    %50 = arith.mulf %48, %49 : vector<2x6xf32>
    %51 = vector.broadcast %32 : vector<1x6xf32> to vector<2x6xf32>
    %52 = arith.addf %50, %51 : vector<2x6xf32>
    %53 = tpu.concatenate %52, %8 in 1 : vector<2x6xf32>, vector<2x1xf32> -> vector<2x7xf32>
    %c32 = arith.constant 32 : index
    %c0_25 = arith.constant 0 : index
    %54 = vector.load %arg5[%c32, %c0_25] : memref<1600x256xf32, #tpu.memory_space<vmem>>, vector<3x12xf32>
    %cst_26 = arith.constant dense<0.000000e+00> : vector<16x12xf32>
    %55 = tpu.matmul %1, %54, %cst_26 {dimension_numbers = #tpu.dot_dimension_numbers<[1], [0], [0], [1], [0, 0, 1, 1], [], []>} : vector<16x3xf32>, vector<3x12xf32>, vector<16x12xf32> -> vector<16x12xf32>
    %56 = math.sin %55 : vector<16x12xf32>
    %57 = math.cos %55 : vector<16x12xf32>
    %c40 = arith.constant 40 : index
    %c0_27 = arith.constant 0 : index
    %58 = vector.load %arg5[%c40, %c0_27] : memref<1600x256xf32, #tpu.memory_space<vmem>>, vector<16x120xf32>
    %cst_28 = arith.constant dense<0.000000e+00> : vector<16x120xf32>
    %59 = tpu.matmul %30, %58, %cst_28 {dimension_numbers = #tpu.dot_dimension_numbers<[1], [0], [0], [1], [0, 0, 1, 1], [], []>} : vector<16x16xf32>, vector<16x120xf32>, vector<16x120xf32> -> vector<16x120xf32>
    %c56 = arith.constant 56 : index
    %c0_29 = arith.constant 0 : index
    %60 = vector.load %arg5[%c56, %c0_29] : memref<1600x256xf32, #tpu.memory_space<vmem>>, vector<12x120xf32>
    %cst_30 = arith.constant dense<0.000000e+00> : vector<16x120xf32>
    %61 = tpu.matmul %56, %60, %cst_30 {dimension_numbers = #tpu.dot_dimension_numbers<[1], [0], [0], [1], [0, 0, 1, 1], [], []>} : vector<16x12xf32>, vector<12x120xf32>, vector<16x120xf32> -> vector<16x120xf32>
    %62 = arith.addf %59, %61 : vector<16x120xf32>
    %c72 = arith.constant 72 : index
    %c0_31 = arith.constant 0 : index
    %63 = vector.load %arg5[%c72, %c0_31] : memref<1600x256xf32, #tpu.memory_space<vmem>>, vector<12x120xf32>
    %cst_32 = arith.constant dense<0.000000e+00> : vector<16x120xf32>
    %64 = tpu.matmul %57, %63, %cst_32 {dimension_numbers = #tpu.dot_dimension_numbers<[1], [0], [0], [1], [0, 0, 1, 1], [], []>} : vector<16x12xf32>, vector<12x120xf32>, vector<16x120xf32> -> vector<16x120xf32>
    %65 = arith.addf %62, %64 : vector<16x120xf32>
    %c96 = arith.constant 96 : index
    %c0_33 = arith.constant 0 : index
    %66 = vector.load %arg5[%c96, %c0_33] : memref<1600x256xf32, #tpu.memory_space<vmem>>, vector<1x120xf32>
    %67 = vector.broadcast %66 : vector<1x120xf32> to vector<16x120xf32>
    %68 = arith.addf %65, %67 : vector<16x120xf32>
    %c88 = arith.constant 88 : index
    %c0_34 = arith.constant 0 : index
    %69 = vector.load %arg5[%c88, %c0_34] : memref<1600x256xf32, #tpu.memory_space<vmem>>, vector<7x80xf32>
    %cst_35 = arith.constant dense<0.000000e+00> : vector<2x80xf32>
    %70 = tpu.matmul %53, %69, %cst_35 {dimension_numbers = #tpu.dot_dimension_numbers<[1], [0], [0], [1], [0, 0, 1, 1], [], []>} : vector<2x7xf32>, vector<7x80xf32>, vector<2x80xf32> -> vector<2x80xf32>
    %71 = vector.shape_cast %68 : vector<16x120xf32> to vector<2x8x120xf32>
    %72 = vector.extract_strided_slice %71 {offsets = [0, 0, 0], sizes = [2, 8, 40], strides = [1, 1, 1]} : vector<2x8x120xf32> to vector<2x8x40xf32>
    %73 = vector.extract_strided_slice %71 {offsets = [0, 0, 40], sizes = [2, 8, 40], strides = [1, 1, 1]} : vector<2x8x120xf32> to vector<2x8x40xf32>
    %74 = vector.extract_strided_slice %70 {offsets = [0, 0], sizes = [2, 40], strides = [1, 1]} : vector<2x80xf32> to vector<2x40xf32>
    %75 = vector.shape_cast %74 : vector<2x40xf32> to vector<2x1x40xf32>
    %76 = vector.broadcast %75 : vector<2x1x40xf32> to vector<2x8x40xf32>
    %77 = arith.addf %73, %76 : vector<2x8x40xf32>
    %78 = vector.extract_strided_slice %71 {offsets = [0, 0, 80], sizes = [2, 8, 40], strides = [1, 1, 1]} : vector<2x8x120xf32> to vector<2x8x40xf32>
    %79 = vector.extract_strided_slice %70 {offsets = [0, 40], sizes = [2, 40], strides = [1, 1]} : vector<2x80xf32> to vector<2x40xf32>
    %80 = vector.shape_cast %79 : vector<2x40xf32> to vector<2x1x40xf32>
    %81 = vector.broadcast %80 : vector<2x1x40xf32> to vector<2x8x40xf32>
    %82 = arith.addf %78, %81 : vector<2x8x40xf32>
    %cst_36 = arith.constant 0.000000e+00 : f32
    %83 = vector.broadcast %cst_36 : f32 to vector<16x40xf32>
    %84 = vector.extract_strided_slice %72 {offsets = [0, 0, 0], sizes = [2, 8, 10], strides = [1, 1, 1]} : vector<2x8x40xf32> to vector<2x8x10xf32>
    %85 = vector.extract_strided_slice %77 {offsets = [0, 0, 0], sizes = [2, 8, 10], strides = [1, 1, 1]} : vector<2x8x40xf32> to vector<2x8x10xf32>
    "tpu.trace_start"() <{level = 10 : i32, message = "bqd,bkd->bqk"}> : () -> ()
    %cst_37 = arith.constant dense<0.000000e+00> : vector<2x8x8xf32>
    %86 = tpu.matmul %84, %85, %cst_37 {dimension_numbers = #tpu.dot_dimension_numbers<[2], [2], [1], [1], [0, 0, 0, 1, 1, 1], [0], [0]>} : vector<2x8x10xf32>, vector<2x8x10xf32>, vector<2x8x8xf32> -> vector<2x8x8xf32>
    "tpu.trace_stop"() : () -> ()
    %cst_38 = arith.constant 0.316227764 : f32
    %87 = vector.broadcast %cst_38 : f32 to vector<2x8x8xf32>
    %88 = arith.mulf %86, %87 : vector<2x8x8xf32>
    %cst_39 = arith.constant 5.000000e-01 : f32
    %89 = vector.broadcast %cst_39 : f32 to vector<2x1x8xf32>
    %90 = arith.cmpf ogt, %4, %89 : vector<2x1x8xf32>
    %cst_40 = arith.constant -1.000000e+30 : f32
    %91 = vector.shape_cast %90 : vector<2x1x8xi1> to vector<2x1x8xi1>
    %92 = vector.broadcast %91 : vector<2x1x8xi1> to vector<2x8x8xi1>
    %93 = vector.broadcast %cst_40 : f32 to vector<2x8x8xf32>
    %94 = arith.select %92, %93, %88 : vector<2x8x8xi1>, vector<2x8x8xf32>
    %cst_41 = arith.constant dense<0xFF800000> : vector<2x8xf32>
    %95 = vector.multi_reduction <maximumf>, %94, %cst_41 [2] : vector<2x8x8xf32> to vector<2x8xf32>
    %96 = vector.shape_cast %95 : vector<2x8xf32> to vector<2x8x1xf32>
    %97 = vector.broadcast %96 : vector<2x8x1xf32> to vector<2x8x8xf32>
    %98 = arith.subf %94, %97 : vector<2x8x8xf32>
    %99 = math.exp %98 : vector<2x8x8xf32>
    %cst_42 = arith.constant dense<0.000000e+00> : vector<2x8xf32>
    %100 = vector.multi_reduction <add>, %99, %cst_42 [2] : vector<2x8x8xf32> to vector<2x8xf32>
    %101 = vector.shape_cast %100 : vector<2x8xf32> to vector<2x8x1xf32>
    %102 = vector.broadcast %101 : vector<2x8x1xf32> to vector<2x8x8xf32>
    %103 = arith.divf %99, %102 : vector<2x8x8xf32>
    %104 = vector.extract_strided_slice %82 {offsets = [0, 0, 0], sizes = [2, 8, 10], strides = [1, 1, 1]} : vector<2x8x40xf32> to vector<2x8x10xf32>
    "tpu.trace_start"() <{level = 10 : i32, message = "bqk,bkd->bqd"}> : () -> ()
    %cst_43 = arith.constant dense<0.000000e+00> : vector<2x8x10xf32>
    %105 = tpu.matmul %103, %104, %cst_43 {dimension_numbers = #tpu.dot_dimension_numbers<[2], [1], [1], [2], [0, 0, 0, 1, 1, 2], [0], [0]>} : vector<2x8x8xf32>, vector<2x8x10xf32>, vector<2x8x10xf32> -> vector<2x8x10xf32>
    "tpu.trace_stop"() : () -> ()
    %106 = vector.shape_cast %105 : vector<2x8x10xf32> to vector<16x10xf32>
    %c104 = arith.constant 104 : index
    %c0_44 = arith.constant 0 : index
    %107 = vector.load %arg5[%c104, %c0_44] : memref<1600x256xf32, #tpu.memory_space<vmem>>, vector<10x40xf32>
    %cst_45 = arith.constant dense<0.000000e+00> : vector<16x40xf32>
    %108 = tpu.matmul %106, %107, %cst_45 {dimension_numbers = #tpu.dot_dimension_numbers<[1], [0], [0], [1], [0, 0, 1, 1], [], []>} : vector<16x10xf32>, vector<10x40xf32>, vector<16x40xf32> -> vector<16x40xf32>
    %109 = arith.addf %83, %108 : vector<16x40xf32>
    %110 = vector.extract_strided_slice %72 {offsets = [0, 0, 10], sizes = [2, 8, 10], strides = [1, 1, 1]} : vector<2x8x40xf32> to vector<2x8x10xf32>
    %111 = vector.extract_strided_slice %77 {offsets = [0, 0, 10], sizes = [2, 8, 10], strides = [1, 1, 1]} : vector<2x8x40xf32> to vector<2x8x10xf32>
    "tpu.trace_start"() <{level = 10 : i32, message = "bqd,bkd->bqk"}> : () -> ()
    %cst_46 = arith.constant dense<0.000000e+00> : vector<2x8x8xf32>
    %112 = tpu.matmul %110, %111, %cst_46 {dimension_numbers = #tpu.dot_dimension_numbers<[2], [2], [1], [1], [0, 0, 0, 1, 1, 1], [0], [0]>} : vector<2x8x10xf32>, vector<2x8x10xf32>, vector<2x8x8xf32> -> vector<2x8x8xf32>
    "tpu.trace_stop"() : () -> ()
    %cst_47 = arith.constant 0.316227764 : f32
    %113 = vector.broadcast %cst_47 : f32 to vector<2x8x8xf32>
    %114 = arith.mulf %112, %113 : vector<2x8x8xf32>
    %cst_48 = arith.constant 5.000000e-01 : f32
    %115 = vector.broadcast %cst_48 : f32 to vector<2x1x8xf32>
    %116 = arith.cmpf ogt, %4, %115 : vector<2x1x8xf32>
    %cst_49 = arith.constant -1.000000e+30 : f32
    %117 = vector.shape_cast %116 : vector<2x1x8xi1> to vector<2x1x8xi1>
    %118 = vector.broadcast %117 : vector<2x1x8xi1> to vector<2x8x8xi1>
    %119 = vector.broadcast %cst_49 : f32 to vector<2x8x8xf32>
    %120 = arith.select %118, %119, %114 : vector<2x8x8xi1>, vector<2x8x8xf32>
    %cst_50 = arith.constant dense<0xFF800000> : vector<2x8xf32>
    %121 = vector.multi_reduction <maximumf>, %120, %cst_50 [2] : vector<2x8x8xf32> to vector<2x8xf32>
    %122 = vector.shape_cast %121 : vector<2x8xf32> to vector<2x8x1xf32>
    %123 = vector.broadcast %122 : vector<2x8x1xf32> to vector<2x8x8xf32>
    %124 = arith.subf %120, %123 : vector<2x8x8xf32>
    %125 = math.exp %124 : vector<2x8x8xf32>
    %cst_51 = arith.constant dense<0.000000e+00> : vector<2x8xf32>
    %126 = vector.multi_reduction <add>, %125, %cst_51 [2] : vector<2x8x8xf32> to vector<2x8xf32>
    %127 = vector.shape_cast %126 : vector<2x8xf32> to vector<2x8x1xf32>
    %128 = vector.broadcast %127 : vector<2x8x1xf32> to vector<2x8x8xf32>
    %129 = arith.divf %125, %128 : vector<2x8x8xf32>
    %130 = vector.extract_strided_slice %82 {offsets = [0, 0, 10], sizes = [2, 8, 10], strides = [1, 1, 1]} : vector<2x8x40xf32> to vector<2x8x10xf32>
    "tpu.trace_start"() <{level = 10 : i32, message = "bqk,bkd->bqd"}> : () -> ()
    %cst_52 = arith.constant dense<0.000000e+00> : vector<2x8x10xf32>
    %131 = tpu.matmul %129, %130, %cst_52 {dimension_numbers = #tpu.dot_dimension_numbers<[2], [1], [1], [2], [0, 0, 0, 1, 1, 2], [0], [0]>} : vector<2x8x8xf32>, vector<2x8x10xf32>, vector<2x8x10xf32> -> vector<2x8x10xf32>
    "tpu.trace_stop"() : () -> ()
    %132 = vector.shape_cast %131 : vector<2x8x10xf32> to vector<16x10xf32>
    %c120 = arith.constant 120 : index
    %c0_53 = arith.constant 0 : index
    %133 = vector.load %arg5[%c120, %c0_53] : memref<1600x256xf32, #tpu.memory_space<vmem>>, vector<10x40xf32>
    %cst_54 = arith.constant dense<0.000000e+00> : vector<16x40xf32>
    %134 = tpu.matmul %132, %133, %cst_54 {dimension_numbers = #tpu.dot_dimension_numbers<[1], [0], [0], [1], [0, 0, 1, 1], [], []>} : vector<16x10xf32>, vector<10x40xf32>, vector<16x40xf32> -> vector<16x40xf32>
    %135 = arith.addf %109, %134 : vector<16x40xf32>
    %136 = vector.extract_strided_slice %72 {offsets = [0, 0, 20], sizes = [2, 8, 10], strides = [1, 1, 1]} : vector<2x8x40xf32> to vector<2x8x10xf32>
    %137 = vector.extract_strided_slice %77 {offsets = [0, 0, 20], sizes = [2, 8, 10], strides = [1, 1, 1]} : vector<2x8x40xf32> to vector<2x8x10xf32>
    "tpu.trace_start"() <{level = 10 : i32, message = "bqd,bkd->bqk"}> : () -> ()
    %cst_55 = arith.constant dense<0.000000e+00> : vector<2x8x8xf32>
    %138 = tpu.matmul %136, %137, %cst_55 {dimension_numbers = #tpu.dot_dimension_numbers<[2], [2], [1], [1], [0, 0, 0, 1, 1, 1], [0], [0]>} : vector<2x8x10xf32>, vector<2x8x10xf32>, vector<2x8x8xf32> -> vector<2x8x8xf32>
    "tpu.trace_stop"() : () -> ()
    %cst_56 = arith.constant 0.316227764 : f32
    %139 = vector.broadcast %cst_56 : f32 to vector<2x8x8xf32>
    %140 = arith.mulf %138, %139 : vector<2x8x8xf32>
    %cst_57 = arith.constant 5.000000e-01 : f32
    %141 = vector.broadcast %cst_57 : f32 to vector<2x1x8xf32>
    %142 = arith.cmpf ogt, %4, %141 : vector<2x1x8xf32>
    %cst_58 = arith.constant -1.000000e+30 : f32
    %143 = vector.shape_cast %142 : vector<2x1x8xi1> to vector<2x1x8xi1>
    %144 = vector.broadcast %143 : vector<2x1x8xi1> to vector<2x8x8xi1>
    %145 = vector.broadcast %cst_58 : f32 to vector<2x8x8xf32>
    %146 = arith.select %144, %145, %140 : vector<2x8x8xi1>, vector<2x8x8xf32>
    %cst_59 = arith.constant dense<0xFF800000> : vector<2x8xf32>
    %147 = vector.multi_reduction <maximumf>, %146, %cst_59 [2] : vector<2x8x8xf32> to vector<2x8xf32>
    %148 = vector.shape_cast %147 : vector<2x8xf32> to vector<2x8x1xf32>
    %149 = vector.broadcast %148 : vector<2x8x1xf32> to vector<2x8x8xf32>
    %150 = arith.subf %146, %149 : vector<2x8x8xf32>
    %151 = math.exp %150 : vector<2x8x8xf32>
    %cst_60 = arith.constant dense<0.000000e+00> : vector<2x8xf32>
    %152 = vector.multi_reduction <add>, %151, %cst_60 [2] : vector<2x8x8xf32> to vector<2x8xf32>
    %153 = vector.shape_cast %152 : vector<2x8xf32> to vector<2x8x1xf32>
    %154 = vector.broadcast %153 : vector<2x8x1xf32> to vector<2x8x8xf32>
    %155 = arith.divf %151, %154 : vector<2x8x8xf32>
    %156 = vector.extract_strided_slice %82 {offsets = [0, 0, 20], sizes = [2, 8, 10], strides = [1, 1, 1]} : vector<2x8x40xf32> to vector<2x8x10xf32>
    "tpu.trace_start"() <{level = 10 : i32, message = "bqk,bkd->bqd"}> : () -> ()
    %cst_61 = arith.constant dense<0.000000e+00> : vector<2x8x10xf32>
    %157 = tpu.matmul %155, %156, %cst_61 {dimension_numbers = #tpu.dot_dimension_numbers<[2], [1], [1], [2], [0, 0, 0, 1, 1, 2], [0], [0]>} : vector<2x8x8xf32>, vector<2x8x10xf32>, vector<2x8x10xf32> -> vector<2x8x10xf32>
    "tpu.trace_stop"() : () -> ()
    %158 = vector.shape_cast %157 : vector<2x8x10xf32> to vector<16x10xf32>
    %c136 = arith.constant 136 : index
    %c0_62 = arith.constant 0 : index
    %159 = vector.load %arg5[%c136, %c0_62] : memref<1600x256xf32, #tpu.memory_space<vmem>>, vector<10x40xf32>
    %cst_63 = arith.constant dense<0.000000e+00> : vector<16x40xf32>
    %160 = tpu.matmul %158, %159, %cst_63 {dimension_numbers = #tpu.dot_dimension_numbers<[1], [0], [0], [1], [0, 0, 1, 1], [], []>} : vector<16x10xf32>, vector<10x40xf32>, vector<16x40xf32> -> vector<16x40xf32>
    %161 = arith.addf %135, %160 : vector<16x40xf32>
    %162 = vector.extract_strided_slice %72 {offsets = [0, 0, 30], sizes = [2, 8, 10], strides = [1, 1, 1]} : vector<2x8x40xf32> to vector<2x8x10xf32>
    %163 = vector.extract_strided_slice %77 {offsets = [0, 0, 30], sizes = [2, 8, 10], strides = [1, 1, 1]} : vector<2x8x40xf32> to vector<2x8x10xf32>
    "tpu.trace_start"() <{level = 10 : i32, message = "bqd,bkd->bqk"}> : () -> ()
    %cst_64 = arith.constant dense<0.000000e+00> : vector<2x8x8xf32>
    %164 = tpu.matmul %162, %163, %cst_64 {dimension_numbers = #tpu.dot_dimension_numbers<[2], [2], [1], [1], [0, 0, 0, 1, 1, 1], [0], [0]>} : vector<2x8x10xf32>, vector<2x8x10xf32>, vector<2x8x8xf32> -> vector<2x8x8xf32>
    "tpu.trace_stop"() : () -> ()
    %cst_65 = arith.constant 0.316227764 : f32
    %165 = vector.broadcast %cst_65 : f32 to vector<2x8x8xf32>
    %166 = arith.mulf %164, %165 : vector<2x8x8xf32>
    %cst_66 = arith.constant 5.000000e-01 : f32
    %167 = vector.broadcast %cst_66 : f32 to vector<2x1x8xf32>
    %168 = arith.cmpf ogt, %4, %167 : vector<2x1x8xf32>
    %cst_67 = arith.constant -1.000000e+30 : f32
    %169 = vector.shape_cast %168 : vector<2x1x8xi1> to vector<2x1x8xi1>
    %170 = vector.broadcast %169 : vector<2x1x8xi1> to vector<2x8x8xi1>
    %171 = vector.broadcast %cst_67 : f32 to vector<2x8x8xf32>
    %172 = arith.select %170, %171, %166 : vector<2x8x8xi1>, vector<2x8x8xf32>
    %cst_68 = arith.constant dense<0xFF800000> : vector<2x8xf32>
    %173 = vector.multi_reduction <maximumf>, %172, %cst_68 [2] : vector<2x8x8xf32> to vector<2x8xf32>
    %174 = vector.shape_cast %173 : vector<2x8xf32> to vector<2x8x1xf32>
    %175 = vector.broadcast %174 : vector<2x8x1xf32> to vector<2x8x8xf32>
    %176 = arith.subf %172, %175 : vector<2x8x8xf32>
    %177 = math.exp %176 : vector<2x8x8xf32>
    %cst_69 = arith.constant dense<0.000000e+00> : vector<2x8xf32>
    %178 = vector.multi_reduction <add>, %177, %cst_69 [2] : vector<2x8x8xf32> to vector<2x8xf32>
    %179 = vector.shape_cast %178 : vector<2x8xf32> to vector<2x8x1xf32>
    %180 = vector.broadcast %179 : vector<2x8x1xf32> to vector<2x8x8xf32>
    %181 = arith.divf %177, %180 : vector<2x8x8xf32>
    %182 = vector.extract_strided_slice %82 {offsets = [0, 0, 30], sizes = [2, 8, 10], strides = [1, 1, 1]} : vector<2x8x40xf32> to vector<2x8x10xf32>
    "tpu.trace_start"() <{level = 10 : i32, message = "bqk,bkd->bqd"}> : () -> ()
    %cst_70 = arith.constant dense<0.000000e+00> : vector<2x8x10xf32>
    %183 = tpu.matmul %181, %182, %cst_70 {dimension_numbers = #tpu.dot_dimension_numbers<[2], [1], [1], [2], [0, 0, 0, 1, 1, 2], [0], [0]>} : vector<2x8x8xf32>, vector<2x8x10xf32>, vector<2x8x10xf32> -> vector<2x8x10xf32>
    "tpu.trace_stop"() : () -> ()
    %184 = vector.shape_cast %183 : vector<2x8x10xf32> to vector<16x10xf32>
    %c152 = arith.constant 152 : index
    %c0_71 = arith.constant 0 : index
    %185 = vector.load %arg5[%c152, %c0_71] : memref<1600x256xf32, #tpu.memory_space<vmem>>, vector<10x40xf32>
    %cst_72 = arith.constant dense<0.000000e+00> : vector<16x40xf32>
    %186 = tpu.matmul %184, %185, %cst_72 {dimension_numbers = #tpu.dot_dimension_numbers<[1], [0], [0], [1], [0, 0, 1, 1], [], []>} : vector<16x10xf32>, vector<10x40xf32>, vector<16x40xf32> -> vector<16x40xf32>
    %187 = arith.addf %161, %186 : vector<16x40xf32>
    %c168 = arith.constant 168 : index
    %c0_73 = arith.constant 0 : index
    %188 = vector.load %arg5[%c168, %c0_73] : memref<1600x256xf32, #tpu.memory_space<vmem>>, vector<1x40xf32>
    %189 = vector.broadcast %188 : vector<1x40xf32> to vector<16x40xf32>
    %190 = arith.addf %187, %189 : vector<16x40xf32>
    %c176 = arith.constant 176 : index
    %c0_74 = arith.constant 0 : index
    %191 = vector.load %arg5[%c176, %c0_74] : memref<1600x256xf32, #tpu.memory_space<vmem>>, vector<1x40xf32>
    %c184 = arith.constant 184 : index
    %c0_75 = arith.constant 0 : index
    %192 = vector.load %arg5[%c184, %c0_75] : memref<1600x256xf32, #tpu.memory_space<vmem>>, vector<1x40xf32>
    %cst_76 = arith.constant dense<0.000000e+00> : vector<16xf32>
    %193 = vector.multi_reduction <add>, %190, %cst_76 [1] : vector<16x40xf32> to vector<16xf32>
    %194 = vector.shape_cast %193 : vector<16xf32> to vector<16x1xf32>
    %cst_77 = arith.constant 4.000000e+01 : f32
    %195 = vector.broadcast %cst_77 : f32 to vector<16x1xf32>
    %196 = arith.divf %194, %195 : vector<16x1xf32>
    %197 = vector.broadcast %196 : vector<16x1xf32> to vector<16x40xf32>
    %198 = arith.subf %190, %197 : vector<16x40xf32>
    %199 = arith.mulf %198, %198 : vector<16x40xf32>
    %cst_78 = arith.constant dense<0.000000e+00> : vector<16xf32>
    %200 = vector.multi_reduction <add>, %199, %cst_78 [1] : vector<16x40xf32> to vector<16xf32>
    %201 = vector.shape_cast %200 : vector<16xf32> to vector<16x1xf32>
    %cst_79 = arith.constant 4.000000e+01 : f32
    %202 = vector.broadcast %cst_79 : f32 to vector<16x1xf32>
    %203 = arith.divf %201, %202 : vector<16x1xf32>
    %cst_80 = arith.constant 9.99999974E-6 : f32
    %204 = vector.broadcast %cst_80 : f32 to vector<16x1xf32>
    %205 = arith.addf %203, %204 : vector<16x1xf32>
    %206 = math.rsqrt %205 : vector<16x1xf32>
    %207 = vector.broadcast %206 : vector<16x1xf32> to vector<16x40xf32>
    %208 = arith.mulf %198, %207 : vector<16x40xf32>
    %209 = vector.broadcast %191 : vector<1x40xf32> to vector<16x40xf32>
    %210 = arith.mulf %208, %209 : vector<16x40xf32>
    %211 = vector.broadcast %192 : vector<1x40xf32> to vector<16x40xf32>
    %212 = arith.addf %210, %211 : vector<16x40xf32>
    %c208 = arith.constant 208 : index
    %c0_81 = arith.constant 0 : index
    %213 = vector.load %arg5[%c208, %c0_81] : memref<1600x256xf32, #tpu.memory_space<vmem>>, vector<7x14xf32>
    %cst_82 = arith.constant dense<0.000000e+00> : vector<2x14xf32>
    %214 = tpu.matmul %53, %213, %cst_82 {dimension_numbers = #tpu.dot_dimension_numbers<[1], [0], [0], [1], [0, 0, 1, 1], [], []>} : vector<2x7xf32>, vector<7x14xf32>, vector<2x14xf32> -> vector<2x14xf32>
    %c216 = arith.constant 216 : index
    %c0_83 = arith.constant 0 : index
    %215 = vector.load %arg5[%c216, %c0_83] : memref<1600x256xf32, #tpu.memory_space<vmem>>, vector<1x14xf32>
    %216 = vector.broadcast %215 : vector<1x14xf32> to vector<2x14xf32>
    %217 = arith.addf %214, %216 : vector<2x14xf32>
    %218 = vector.extract_strided_slice %217 {offsets = [0, 0], sizes = [2, 7], strides = [1, 1]} : vector<2x14xf32> to vector<2x7xf32>
    %219 = vector.extract_strided_slice %217 {offsets = [0, 7], sizes = [2, 7], strides = [1, 1]} : vector<2x14xf32> to vector<2x7xf32>
    %c224 = arith.constant 224 : index
    %c0_84 = arith.constant 0 : index
    %220 = vector.load %arg5[%c224, %c0_84] : memref<1600x256xf32, #tpu.memory_space<vmem>>, vector<40x14xf32>
    %cst_85 = arith.constant dense<0.000000e+00> : vector<16x14xf32>
    %221 = tpu.matmul %212, %220, %cst_85 {dimension_numbers = #tpu.dot_dimension_numbers<[1], [0], [0], [1], [0, 0, 1, 1], [], []>} : vector<16x40xf32>, vector<40x14xf32>, vector<16x14xf32> -> vector<16x14xf32>
    %c264 = arith.constant 264 : index
    %c0_86 = arith.constant 0 : index
    %222 = vector.load %arg5[%c264, %c0_86] : memref<1600x256xf32, #tpu.memory_space<vmem>>, vector<7x14xf32>
    %cst_87 = arith.constant dense<0.000000e+00> : vector<2x14xf32>
    %223 = tpu.matmul %53, %222, %cst_87 {dimension_numbers = #tpu.dot_dimension_numbers<[1], [0], [0], [1], [0, 0, 1, 1], [], []>} : vector<2x7xf32>, vector<7x14xf32>, vector<2x14xf32> -> vector<2x14xf32>
    %c272 = arith.constant 272 : index
    %c0_88 = arith.constant 0 : index
    %224 = vector.load %arg5[%c272, %c0_88] : memref<1600x256xf32, #tpu.memory_space<vmem>>, vector<1x14xf32>
    %225 = vector.broadcast %224 : vector<1x14xf32> to vector<2x14xf32>
    %226 = arith.addf %223, %225 : vector<2x14xf32>
    %227 = vector.shape_cast %221 : vector<16x14xf32> to vector<2x8x14xf32>
    %228 = vector.shape_cast %226 : vector<2x14xf32> to vector<2x1x14xf32>
    %229 = vector.broadcast %228 : vector<2x1x14xf32> to vector<2x8x14xf32>
    %230 = arith.addf %227, %229 : vector<2x8x14xf32>
    %231 = vector.extract_strided_slice %230 {offsets = [0, 0, 0], sizes = [2, 8, 7], strides = [1, 1, 1]} : vector<2x8x14xf32> to vector<2x8x7xf32>
    %232 = vector.extract_strided_slice %230 {offsets = [0, 0, 7], sizes = [2, 8, 7], strides = [1, 1, 1]} : vector<2x8x14xf32> to vector<2x8x7xf32>
    %233 = vector.shape_cast %219 : vector<2x7xf32> to vector<2x1x7xf32>
    "tpu.trace_start"() <{level = 10 : i32, message = "bqd,bkd->bqk"}> : () -> ()
    %cst_89 = arith.constant dense<0.000000e+00> : vector<2x1x8xf32>
    %234 = tpu.matmul %233, %231, %cst_89 {dimension_numbers = #tpu.dot_dimension_numbers<[2], [2], [1], [1], [0, 0, 0, 1, 1, 1], [0], [0]>} : vector<2x1x7xf32>, vector<2x8x7xf32>, vector<2x1x8xf32> -> vector<2x1x8xf32>
    "tpu.trace_stop"() : () -> ()
    %cst_90 = arith.constant 0.377964467 : f32
    %235 = vector.broadcast %cst_90 : f32 to vector<2x1x8xf32>
    %236 = arith.mulf %234, %235 : vector<2x1x8xf32>
    %cst_91 = arith.constant 5.000000e-01 : f32
    %237 = vector.broadcast %cst_91 : f32 to vector<2x1x8xf32>
    %238 = arith.cmpf ogt, %4, %237 : vector<2x1x8xf32>
    %cst_92 = arith.constant -1.000000e+30 : f32
    %239 = vector.broadcast %cst_92 : f32 to vector<2x1x8xf32>
    %240 = arith.select %238, %239, %236 : vector<2x1x8xi1>, vector<2x1x8xf32>
    %cst_93 = arith.constant dense<0xFF800000> : vector<2x1xf32>
    %241 = vector.multi_reduction <maximumf>, %240, %cst_93 [2] : vector<2x1x8xf32> to vector<2x1xf32>
    %242 = vector.shape_cast %241 : vector<2x1xf32> to vector<2x1x1xf32>
    %243 = vector.broadcast %242 : vector<2x1x1xf32> to vector<2x1x8xf32>
    %244 = arith.subf %240, %243 : vector<2x1x8xf32>
    %245 = math.exp %244 : vector<2x1x8xf32>
    %cst_94 = arith.constant dense<0.000000e+00> : vector<2x1xf32>
    %246 = vector.multi_reduction <add>, %245, %cst_94 [2] : vector<2x1x8xf32> to vector<2x1xf32>
    %247 = vector.shape_cast %246 : vector<2x1xf32> to vector<2x1x1xf32>
    %248 = vector.broadcast %247 : vector<2x1x1xf32> to vector<2x1x8xf32>
    %249 = arith.divf %245, %248 : vector<2x1x8xf32>
    "tpu.trace_start"() <{level = 10 : i32, message = "bqk,bkd->bqd"}> : () -> ()
    %cst_95 = arith.constant dense<0.000000e+00> : vector<2x1x7xf32>
    %250 = tpu.matmul %249, %232, %cst_95 {dimension_numbers = #tpu.dot_dimension_numbers<[2], [1], [1], [2], [0, 0, 0, 1, 1, 2], [0], [0]>} : vector<2x1x8xf32>, vector<2x8x7xf32>, vector<2x1x7xf32> -> vector<2x1x7xf32>
    "tpu.trace_stop"() : () -> ()
    %251 = vector.shape_cast %250 : vector<2x1x7xf32> to vector<2x7xf32>
    %c280 = arith.constant 280 : index
    %c0_96 = arith.constant 0 : index
    %252 = vector.load %arg5[%c280, %c0_96] : memref<1600x256xf32, #tpu.memory_space<vmem>>, vector<7x7xf32>
    %cst_97 = arith.constant dense<0.000000e+00> : vector<2x7xf32>
    %253 = tpu.matmul %251, %252, %cst_97 {dimension_numbers = #tpu.dot_dimension_numbers<[1], [0], [0], [1], [0, 0, 1, 1], [], []>} : vector<2x7xf32>, vector<7x7xf32>, vector<2x7xf32> -> vector<2x7xf32>
    %c288 = arith.constant 288 : index
    %c0_98 = arith.constant 0 : index
    %254 = vector.load %arg5[%c288, %c0_98] : memref<1600x256xf32, #tpu.memory_space<vmem>>, vector<1x7xf32>
    %255 = vector.broadcast %254 : vector<1x7xf32> to vector<2x7xf32>
    %256 = arith.addf %253, %255 : vector<2x7xf32>
    %257 = arith.addf %218, %256 : vector<2x7xf32>
    %c296 = arith.constant 296 : index
    %c0_99 = arith.constant 0 : index
    %258 = vector.load %arg5[%c296, %c0_99] : memref<1600x256xf32, #tpu.memory_space<vmem>>, vector<1x7xf32>
    %c304 = arith.constant 304 : index
    %c0_100 = arith.constant 0 : index
    %259 = vector.load %arg5[%c304, %c0_100] : memref<1600x256xf32, #tpu.memory_space<vmem>>, vector<1x7xf32>
    %cst_101 = arith.constant dense<0.000000e+00> : vector<2xf32>
    %260 = vector.multi_reduction <add>, %257, %cst_101 [1] : vector<2x7xf32> to vector<2xf32>
    %261 = vector.shape_cast %260 : vector<2xf32> to vector<2x1xf32>
    %cst_102 = arith.constant 7.000000e+00 : f32
    %262 = vector.broadcast %cst_102 : f32 to vector<2x1xf32>
    %263 = arith.divf %261, %262 : vector<2x1xf32>
    %264 = vector.broadcast %263 : vector<2x1xf32> to vector<2x7xf32>
    %265 = arith.subf %257, %264 : vector<2x7xf32>
    %266 = arith.mulf %265, %265 : vector<2x7xf32>
    %cst_103 = arith.constant dense<0.000000e+00> : vector<2xf32>
    %267 = vector.multi_reduction <add>, %266, %cst_103 [1] : vector<2x7xf32> to vector<2xf32>
    %268 = vector.shape_cast %267 : vector<2xf32> to vector<2x1xf32>
    %cst_104 = arith.constant 7.000000e+00 : f32
    %269 = vector.broadcast %cst_104 : f32 to vector<2x1xf32>
    %270 = arith.divf %268, %269 : vector<2x1xf32>
    %cst_105 = arith.constant 9.99999974E-6 : f32
    %271 = vector.broadcast %cst_105 : f32 to vector<2x1xf32>
    %272 = arith.addf %270, %271 : vector<2x1xf32>
    %273 = math.rsqrt %272 : vector<2x1xf32>
    %274 = vector.broadcast %273 : vector<2x1xf32> to vector<2x7xf32>
    %275 = arith.mulf %265, %274 : vector<2x7xf32>
    %276 = vector.broadcast %258 : vector<1x7xf32> to vector<2x7xf32>
    %277 = arith.mulf %275, %276 : vector<2x7xf32>
    %278 = vector.broadcast %259 : vector<1x7xf32> to vector<2x7xf32>
    %279 = arith.addf %277, %278 : vector<2x7xf32>
    %c312 = arith.constant 312 : index
    %c0_106 = arith.constant 0 : index
    %280 = vector.load %arg5[%c312, %c0_106] : memref<1600x256xf32, #tpu.memory_space<vmem>>, vector<7x28xf32>
    %cst_107 = arith.constant dense<0.000000e+00> : vector<2x28xf32>
    %281 = tpu.matmul %279, %280, %cst_107 {dimension_numbers = #tpu.dot_dimension_numbers<[1], [0], [0], [1], [0, 0, 1, 1], [], []>} : vector<2x7xf32>, vector<7x28xf32>, vector<2x28xf32> -> vector<2x28xf32>
    %c320 = arith.constant 320 : index
    %c0_108 = arith.constant 0 : index
    %282 = vector.load %arg5[%c320, %c0_108] : memref<1600x256xf32, #tpu.memory_space<vmem>>, vector<1x28xf32>
    %283 = vector.broadcast %282 : vector<1x28xf32> to vector<2x28xf32>
    %284 = arith.addf %281, %283 : vector<2x28xf32>
    %285 = arith.negf %284 : vector<2x28xf32>
    %286 = math.exp %285 : vector<2x28xf32>
    %cst_109 = arith.constant 1.000000e+00 : f32
    %287 = vector.broadcast %cst_109 : f32 to vector<2x28xf32>
    %288 = arith.addf %287, %286 : vector<2x28xf32>
    %289 = arith.divf %287, %288 : vector<2x28xf32>
    %290 = arith.mulf %284, %289 : vector<2x28xf32>
    %c328 = arith.constant 328 : index
    %c0_110 = arith.constant 0 : index
    %291 = vector.load %arg5[%c328, %c0_110] : memref<1600x256xf32, #tpu.memory_space<vmem>>, vector<28x7xf32>
    %cst_111 = arith.constant dense<0.000000e+00> : vector<2x7xf32>
    %292 = tpu.matmul %290, %291, %cst_111 {dimension_numbers = #tpu.dot_dimension_numbers<[1], [0], [0], [1], [0, 0, 1, 1], [], []>} : vector<2x28xf32>, vector<28x7xf32>, vector<2x7xf32> -> vector<2x7xf32>
    %c360 = arith.constant 360 : index
    %c0_112 = arith.constant 0 : index
    %293 = vector.load %arg5[%c360, %c0_112] : memref<1600x256xf32, #tpu.memory_space<vmem>>, vector<1x7xf32>
    %294 = vector.broadcast %293 : vector<1x7xf32> to vector<2x7xf32>
    %295 = arith.addf %292, %294 : vector<2x7xf32>
    %296 = arith.addf %257, %295 : vector<2x7xf32>
    %c192 = arith.constant 192 : index
    %c0_113 = arith.constant 0 : index
    %297 = vector.load %arg5[%c192, %c0_113] : memref<1600x256xf32, #tpu.memory_space<vmem>>, vector<1x7xf32>
    %c200 = arith.constant 200 : index
    %c0_114 = arith.constant 0 : index
    %298 = vector.load %arg5[%c200, %c0_114] : memref<1600x256xf32, #tpu.memory_space<vmem>>, vector<1x7xf32>
    %cst_115 = arith.constant dense<0.000000e+00> : vector<2xf32>
    %299 = vector.multi_reduction <add>, %296, %cst_115 [1] : vector<2x7xf32> to vector<2xf32>
    %300 = vector.shape_cast %299 : vector<2xf32> to vector<2x1xf32>
    %cst_116 = arith.constant 7.000000e+00 : f32
    %301 = vector.broadcast %cst_116 : f32 to vector<2x1xf32>
    %302 = arith.divf %300, %301 : vector<2x1xf32>
    %303 = vector.broadcast %302 : vector<2x1xf32> to vector<2x7xf32>
    %304 = arith.subf %296, %303 : vector<2x7xf32>
    %305 = arith.mulf %304, %304 : vector<2x7xf32>
    %cst_117 = arith.constant dense<0.000000e+00> : vector<2xf32>
    %306 = vector.multi_reduction <add>, %305, %cst_117 [1] : vector<2x7xf32> to vector<2xf32>
    %307 = vector.shape_cast %306 : vector<2xf32> to vector<2x1xf32>
    %cst_118 = arith.constant 7.000000e+00 : f32
    %308 = vector.broadcast %cst_118 : f32 to vector<2x1xf32>
    %309 = arith.divf %307, %308 : vector<2x1xf32>
    %cst_119 = arith.constant 9.99999974E-6 : f32
    %310 = vector.broadcast %cst_119 : f32 to vector<2x1xf32>
    %311 = arith.addf %309, %310 : vector<2x1xf32>
    %312 = math.rsqrt %311 : vector<2x1xf32>
    %313 = vector.broadcast %312 : vector<2x1xf32> to vector<2x7xf32>
    %314 = arith.mulf %304, %313 : vector<2x7xf32>
    %315 = vector.broadcast %297 : vector<1x7xf32> to vector<2x7xf32>
    %316 = arith.mulf %314, %315 : vector<2x7xf32>
    %317 = vector.broadcast %298 : vector<1x7xf32> to vector<2x7xf32>
    %318 = arith.addf %316, %317 : vector<2x7xf32>
    %c368 = arith.constant 368 : index
    %c0_120 = arith.constant 0 : index
    %319 = vector.load %arg5[%c368, %c0_120] : memref<1600x256xf32, #tpu.memory_space<vmem>>, vector<40x80xf32>
    %cst_121 = arith.constant dense<0.000000e+00> : vector<16x80xf32>
    %320 = tpu.matmul %212, %319, %cst_121 {dimension_numbers = #tpu.dot_dimension_numbers<[1], [0], [0], [1], [0, 0, 1, 1], [], []>} : vector<16x40xf32>, vector<40x80xf32>, vector<16x80xf32> -> vector<16x80xf32>
    %c408 = arith.constant 408 : index
    %c0_122 = arith.constant 0 : index
    %321 = vector.load %arg5[%c408, %c0_122] : memref<1600x256xf32, #tpu.memory_space<vmem>>, vector<1x80xf32>
    %322 = vector.broadcast %321 : vector<1x80xf32> to vector<16x80xf32>
    %323 = arith.addf %320, %322 : vector<16x80xf32>
    %324 = vector.extract_strided_slice %323 {offsets = [0, 0], sizes = [16, 40], strides = [1, 1]} : vector<16x80xf32> to vector<16x40xf32>
    %325 = vector.extract_strided_slice %323 {offsets = [0, 40], sizes = [16, 40], strides = [1, 1]} : vector<16x80xf32> to vector<16x40xf32>
    %c416 = arith.constant 416 : index
    %c0_123 = arith.constant 0 : index
    %326 = vector.load %arg5[%c416, %c0_123] : memref<1600x256xf32, #tpu.memory_space<vmem>>, vector<40x80xf32>
    %cst_124 = arith.constant dense<0.000000e+00> : vector<16x80xf32>
    %327 = tpu.matmul %212, %326, %cst_124 {dimension_numbers = #tpu.dot_dimension_numbers<[1], [0], [0], [1], [0, 0, 1, 1], [], []>} : vector<16x40xf32>, vector<40x80xf32>, vector<16x80xf32> -> vector<16x80xf32>
    %c456 = arith.constant 456 : index
    %c0_125 = arith.constant 0 : index
    %328 = vector.load %arg5[%c456, %c0_125] : memref<1600x256xf32, #tpu.memory_space<vmem>>, vector<7x80xf32>
    %cst_126 = arith.constant dense<0.000000e+00> : vector<2x80xf32>
    %329 = tpu.matmul %318, %328, %cst_126 {dimension_numbers = #tpu.dot_dimension_numbers<[1], [0], [0], [1], [0, 0, 1, 1], [], []>} : vector<2x7xf32>, vector<7x80xf32>, vector<2x80xf32> -> vector<2x80xf32>
    %c464 = arith.constant 464 : index
    %c0_127 = arith.constant 0 : index
    %330 = vector.load %arg5[%c464, %c0_127] : memref<1600x256xf32, #tpu.memory_space<vmem>>, vector<1x80xf32>
    %331 = vector.broadcast %330 : vector<1x80xf32> to vector<2x80xf32>
    %332 = arith.addf %329, %331 : vector<2x80xf32>
    %333 = vector.shape_cast %327 : vector<16x80xf32> to vector<2x8x80xf32>
    %334 = vector.shape_cast %332 : vector<2x80xf32> to vector<2x1x80xf32>
    %335 = vector.broadcast %334 : vector<2x1x80xf32> to vector<2x8x80xf32>
    %336 = arith.addf %333, %335 : vector<2x8x80xf32>
    %337 = vector.extract_strided_slice %336 {offsets = [0, 0, 0], sizes = [2, 8, 40], strides = [1, 1, 1]} : vector<2x8x80xf32> to vector<2x8x40xf32>
    %338 = vector.extract_strided_slice %336 {offsets = [0, 0, 40], sizes = [2, 8, 40], strides = [1, 1, 1]} : vector<2x8x80xf32> to vector<2x8x40xf32>
    %339 = vector.shape_cast %325 : vector<16x40xf32> to vector<2x8x40xf32>
    "tpu.trace_start"() <{level = 10 : i32, message = "bqd,bkd->bqk"}> : () -> ()
    %cst_128 = arith.constant dense<0.000000e+00> : vector<2x8x8xf32>
    %340 = tpu.matmul %339, %337, %cst_128 {dimension_numbers = #tpu.dot_dimension_numbers<[2], [2], [1], [1], [0, 0, 0, 1, 1, 1], [0], [0]>} : vector<2x8x40xf32>, vector<2x8x40xf32>, vector<2x8x8xf32> -> vector<2x8x8xf32>
    "tpu.trace_stop"() : () -> ()
    %cst_129 = arith.constant 0.158113882 : f32
    %341 = vector.broadcast %cst_129 : f32 to vector<2x8x8xf32>
    %342 = arith.mulf %340, %341 : vector<2x8x8xf32>
    %cst_130 = arith.constant 5.000000e-01 : f32
    %343 = vector.broadcast %cst_130 : f32 to vector<2x1x8xf32>
    %344 = arith.cmpf ogt, %4, %343 : vector<2x1x8xf32>
    %cst_131 = arith.constant -1.000000e+30 : f32
    %345 = vector.shape_cast %344 : vector<2x1x8xi1> to vector<2x1x8xi1>
    %346 = vector.broadcast %345 : vector<2x1x8xi1> to vector<2x8x8xi1>
    %347 = vector.broadcast %cst_131 : f32 to vector<2x8x8xf32>
    %348 = arith.select %346, %347, %342 : vector<2x8x8xi1>, vector<2x8x8xf32>
    %cst_132 = arith.constant dense<0xFF800000> : vector<2x8xf32>
    %349 = vector.multi_reduction <maximumf>, %348, %cst_132 [2] : vector<2x8x8xf32> to vector<2x8xf32>
    %350 = vector.shape_cast %349 : vector<2x8xf32> to vector<2x8x1xf32>
    %351 = vector.broadcast %350 : vector<2x8x1xf32> to vector<2x8x8xf32>
    %352 = arith.subf %348, %351 : vector<2x8x8xf32>
    %353 = math.exp %352 : vector<2x8x8xf32>
    %cst_133 = arith.constant dense<0.000000e+00> : vector<2x8xf32>
    %354 = vector.multi_reduction <add>, %353, %cst_133 [2] : vector<2x8x8xf32> to vector<2x8xf32>
    %355 = vector.shape_cast %354 : vector<2x8xf32> to vector<2x8x1xf32>
    %356 = vector.broadcast %355 : vector<2x8x1xf32> to vector<2x8x8xf32>
    %357 = arith.divf %353, %356 : vector<2x8x8xf32>
    "tpu.trace_start"() <{level = 10 : i32, message = "bqk,bkd->bqd"}> : () -> ()
    %cst_134 = arith.constant dense<0.000000e+00> : vector<2x8x40xf32>
    %358 = tpu.matmul %357, %338, %cst_134 {dimension_numbers = #tpu.dot_dimension_numbers<[2], [1], [1], [2], [0, 0, 0, 1, 1, 2], [0], [0]>} : vector<2x8x8xf32>, vector<2x8x40xf32>, vector<2x8x40xf32> -> vector<2x8x40xf32>
    "tpu.trace_stop"() : () -> ()
    %359 = vector.shape_cast %358 : vector<2x8x40xf32> to vector<16x40xf32>
    %c472 = arith.constant 472 : index
    %c0_135 = arith.constant 0 : index
    %360 = vector.load %arg5[%c472, %c0_135] : memref<1600x256xf32, #tpu.memory_space<vmem>>, vector<40x40xf32>
    %cst_136 = arith.constant dense<0.000000e+00> : vector<16x40xf32>
    %361 = tpu.matmul %359, %360, %cst_136 {dimension_numbers = #tpu.dot_dimension_numbers<[1], [0], [0], [1], [0, 0, 1, 1], [], []>} : vector<16x40xf32>, vector<40x40xf32>, vector<16x40xf32> -> vector<16x40xf32>
    %c512 = arith.constant 512 : index
    %c0_137 = arith.constant 0 : index
    %362 = vector.load %arg5[%c512, %c0_137] : memref<1600x256xf32, #tpu.memory_space<vmem>>, vector<1x40xf32>
    %363 = vector.broadcast %362 : vector<1x40xf32> to vector<16x40xf32>
    %364 = arith.addf %361, %363 : vector<16x40xf32>
    %365 = arith.addf %324, %364 : vector<16x40xf32>
    %c520 = arith.constant 520 : index
    %c0_138 = arith.constant 0 : index
    %366 = vector.load %arg5[%c520, %c0_138] : memref<1600x256xf32, #tpu.memory_space<vmem>>, vector<1x40xf32>
    %c528 = arith.constant 528 : index
    %c0_139 = arith.constant 0 : index
    %367 = vector.load %arg5[%c528, %c0_139] : memref<1600x256xf32, #tpu.memory_space<vmem>>, vector<1x40xf32>
    %cst_140 = arith.constant dense<0.000000e+00> : vector<16xf32>
    %368 = vector.multi_reduction <add>, %365, %cst_140 [1] : vector<16x40xf32> to vector<16xf32>
    %369 = vector.shape_cast %368 : vector<16xf32> to vector<16x1xf32>
    %cst_141 = arith.constant 4.000000e+01 : f32
    %370 = vector.broadcast %cst_141 : f32 to vector<16x1xf32>
    %371 = arith.divf %369, %370 : vector<16x1xf32>
    %372 = vector.broadcast %371 : vector<16x1xf32> to vector<16x40xf32>
    %373 = arith.subf %365, %372 : vector<16x40xf32>
    %374 = arith.mulf %373, %373 : vector<16x40xf32>
    %cst_142 = arith.constant dense<0.000000e+00> : vector<16xf32>
    %375 = vector.multi_reduction <add>, %374, %cst_142 [1] : vector<16x40xf32> to vector<16xf32>
    %376 = vector.shape_cast %375 : vector<16xf32> to vector<16x1xf32>
    %cst_143 = arith.constant 4.000000e+01 : f32
    %377 = vector.broadcast %cst_143 : f32 to vector<16x1xf32>
    %378 = arith.divf %376, %377 : vector<16x1xf32>
    %cst_144 = arith.constant 9.99999974E-6 : f32
    %379 = vector.broadcast %cst_144 : f32 to vector<16x1xf32>
    %380 = arith.addf %378, %379 : vector<16x1xf32>
    %381 = math.rsqrt %380 : vector<16x1xf32>
    %382 = vector.broadcast %381 : vector<16x1xf32> to vector<16x40xf32>
    %383 = arith.mulf %373, %382 : vector<16x40xf32>
    %384 = vector.broadcast %366 : vector<1x40xf32> to vector<16x40xf32>
    %385 = arith.mulf %383, %384 : vector<16x40xf32>
    %386 = vector.broadcast %367 : vector<1x40xf32> to vector<16x40xf32>
    %387 = arith.addf %385, %386 : vector<16x40xf32>
    %c536 = arith.constant 536 : index
    %c0_145 = arith.constant 0 : index
    %388 = vector.load %arg5[%c536, %c0_145] : memref<1600x256xf32, #tpu.memory_space<vmem>>, vector<40x160xf32>
    %cst_146 = arith.constant dense<0.000000e+00> : vector<16x160xf32>
    %389 = tpu.matmul %387, %388, %cst_146 {dimension_numbers = #tpu.dot_dimension_numbers<[1], [0], [0], [1], [0, 0, 1, 1], [], []>} : vector<16x40xf32>, vector<40x160xf32>, vector<16x160xf32> -> vector<16x160xf32>
    %c576 = arith.constant 576 : index
    %c0_147 = arith.constant 0 : index
    %390 = vector.load %arg5[%c576, %c0_147] : memref<1600x256xf32, #tpu.memory_space<vmem>>, vector<1x160xf32>
    %391 = vector.broadcast %390 : vector<1x160xf32> to vector<16x160xf32>
    %392 = arith.addf %389, %391 : vector<16x160xf32>
    %393 = arith.negf %392 : vector<16x160xf32>
    %394 = math.exp %393 : vector<16x160xf32>
    %cst_148 = arith.constant 1.000000e+00 : f32
    %395 = vector.broadcast %cst_148 : f32 to vector<16x160xf32>
    %396 = arith.addf %395, %394 : vector<16x160xf32>
    %397 = arith.divf %395, %396 : vector<16x160xf32>
    %398 = arith.mulf %392, %397 : vector<16x160xf32>
    %c584 = arith.constant 584 : index
    %c0_149 = arith.constant 0 : index
    %399 = vector.load %arg5[%c584, %c0_149] : memref<1600x256xf32, #tpu.memory_space<vmem>>, vector<160x40xf32>
    %cst_150 = arith.constant dense<0.000000e+00> : vector<16x40xf32>
    %400 = tpu.matmul %398, %399, %cst_150 {dimension_numbers = #tpu.dot_dimension_numbers<[1], [0], [0], [1], [0, 0, 1, 1], [], []>} : vector<16x160xf32>, vector<160x40xf32>, vector<16x40xf32> -> vector<16x40xf32>
    %c744 = arith.constant 744 : index
    %c0_151 = arith.constant 0 : index
    %401 = vector.load %arg5[%c744, %c0_151] : memref<1600x256xf32, #tpu.memory_space<vmem>>, vector<1x40xf32>
    %402 = vector.broadcast %401 : vector<1x40xf32> to vector<16x40xf32>
    %403 = arith.addf %400, %402 : vector<16x40xf32>
    %404 = arith.addf %365, %403 : vector<16x40xf32>
    %c752 = arith.constant 752 : index
    %c0_152 = arith.constant 0 : index
    %405 = vector.load %arg5[%c752, %c0_152] : memref<1600x256xf32, #tpu.memory_space<vmem>>, vector<1x40xf32>
    %c760 = arith.constant 760 : index
    %c0_153 = arith.constant 0 : index
    %406 = vector.load %arg5[%c760, %c0_153] : memref<1600x256xf32, #tpu.memory_space<vmem>>, vector<1x40xf32>
    %cst_154 = arith.constant dense<0.000000e+00> : vector<16xf32>
    %407 = vector.multi_reduction <add>, %404, %cst_154 [1] : vector<16x40xf32> to vector<16xf32>
    %408 = vector.shape_cast %407 : vector<16xf32> to vector<16x1xf32>
    %cst_155 = arith.constant 4.000000e+01 : f32
    %409 = vector.broadcast %cst_155 : f32 to vector<16x1xf32>
    %410 = arith.divf %408, %409 : vector<16x1xf32>
    %411 = vector.broadcast %410 : vector<16x1xf32> to vector<16x40xf32>
    %412 = arith.subf %404, %411 : vector<16x40xf32>
    %413 = arith.mulf %412, %412 : vector<16x40xf32>
    %cst_156 = arith.constant dense<0.000000e+00> : vector<16xf32>
    %414 = vector.multi_reduction <add>, %413, %cst_156 [1] : vector<16x40xf32> to vector<16xf32>
    %415 = vector.shape_cast %414 : vector<16xf32> to vector<16x1xf32>
    %cst_157 = arith.constant 4.000000e+01 : f32
    %416 = vector.broadcast %cst_157 : f32 to vector<16x1xf32>
    %417 = arith.divf %415, %416 : vector<16x1xf32>
    %cst_158 = arith.constant 9.99999974E-6 : f32
    %418 = vector.broadcast %cst_158 : f32 to vector<16x1xf32>
    %419 = arith.addf %417, %418 : vector<16x1xf32>
    %420 = math.rsqrt %419 : vector<16x1xf32>
    %421 = vector.broadcast %420 : vector<16x1xf32> to vector<16x40xf32>
    %422 = arith.mulf %412, %421 : vector<16x40xf32>
    %423 = vector.broadcast %405 : vector<1x40xf32> to vector<16x40xf32>
    %424 = arith.mulf %422, %423 : vector<16x40xf32>
    %425 = vector.broadcast %406 : vector<1x40xf32> to vector<16x40xf32>
    %426 = arith.addf %424, %425 : vector<16x40xf32>
    %c784 = arith.constant 784 : index
    %c0_159 = arith.constant 0 : index
    %427 = vector.load %arg5[%c784, %c0_159] : memref<1600x256xf32, #tpu.memory_space<vmem>>, vector<7x14xf32>
    %cst_160 = arith.constant dense<0.000000e+00> : vector<2x14xf32>
    %428 = tpu.matmul %318, %427, %cst_160 {dimension_numbers = #tpu.dot_dimension_numbers<[1], [0], [0], [1], [0, 0, 1, 1], [], []>} : vector<2x7xf32>, vector<7x14xf32>, vector<2x14xf32> -> vector<2x14xf32>
    %c792 = arith.constant 792 : index
    %c0_161 = arith.constant 0 : index
    %429 = vector.load %arg5[%c792, %c0_161] : memref<1600x256xf32, #tpu.memory_space<vmem>>, vector<1x14xf32>
    %430 = vector.broadcast %429 : vector<1x14xf32> to vector<2x14xf32>
    %431 = arith.addf %428, %430 : vector<2x14xf32>
    %432 = vector.extract_strided_slice %431 {offsets = [0, 0], sizes = [2, 7], strides = [1, 1]} : vector<2x14xf32> to vector<2x7xf32>
    %433 = vector.extract_strided_slice %431 {offsets = [0, 7], sizes = [2, 7], strides = [1, 1]} : vector<2x14xf32> to vector<2x7xf32>
    %c800 = arith.constant 800 : index
    %c0_162 = arith.constant 0 : index
    %434 = vector.load %arg5[%c800, %c0_162] : memref<1600x256xf32, #tpu.memory_space<vmem>>, vector<40x14xf32>
    %cst_163 = arith.constant dense<0.000000e+00> : vector<16x14xf32>
    %435 = tpu.matmul %426, %434, %cst_163 {dimension_numbers = #tpu.dot_dimension_numbers<[1], [0], [0], [1], [0, 0, 1, 1], [], []>} : vector<16x40xf32>, vector<40x14xf32>, vector<16x14xf32> -> vector<16x14xf32>
    %c840 = arith.constant 840 : index
    %c0_164 = arith.constant 0 : index
    %436 = vector.load %arg5[%c840, %c0_164] : memref<1600x256xf32, #tpu.memory_space<vmem>>, vector<7x14xf32>
    %cst_165 = arith.constant dense<0.000000e+00> : vector<2x14xf32>
    %437 = tpu.matmul %318, %436, %cst_165 {dimension_numbers = #tpu.dot_dimension_numbers<[1], [0], [0], [1], [0, 0, 1, 1], [], []>} : vector<2x7xf32>, vector<7x14xf32>, vector<2x14xf32> -> vector<2x14xf32>
    %c848 = arith.constant 848 : index
    %c0_166 = arith.constant 0 : index
    %438 = vector.load %arg5[%c848, %c0_166] : memref<1600x256xf32, #tpu.memory_space<vmem>>, vector<1x14xf32>
    %439 = vector.broadcast %438 : vector<1x14xf32> to vector<2x14xf32>
    %440 = arith.addf %437, %439 : vector<2x14xf32>
    %441 = vector.shape_cast %435 : vector<16x14xf32> to vector<2x8x14xf32>
    %442 = vector.shape_cast %440 : vector<2x14xf32> to vector<2x1x14xf32>
    %443 = vector.broadcast %442 : vector<2x1x14xf32> to vector<2x8x14xf32>
    %444 = arith.addf %441, %443 : vector<2x8x14xf32>
    %445 = vector.extract_strided_slice %444 {offsets = [0, 0, 0], sizes = [2, 8, 7], strides = [1, 1, 1]} : vector<2x8x14xf32> to vector<2x8x7xf32>
    %446 = vector.extract_strided_slice %444 {offsets = [0, 0, 7], sizes = [2, 8, 7], strides = [1, 1, 1]} : vector<2x8x14xf32> to vector<2x8x7xf32>
    %447 = vector.shape_cast %433 : vector<2x7xf32> to vector<2x1x7xf32>
    "tpu.trace_start"() <{level = 10 : i32, message = "bqd,bkd->bqk"}> : () -> ()
    %cst_167 = arith.constant dense<0.000000e+00> : vector<2x1x8xf32>
    %448 = tpu.matmul %447, %445, %cst_167 {dimension_numbers = #tpu.dot_dimension_numbers<[2], [2], [1], [1], [0, 0, 0, 1, 1, 1], [0], [0]>} : vector<2x1x7xf32>, vector<2x8x7xf32>, vector<2x1x8xf32> -> vector<2x1x8xf32>
    "tpu.trace_stop"() : () -> ()
    %cst_168 = arith.constant 0.377964467 : f32
    %449 = vector.broadcast %cst_168 : f32 to vector<2x1x8xf32>
    %450 = arith.mulf %448, %449 : vector<2x1x8xf32>
    %cst_169 = arith.constant 5.000000e-01 : f32
    %451 = vector.broadcast %cst_169 : f32 to vector<2x1x8xf32>
    %452 = arith.cmpf ogt, %4, %451 : vector<2x1x8xf32>
    %cst_170 = arith.constant -1.000000e+30 : f32
    %453 = vector.broadcast %cst_170 : f32 to vector<2x1x8xf32>
    %454 = arith.select %452, %453, %450 : vector<2x1x8xi1>, vector<2x1x8xf32>
    %cst_171 = arith.constant dense<0xFF800000> : vector<2x1xf32>
    %455 = vector.multi_reduction <maximumf>, %454, %cst_171 [2] : vector<2x1x8xf32> to vector<2x1xf32>
    %456 = vector.shape_cast %455 : vector<2x1xf32> to vector<2x1x1xf32>
    %457 = vector.broadcast %456 : vector<2x1x1xf32> to vector<2x1x8xf32>
    %458 = arith.subf %454, %457 : vector<2x1x8xf32>
    %459 = math.exp %458 : vector<2x1x8xf32>
    %cst_172 = arith.constant dense<0.000000e+00> : vector<2x1xf32>
    %460 = vector.multi_reduction <add>, %459, %cst_172 [2] : vector<2x1x8xf32> to vector<2x1xf32>
    %461 = vector.shape_cast %460 : vector<2x1xf32> to vector<2x1x1xf32>
    %462 = vector.broadcast %461 : vector<2x1x1xf32> to vector<2x1x8xf32>
    %463 = arith.divf %459, %462 : vector<2x1x8xf32>
    "tpu.trace_start"() <{level = 10 : i32, message = "bqk,bkd->bqd"}> : () -> ()
    %cst_173 = arith.constant dense<0.000000e+00> : vector<2x1x7xf32>
    %464 = tpu.matmul %463, %446, %cst_173 {dimension_numbers = #tpu.dot_dimension_numbers<[2], [1], [1], [2], [0, 0, 0, 1, 1, 2], [0], [0]>} : vector<2x1x8xf32>, vector<2x8x7xf32>, vector<2x1x7xf32> -> vector<2x1x7xf32>
    "tpu.trace_stop"() : () -> ()
    %465 = vector.shape_cast %464 : vector<2x1x7xf32> to vector<2x7xf32>
    %c856 = arith.constant 856 : index
    %c0_174 = arith.constant 0 : index
    %466 = vector.load %arg5[%c856, %c0_174] : memref<1600x256xf32, #tpu.memory_space<vmem>>, vector<7x7xf32>
    %cst_175 = arith.constant dense<0.000000e+00> : vector<2x7xf32>
    %467 = tpu.matmul %465, %466, %cst_175 {dimension_numbers = #tpu.dot_dimension_numbers<[1], [0], [0], [1], [0, 0, 1, 1], [], []>} : vector<2x7xf32>, vector<7x7xf32>, vector<2x7xf32> -> vector<2x7xf32>
    %c864 = arith.constant 864 : index
    %c0_176 = arith.constant 0 : index
    %468 = vector.load %arg5[%c864, %c0_176] : memref<1600x256xf32, #tpu.memory_space<vmem>>, vector<1x7xf32>
    %469 = vector.broadcast %468 : vector<1x7xf32> to vector<2x7xf32>
    %470 = arith.addf %467, %469 : vector<2x7xf32>
    %471 = arith.addf %432, %470 : vector<2x7xf32>
    %c872 = arith.constant 872 : index
    %c0_177 = arith.constant 0 : index
    %472 = vector.load %arg5[%c872, %c0_177] : memref<1600x256xf32, #tpu.memory_space<vmem>>, vector<1x7xf32>
    %c880 = arith.constant 880 : index
    %c0_178 = arith.constant 0 : index
    %473 = vector.load %arg5[%c880, %c0_178] : memref<1600x256xf32, #tpu.memory_space<vmem>>, vector<1x7xf32>
    %cst_179 = arith.constant dense<0.000000e+00> : vector<2xf32>
    %474 = vector.multi_reduction <add>, %471, %cst_179 [1] : vector<2x7xf32> to vector<2xf32>
    %475 = vector.shape_cast %474 : vector<2xf32> to vector<2x1xf32>
    %cst_180 = arith.constant 7.000000e+00 : f32
    %476 = vector.broadcast %cst_180 : f32 to vector<2x1xf32>
    %477 = arith.divf %475, %476 : vector<2x1xf32>
    %478 = vector.broadcast %477 : vector<2x1xf32> to vector<2x7xf32>
    %479 = arith.subf %471, %478 : vector<2x7xf32>
    %480 = arith.mulf %479, %479 : vector<2x7xf32>
    %cst_181 = arith.constant dense<0.000000e+00> : vector<2xf32>
    %481 = vector.multi_reduction <add>, %480, %cst_181 [1] : vector<2x7xf32> to vector<2xf32>
    %482 = vector.shape_cast %481 : vector<2xf32> to vector<2x1xf32>
    %cst_182 = arith.constant 7.000000e+00 : f32
    %483 = vector.broadcast %cst_182 : f32 to vector<2x1xf32>
    %484 = arith.divf %482, %483 : vector<2x1xf32>
    %cst_183 = arith.constant 9.99999974E-6 : f32
    %485 = vector.broadcast %cst_183 : f32 to vector<2x1xf32>
    %486 = arith.addf %484, %485 : vector<2x1xf32>
    %487 = math.rsqrt %486 : vector<2x1xf32>
    %488 = vector.broadcast %487 : vector<2x1xf32> to vector<2x7xf32>
    %489 = arith.mulf %479, %488 : vector<2x7xf32>
    %490 = vector.broadcast %472 : vector<1x7xf32> to vector<2x7xf32>
    %491 = arith.mulf %489, %490 : vector<2x7xf32>
    %492 = vector.broadcast %473 : vector<1x7xf32> to vector<2x7xf32>
    %493 = arith.addf %491, %492 : vector<2x7xf32>
    %c888 = arith.constant 888 : index
    %c0_184 = arith.constant 0 : index
    %494 = vector.load %arg5[%c888, %c0_184] : memref<1600x256xf32, #tpu.memory_space<vmem>>, vector<7x28xf32>
    %cst_185 = arith.constant dense<0.000000e+00> : vector<2x28xf32>
    %495 = tpu.matmul %493, %494, %cst_185 {dimension_numbers = #tpu.dot_dimension_numbers<[1], [0], [0], [1], [0, 0, 1, 1], [], []>} : vector<2x7xf32>, vector<7x28xf32>, vector<2x28xf32> -> vector<2x28xf32>
    %c896 = arith.constant 896 : index
    %c0_186 = arith.constant 0 : index
    %496 = vector.load %arg5[%c896, %c0_186] : memref<1600x256xf32, #tpu.memory_space<vmem>>, vector<1x28xf32>
    %497 = vector.broadcast %496 : vector<1x28xf32> to vector<2x28xf32>
    %498 = arith.addf %495, %497 : vector<2x28xf32>
    %499 = arith.negf %498 : vector<2x28xf32>
    %500 = math.exp %499 : vector<2x28xf32>
    %cst_187 = arith.constant 1.000000e+00 : f32
    %501 = vector.broadcast %cst_187 : f32 to vector<2x28xf32>
    %502 = arith.addf %501, %500 : vector<2x28xf32>
    %503 = arith.divf %501, %502 : vector<2x28xf32>
    %504 = arith.mulf %498, %503 : vector<2x28xf32>
    %c904 = arith.constant 904 : index
    %c0_188 = arith.constant 0 : index
    %505 = vector.load %arg5[%c904, %c0_188] : memref<1600x256xf32, #tpu.memory_space<vmem>>, vector<28x7xf32>
    %cst_189 = arith.constant dense<0.000000e+00> : vector<2x7xf32>
    %506 = tpu.matmul %504, %505, %cst_189 {dimension_numbers = #tpu.dot_dimension_numbers<[1], [0], [0], [1], [0, 0, 1, 1], [], []>} : vector<2x28xf32>, vector<28x7xf32>, vector<2x7xf32> -> vector<2x7xf32>
    %c936 = arith.constant 936 : index
    %c0_190 = arith.constant 0 : index
    %507 = vector.load %arg5[%c936, %c0_190] : memref<1600x256xf32, #tpu.memory_space<vmem>>, vector<1x7xf32>
    %508 = vector.broadcast %507 : vector<1x7xf32> to vector<2x7xf32>
    %509 = arith.addf %506, %508 : vector<2x7xf32>
    %510 = arith.addf %471, %509 : vector<2x7xf32>
    %c768 = arith.constant 768 : index
    %c0_191 = arith.constant 0 : index
    %511 = vector.load %arg5[%c768, %c0_191] : memref<1600x256xf32, #tpu.memory_space<vmem>>, vector<1x7xf32>
    %c776 = arith.constant 776 : index
    %c0_192 = arith.constant 0 : index
    %512 = vector.load %arg5[%c776, %c0_192] : memref<1600x256xf32, #tpu.memory_space<vmem>>, vector<1x7xf32>
    %cst_193 = arith.constant dense<0.000000e+00> : vector<2xf32>
    %513 = vector.multi_reduction <add>, %510, %cst_193 [1] : vector<2x7xf32> to vector<2xf32>
    %514 = vector.shape_cast %513 : vector<2xf32> to vector<2x1xf32>
    %cst_194 = arith.constant 7.000000e+00 : f32
    %515 = vector.broadcast %cst_194 : f32 to vector<2x1xf32>
    %516 = arith.divf %514, %515 : vector<2x1xf32>
    %517 = vector.broadcast %516 : vector<2x1xf32> to vector<2x7xf32>
    %518 = arith.subf %510, %517 : vector<2x7xf32>
    %519 = arith.mulf %518, %518 : vector<2x7xf32>
    %cst_195 = arith.constant dense<0.000000e+00> : vector<2xf32>
    %520 = vector.multi_reduction <add>, %519, %cst_195 [1] : vector<2x7xf32> to vector<2xf32>
    %521 = vector.shape_cast %520 : vector<2xf32> to vector<2x1xf32>
    %cst_196 = arith.constant 7.000000e+00 : f32
    %522 = vector.broadcast %cst_196 : f32 to vector<2x1xf32>
    %523 = arith.divf %521, %522 : vector<2x1xf32>
    %cst_197 = arith.constant 9.99999974E-6 : f32
    %524 = vector.broadcast %cst_197 : f32 to vector<2x1xf32>
    %525 = arith.addf %523, %524 : vector<2x1xf32>
    %526 = math.rsqrt %525 : vector<2x1xf32>
    %527 = vector.broadcast %526 : vector<2x1xf32> to vector<2x7xf32>
    %528 = arith.mulf %518, %527 : vector<2x7xf32>
    %529 = vector.broadcast %511 : vector<1x7xf32> to vector<2x7xf32>
    %530 = arith.mulf %528, %529 : vector<2x7xf32>
    %531 = vector.broadcast %512 : vector<1x7xf32> to vector<2x7xf32>
    %532 = arith.addf %530, %531 : vector<2x7xf32>
    %c944 = arith.constant 944 : index
    %c0_198 = arith.constant 0 : index
    %533 = vector.load %arg5[%c944, %c0_198] : memref<1600x256xf32, #tpu.memory_space<vmem>>, vector<40x80xf32>
    %cst_199 = arith.constant dense<0.000000e+00> : vector<16x80xf32>
    %534 = tpu.matmul %426, %533, %cst_199 {dimension_numbers = #tpu.dot_dimension_numbers<[1], [0], [0], [1], [0, 0, 1, 1], [], []>} : vector<16x40xf32>, vector<40x80xf32>, vector<16x80xf32> -> vector<16x80xf32>
    %c984 = arith.constant 984 : index
    %c0_200 = arith.constant 0 : index
    %535 = vector.load %arg5[%c984, %c0_200] : memref<1600x256xf32, #tpu.memory_space<vmem>>, vector<1x80xf32>
    %536 = vector.broadcast %535 : vector<1x80xf32> to vector<16x80xf32>
    %537 = arith.addf %534, %536 : vector<16x80xf32>
    %538 = vector.extract_strided_slice %537 {offsets = [0, 0], sizes = [16, 40], strides = [1, 1]} : vector<16x80xf32> to vector<16x40xf32>
    %539 = vector.extract_strided_slice %537 {offsets = [0, 40], sizes = [16, 40], strides = [1, 1]} : vector<16x80xf32> to vector<16x40xf32>
    %c992 = arith.constant 992 : index
    %c0_201 = arith.constant 0 : index
    %540 = vector.load %arg5[%c992, %c0_201] : memref<1600x256xf32, #tpu.memory_space<vmem>>, vector<40x80xf32>
    %cst_202 = arith.constant dense<0.000000e+00> : vector<16x80xf32>
    %541 = tpu.matmul %426, %540, %cst_202 {dimension_numbers = #tpu.dot_dimension_numbers<[1], [0], [0], [1], [0, 0, 1, 1], [], []>} : vector<16x40xf32>, vector<40x80xf32>, vector<16x80xf32> -> vector<16x80xf32>
    %c1032 = arith.constant 1032 : index
    %c0_203 = arith.constant 0 : index
    %542 = vector.load %arg5[%c1032, %c0_203] : memref<1600x256xf32, #tpu.memory_space<vmem>>, vector<7x80xf32>
    %cst_204 = arith.constant dense<0.000000e+00> : vector<2x80xf32>
    %543 = tpu.matmul %532, %542, %cst_204 {dimension_numbers = #tpu.dot_dimension_numbers<[1], [0], [0], [1], [0, 0, 1, 1], [], []>} : vector<2x7xf32>, vector<7x80xf32>, vector<2x80xf32> -> vector<2x80xf32>
    %c1040 = arith.constant 1040 : index
    %c0_205 = arith.constant 0 : index
    %544 = vector.load %arg5[%c1040, %c0_205] : memref<1600x256xf32, #tpu.memory_space<vmem>>, vector<1x80xf32>
    %545 = vector.broadcast %544 : vector<1x80xf32> to vector<2x80xf32>
    %546 = arith.addf %543, %545 : vector<2x80xf32>
    %547 = vector.shape_cast %541 : vector<16x80xf32> to vector<2x8x80xf32>
    %548 = vector.shape_cast %546 : vector<2x80xf32> to vector<2x1x80xf32>
    %549 = vector.broadcast %548 : vector<2x1x80xf32> to vector<2x8x80xf32>
    %550 = arith.addf %547, %549 : vector<2x8x80xf32>
    %551 = vector.extract_strided_slice %550 {offsets = [0, 0, 0], sizes = [2, 8, 40], strides = [1, 1, 1]} : vector<2x8x80xf32> to vector<2x8x40xf32>
    %552 = vector.extract_strided_slice %550 {offsets = [0, 0, 40], sizes = [2, 8, 40], strides = [1, 1, 1]} : vector<2x8x80xf32> to vector<2x8x40xf32>
    %553 = vector.shape_cast %539 : vector<16x40xf32> to vector<2x8x40xf32>
    "tpu.trace_start"() <{level = 10 : i32, message = "bqd,bkd->bqk"}> : () -> ()
    %cst_206 = arith.constant dense<0.000000e+00> : vector<2x8x8xf32>
    %554 = tpu.matmul %553, %551, %cst_206 {dimension_numbers = #tpu.dot_dimension_numbers<[2], [2], [1], [1], [0, 0, 0, 1, 1, 1], [0], [0]>} : vector<2x8x40xf32>, vector<2x8x40xf32>, vector<2x8x8xf32> -> vector<2x8x8xf32>
    "tpu.trace_stop"() : () -> ()
    %cst_207 = arith.constant 0.158113882 : f32
    %555 = vector.broadcast %cst_207 : f32 to vector<2x8x8xf32>
    %556 = arith.mulf %554, %555 : vector<2x8x8xf32>
    %cst_208 = arith.constant 5.000000e-01 : f32
    %557 = vector.broadcast %cst_208 : f32 to vector<2x1x8xf32>
    %558 = arith.cmpf ogt, %4, %557 : vector<2x1x8xf32>
    %cst_209 = arith.constant -1.000000e+30 : f32
    %559 = vector.shape_cast %558 : vector<2x1x8xi1> to vector<2x1x8xi1>
    %560 = vector.broadcast %559 : vector<2x1x8xi1> to vector<2x8x8xi1>
    %561 = vector.broadcast %cst_209 : f32 to vector<2x8x8xf32>
    %562 = arith.select %560, %561, %556 : vector<2x8x8xi1>, vector<2x8x8xf32>
    %cst_210 = arith.constant dense<0xFF800000> : vector<2x8xf32>
    %563 = vector.multi_reduction <maximumf>, %562, %cst_210 [2] : vector<2x8x8xf32> to vector<2x8xf32>
    %564 = vector.shape_cast %563 : vector<2x8xf32> to vector<2x8x1xf32>
    %565 = vector.broadcast %564 : vector<2x8x1xf32> to vector<2x8x8xf32>
    %566 = arith.subf %562, %565 : vector<2x8x8xf32>
    %567 = math.exp %566 : vector<2x8x8xf32>
    %cst_211 = arith.constant dense<0.000000e+00> : vector<2x8xf32>
    %568 = vector.multi_reduction <add>, %567, %cst_211 [2] : vector<2x8x8xf32> to vector<2x8xf32>
    %569 = vector.shape_cast %568 : vector<2x8xf32> to vector<2x8x1xf32>
    %570 = vector.broadcast %569 : vector<2x8x1xf32> to vector<2x8x8xf32>
    %571 = arith.divf %567, %570 : vector<2x8x8xf32>
    "tpu.trace_start"() <{level = 10 : i32, message = "bqk,bkd->bqd"}> : () -> ()
    %cst_212 = arith.constant dense<0.000000e+00> : vector<2x8x40xf32>
    %572 = tpu.matmul %571, %552, %cst_212 {dimension_numbers = #tpu.dot_dimension_numbers<[2], [1], [1], [2], [0, 0, 0, 1, 1, 2], [0], [0]>} : vector<2x8x8xf32>, vector<2x8x40xf32>, vector<2x8x40xf32> -> vector<2x8x40xf32>
    "tpu.trace_stop"() : () -> ()
    %573 = vector.shape_cast %572 : vector<2x8x40xf32> to vector<16x40xf32>
    %c1048 = arith.constant 1048 : index
    %c0_213 = arith.constant 0 : index
    %574 = vector.load %arg5[%c1048, %c0_213] : memref<1600x256xf32, #tpu.memory_space<vmem>>, vector<40x40xf32>
    %cst_214 = arith.constant dense<0.000000e+00> : vector<16x40xf32>
    %575 = tpu.matmul %573, %574, %cst_214 {dimension_numbers = #tpu.dot_dimension_numbers<[1], [0], [0], [1], [0, 0, 1, 1], [], []>} : vector<16x40xf32>, vector<40x40xf32>, vector<16x40xf32> -> vector<16x40xf32>
    %c1088 = arith.constant 1088 : index
    %c0_215 = arith.constant 0 : index
    %576 = vector.load %arg5[%c1088, %c0_215] : memref<1600x256xf32, #tpu.memory_space<vmem>>, vector<1x40xf32>
    %577 = vector.broadcast %576 : vector<1x40xf32> to vector<16x40xf32>
    %578 = arith.addf %575, %577 : vector<16x40xf32>
    %579 = arith.addf %538, %578 : vector<16x40xf32>
    %c1096 = arith.constant 1096 : index
    %c0_216 = arith.constant 0 : index
    %580 = vector.load %arg5[%c1096, %c0_216] : memref<1600x256xf32, #tpu.memory_space<vmem>>, vector<1x40xf32>
    %c1104 = arith.constant 1104 : index
    %c0_217 = arith.constant 0 : index
    %581 = vector.load %arg5[%c1104, %c0_217] : memref<1600x256xf32, #tpu.memory_space<vmem>>, vector<1x40xf32>
    %cst_218 = arith.constant dense<0.000000e+00> : vector<16xf32>
    %582 = vector.multi_reduction <add>, %579, %cst_218 [1] : vector<16x40xf32> to vector<16xf32>
    %583 = vector.shape_cast %582 : vector<16xf32> to vector<16x1xf32>
    %cst_219 = arith.constant 4.000000e+01 : f32
    %584 = vector.broadcast %cst_219 : f32 to vector<16x1xf32>
    %585 = arith.divf %583, %584 : vector<16x1xf32>
    %586 = vector.broadcast %585 : vector<16x1xf32> to vector<16x40xf32>
    %587 = arith.subf %579, %586 : vector<16x40xf32>
    %588 = arith.mulf %587, %587 : vector<16x40xf32>
    %cst_220 = arith.constant dense<0.000000e+00> : vector<16xf32>
    %589 = vector.multi_reduction <add>, %588, %cst_220 [1] : vector<16x40xf32> to vector<16xf32>
    %590 = vector.shape_cast %589 : vector<16xf32> to vector<16x1xf32>
    %cst_221 = arith.constant 4.000000e+01 : f32
    %591 = vector.broadcast %cst_221 : f32 to vector<16x1xf32>
    %592 = arith.divf %590, %591 : vector<16x1xf32>
    %cst_222 = arith.constant 9.99999974E-6 : f32
    %593 = vector.broadcast %cst_222 : f32 to vector<16x1xf32>
    %594 = arith.addf %592, %593 : vector<16x1xf32>
    %595 = math.rsqrt %594 : vector<16x1xf32>
    %596 = vector.broadcast %595 : vector<16x1xf32> to vector<16x40xf32>
    %597 = arith.mulf %587, %596 : vector<16x40xf32>
    %598 = vector.broadcast %580 : vector<1x40xf32> to vector<16x40xf32>
    %599 = arith.mulf %597, %598 : vector<16x40xf32>
    %600 = vector.broadcast %581 : vector<1x40xf32> to vector<16x40xf32>
    %601 = arith.addf %599, %600 : vector<16x40xf32>
    %c1112 = arith.constant 1112 : index
    %c0_223 = arith.constant 0 : index
    %602 = vector.load %arg5[%c1112, %c0_223] : memref<1600x256xf32, #tpu.memory_space<vmem>>, vector<40x160xf32>
    %cst_224 = arith.constant dense<0.000000e+00> : vector<16x160xf32>
    %603 = tpu.matmul %601, %602, %cst_224 {dimension_numbers = #tpu.dot_dimension_numbers<[1], [0], [0], [1], [0, 0, 1, 1], [], []>} : vector<16x40xf32>, vector<40x160xf32>, vector<16x160xf32> -> vector<16x160xf32>
    %c1152 = arith.constant 1152 : index
    %c0_225 = arith.constant 0 : index
    %604 = vector.load %arg5[%c1152, %c0_225] : memref<1600x256xf32, #tpu.memory_space<vmem>>, vector<1x160xf32>
    %605 = vector.broadcast %604 : vector<1x160xf32> to vector<16x160xf32>
    %606 = arith.addf %603, %605 : vector<16x160xf32>
    %607 = arith.negf %606 : vector<16x160xf32>
    %608 = math.exp %607 : vector<16x160xf32>
    %cst_226 = arith.constant 1.000000e+00 : f32
    %609 = vector.broadcast %cst_226 : f32 to vector<16x160xf32>
    %610 = arith.addf %609, %608 : vector<16x160xf32>
    %611 = arith.divf %609, %610 : vector<16x160xf32>
    %612 = arith.mulf %606, %611 : vector<16x160xf32>
    %c1160 = arith.constant 1160 : index
    %c0_227 = arith.constant 0 : index
    %613 = vector.load %arg5[%c1160, %c0_227] : memref<1600x256xf32, #tpu.memory_space<vmem>>, vector<160x40xf32>
    %cst_228 = arith.constant dense<0.000000e+00> : vector<16x40xf32>
    %614 = tpu.matmul %612, %613, %cst_228 {dimension_numbers = #tpu.dot_dimension_numbers<[1], [0], [0], [1], [0, 0, 1, 1], [], []>} : vector<16x160xf32>, vector<160x40xf32>, vector<16x40xf32> -> vector<16x40xf32>
    %c1320 = arith.constant 1320 : index
    %c0_229 = arith.constant 0 : index
    %615 = vector.load %arg5[%c1320, %c0_229] : memref<1600x256xf32, #tpu.memory_space<vmem>>, vector<1x40xf32>
    %616 = vector.broadcast %615 : vector<1x40xf32> to vector<16x40xf32>
    %617 = arith.addf %614, %616 : vector<16x40xf32>
    %618 = arith.addf %579, %617 : vector<16x40xf32>
    %c1328 = arith.constant 1328 : index
    %c0_230 = arith.constant 0 : index
    %619 = vector.load %arg5[%c1328, %c0_230] : memref<1600x256xf32, #tpu.memory_space<vmem>>, vector<40x32xf32>
    %cst_231 = arith.constant dense<0.000000e+00> : vector<16x32xf32>
    %620 = tpu.matmul %618, %619, %cst_231 {dimension_numbers = #tpu.dot_dimension_numbers<[1], [0], [0], [1], [0, 0, 1, 1], [], []>} : vector<16x40xf32>, vector<40x32xf32>, vector<16x32xf32> -> vector<16x32xf32>
    %c1368 = arith.constant 1368 : index
    %c0_232 = arith.constant 0 : index
    %621 = vector.load %arg5[%c1368, %c0_232] : memref<1600x256xf32, #tpu.memory_space<vmem>>, vector<1x32xf32>
    %622 = vector.broadcast %621 : vector<1x32xf32> to vector<16x32xf32>
    %623 = arith.addf %620, %622 : vector<16x32xf32>
    %624 = arith.negf %623 : vector<16x32xf32>
    %625 = math.exp %624 : vector<16x32xf32>
    %cst_233 = arith.constant 1.000000e+00 : f32
    %626 = vector.broadcast %cst_233 : f32 to vector<16x32xf32>
    %627 = arith.addf %626, %625 : vector<16x32xf32>
    %628 = arith.divf %626, %627 : vector<16x32xf32>
    %629 = arith.mulf %623, %628 : vector<16x32xf32>
    %c1376 = arith.constant 1376 : index
    %c0_234 = arith.constant 0 : index
    %630 = vector.load %arg5[%c1376, %c0_234] : memref<1600x256xf32, #tpu.memory_space<vmem>>, vector<1x32xf32>
    %c1384 = arith.constant 1384 : index
    %c0_235 = arith.constant 0 : index
    %631 = vector.load %arg5[%c1384, %c0_235] : memref<1600x256xf32, #tpu.memory_space<vmem>>, vector<1x32xf32>
    %cst_236 = arith.constant dense<0.000000e+00> : vector<16xf32>
    %632 = vector.multi_reduction <add>, %629, %cst_236 [1] : vector<16x32xf32> to vector<16xf32>
    %633 = vector.shape_cast %632 : vector<16xf32> to vector<16x1xf32>
    %cst_237 = arith.constant 3.200000e+01 : f32
    %634 = vector.broadcast %cst_237 : f32 to vector<16x1xf32>
    %635 = arith.divf %633, %634 : vector<16x1xf32>
    %636 = vector.broadcast %635 : vector<16x1xf32> to vector<16x32xf32>
    %637 = arith.subf %629, %636 : vector<16x32xf32>
    %638 = arith.mulf %637, %637 : vector<16x32xf32>
    %cst_238 = arith.constant dense<0.000000e+00> : vector<16xf32>
    %639 = vector.multi_reduction <add>, %638, %cst_238 [1] : vector<16x32xf32> to vector<16xf32>
    %640 = vector.shape_cast %639 : vector<16xf32> to vector<16x1xf32>
    %cst_239 = arith.constant 3.200000e+01 : f32
    %641 = vector.broadcast %cst_239 : f32 to vector<16x1xf32>
    %642 = arith.divf %640, %641 : vector<16x1xf32>
    %cst_240 = arith.constant 9.99999974E-6 : f32
    %643 = vector.broadcast %cst_240 : f32 to vector<16x1xf32>
    %644 = arith.addf %642, %643 : vector<16x1xf32>
    %645 = math.rsqrt %644 : vector<16x1xf32>
    %646 = vector.broadcast %645 : vector<16x1xf32> to vector<16x32xf32>
    %647 = arith.mulf %637, %646 : vector<16x32xf32>
    %648 = vector.broadcast %630 : vector<1x32xf32> to vector<16x32xf32>
    %649 = arith.mulf %647, %648 : vector<16x32xf32>
    %650 = vector.broadcast %631 : vector<1x32xf32> to vector<16x32xf32>
    %651 = arith.addf %649, %650 : vector<16x32xf32>
    %c1392 = arith.constant 1392 : index
    %c0_241 = arith.constant 0 : index
    %652 = vector.load %arg5[%c1392, %c0_241] : memref<1600x256xf32, #tpu.memory_space<vmem>>, vector<32x32xf32>
    %cst_242 = arith.constant dense<0.000000e+00> : vector<16x32xf32>
    %653 = tpu.matmul %651, %652, %cst_242 {dimension_numbers = #tpu.dot_dimension_numbers<[1], [0], [0], [1], [0, 0, 1, 1], [], []>} : vector<16x32xf32>, vector<32x32xf32>, vector<16x32xf32> -> vector<16x32xf32>
    %c1424 = arith.constant 1424 : index
    %c0_243 = arith.constant 0 : index
    %654 = vector.load %arg5[%c1424, %c0_243] : memref<1600x256xf32, #tpu.memory_space<vmem>>, vector<1x32xf32>
    %655 = vector.broadcast %654 : vector<1x32xf32> to vector<16x32xf32>
    %656 = arith.addf %653, %655 : vector<16x32xf32>
    %c1432 = arith.constant 1432 : index
    %c0_244 = arith.constant 0 : index
    %657 = vector.load %arg5[%c1432, %c0_244] : memref<1600x256xf32, #tpu.memory_space<vmem>>, vector<1x32xf32>
    %c1440 = arith.constant 1440 : index
    %c0_245 = arith.constant 0 : index
    %658 = vector.load %arg5[%c1440, %c0_245] : memref<1600x256xf32, #tpu.memory_space<vmem>>, vector<1x32xf32>
    %cst_246 = arith.constant dense<0.000000e+00> : vector<16xf32>
    %659 = vector.multi_reduction <add>, %656, %cst_246 [1] : vector<16x32xf32> to vector<16xf32>
    %660 = vector.shape_cast %659 : vector<16xf32> to vector<16x1xf32>
    %cst_247 = arith.constant 3.200000e+01 : f32
    %661 = vector.broadcast %cst_247 : f32 to vector<16x1xf32>
    %662 = arith.divf %660, %661 : vector<16x1xf32>
    %663 = vector.broadcast %662 : vector<16x1xf32> to vector<16x32xf32>
    %664 = arith.subf %656, %663 : vector<16x32xf32>
    %665 = arith.mulf %664, %664 : vector<16x32xf32>
    %cst_248 = arith.constant dense<0.000000e+00> : vector<16xf32>
    %666 = vector.multi_reduction <add>, %665, %cst_248 [1] : vector<16x32xf32> to vector<16xf32>
    %667 = vector.shape_cast %666 : vector<16xf32> to vector<16x1xf32>
    %cst_249 = arith.constant 3.200000e+01 : f32
    %668 = vector.broadcast %cst_249 : f32 to vector<16x1xf32>
    %669 = arith.divf %667, %668 : vector<16x1xf32>
    %cst_250 = arith.constant 9.99999974E-6 : f32
    %670 = vector.broadcast %cst_250 : f32 to vector<16x1xf32>
    %671 = arith.addf %669, %670 : vector<16x1xf32>
    %672 = math.rsqrt %671 : vector<16x1xf32>
    %673 = vector.broadcast %672 : vector<16x1xf32> to vector<16x32xf32>
    %674 = arith.mulf %664, %673 : vector<16x32xf32>
    %675 = vector.broadcast %657 : vector<1x32xf32> to vector<16x32xf32>
    %676 = arith.mulf %674, %675 : vector<16x32xf32>
    %677 = vector.broadcast %658 : vector<1x32xf32> to vector<16x32xf32>
    %678 = arith.addf %676, %677 : vector<16x32xf32>
    %679 = arith.negf %678 : vector<16x32xf32>
    %680 = math.exp %679 : vector<16x32xf32>
    %cst_251 = arith.constant 1.000000e+00 : f32
    %681 = vector.broadcast %cst_251 : f32 to vector<16x32xf32>
    %682 = arith.addf %681, %680 : vector<16x32xf32>
    %683 = arith.divf %681, %682 : vector<16x32xf32>
    %684 = arith.mulf %678, %683 : vector<16x32xf32>
    %c1448 = arith.constant 1448 : index
    %c0_252 = arith.constant 0 : index
    %685 = vector.load %arg5[%c1448, %c0_252] : memref<1600x256xf32, #tpu.memory_space<vmem>>, vector<32x32xf32>
    %cst_253 = arith.constant dense<0.000000e+00> : vector<16x32xf32>
    %686 = tpu.matmul %684, %685, %cst_253 {dimension_numbers = #tpu.dot_dimension_numbers<[1], [0], [0], [1], [0, 0, 1, 1], [], []>} : vector<16x32xf32>, vector<32x32xf32>, vector<16x32xf32> -> vector<16x32xf32>
    %c1480 = arith.constant 1480 : index
    %c0_254 = arith.constant 0 : index
    %687 = vector.load %arg5[%c1480, %c0_254] : memref<1600x256xf32, #tpu.memory_space<vmem>>, vector<1x32xf32>
    %688 = vector.broadcast %687 : vector<1x32xf32> to vector<16x32xf32>
    %689 = arith.addf %686, %688 : vector<16x32xf32>
    %c1488 = arith.constant 1488 : index
    %c0_255 = arith.constant 0 : index
    %690 = vector.load %arg5[%c1488, %c0_255] : memref<1600x256xf32, #tpu.memory_space<vmem>>, vector<1x32xf32>
    %c1496 = arith.constant 1496 : index
    %c0_256 = arith.constant 0 : index
    %691 = vector.load %arg5[%c1496, %c0_256] : memref<1600x256xf32, #tpu.memory_space<vmem>>, vector<1x32xf32>
    %cst_257 = arith.constant dense<0.000000e+00> : vector<16xf32>
    %692 = vector.multi_reduction <add>, %689, %cst_257 [1] : vector<16x32xf32> to vector<16xf32>
    %693 = vector.shape_cast %692 : vector<16xf32> to vector<16x1xf32>
    %cst_258 = arith.constant 3.200000e+01 : f32
    %694 = vector.broadcast %cst_258 : f32 to vector<16x1xf32>
    %695 = arith.divf %693, %694 : vector<16x1xf32>
    %696 = vector.broadcast %695 : vector<16x1xf32> to vector<16x32xf32>
    %697 = arith.subf %689, %696 : vector<16x32xf32>
    %698 = arith.mulf %697, %697 : vector<16x32xf32>
    %cst_259 = arith.constant dense<0.000000e+00> : vector<16xf32>
    %699 = vector.multi_reduction <add>, %698, %cst_259 [1] : vector<16x32xf32> to vector<16xf32>
    %700 = vector.shape_cast %699 : vector<16xf32> to vector<16x1xf32>
    %cst_260 = arith.constant 3.200000e+01 : f32
    %701 = vector.broadcast %cst_260 : f32 to vector<16x1xf32>
    %702 = arith.divf %700, %701 : vector<16x1xf32>
    %cst_261 = arith.constant 9.99999974E-6 : f32
    %703 = vector.broadcast %cst_261 : f32 to vector<16x1xf32>
    %704 = arith.addf %702, %703 : vector<16x1xf32>
    %705 = math.rsqrt %704 : vector<16x1xf32>
    %706 = vector.broadcast %705 : vector<16x1xf32> to vector<16x32xf32>
    %707 = arith.mulf %697, %706 : vector<16x32xf32>
    %708 = vector.broadcast %690 : vector<1x32xf32> to vector<16x32xf32>
    %709 = arith.mulf %707, %708 : vector<16x32xf32>
    %710 = vector.broadcast %691 : vector<1x32xf32> to vector<16x32xf32>
    %711 = arith.addf %709, %710 : vector<16x32xf32>
    %712 = arith.negf %711 : vector<16x32xf32>
    %713 = math.exp %712 : vector<16x32xf32>
    %cst_262 = arith.constant 1.000000e+00 : f32
    %714 = vector.broadcast %cst_262 : f32 to vector<16x32xf32>
    %715 = arith.addf %714, %713 : vector<16x32xf32>
    %716 = arith.divf %714, %715 : vector<16x32xf32>
    %717 = arith.mulf %711, %716 : vector<16x32xf32>
    %c1504 = arith.constant 1504 : index
    %c0_263 = arith.constant 0 : index
    %718 = vector.load %arg5[%c1504, %c0_263] : memref<1600x256xf32, #tpu.memory_space<vmem>>, vector<32x128xf32>
    %cst_264 = arith.constant dense<0.000000e+00> : vector<16x128xf32>
    %719 = tpu.matmul %717, %718, %cst_264 {dimension_numbers = #tpu.dot_dimension_numbers<[1], [0], [0], [1], [0, 0, 1, 1], [], []>} : vector<16x32xf32>, vector<32x128xf32>, vector<16x128xf32> -> vector<16x128xf32>
    %c1536 = arith.constant 1536 : index
    %c0_265 = arith.constant 0 : index
    %720 = vector.load %arg5[%c1536, %c0_265] : memref<1600x256xf32, #tpu.memory_space<vmem>>, vector<1x128xf32>
    %721 = vector.broadcast %720 : vector<1x128xf32> to vector<16x128xf32>
    %722 = arith.addf %719, %721 : vector<16x128xf32>
    %723 = vector.shape_cast %722 : vector<16x128xf32> to vector<2x8x128xf32>
    %c0_266 = arith.constant 0 : index
    %c0_267 = arith.constant 0 : index
    %c0_268 = arith.constant 0 : index
    %724 = vector.load %arg6[%c0_266, %c0_267, %c0_268] : memref<2x8x128xf32, #tpu.memory_space<vmem>>, vector<2x8x128xf32>
    tpu.vector_store %arg6[%c0_266, %c0_267, %c0_268], %723 {strides = array<i32>} : memref<2x8x128xf32, #tpu.memory_space<vmem>>, vector<2x8x128xf32>,
    %c1544 = arith.constant 1544 : index
    %c0_269 = arith.constant 0 : index
    %725 = vector.load %arg5[%c1544, %c0_269] : memref<1600x256xf32, #tpu.memory_space<vmem>>, vector<7x32xf32>
    %cst_270 = arith.constant dense<0.000000e+00> : vector<2x32xf32>
    %726 = tpu.matmul %532, %725, %cst_270 {dimension_numbers = #tpu.dot_dimension_numbers<[1], [0], [0], [1], [0, 0, 1, 1], [], []>} : vector<2x7xf32>, vector<7x32xf32>, vector<2x32xf32> -> vector<2x32xf32>
    %c1552 = arith.constant 1552 : index
    %c0_271 = arith.constant 0 : index
    %727 = vector.load %arg5[%c1552, %c0_271] : memref<1600x256xf32, #tpu.memory_space<vmem>>, vector<1x32xf32>
    %728 = vector.broadcast %727 : vector<1x32xf32> to vector<2x32xf32>
    %729 = arith.addf %726, %728 : vector<2x32xf32>
    %730 = arith.negf %729 : vector<2x32xf32>
    %731 = math.exp %730 : vector<2x32xf32>
    %cst_272 = arith.constant 1.000000e+00 : f32
    %732 = vector.broadcast %cst_272 : f32 to vector<2x32xf32>
    %733 = arith.addf %732, %731 : vector<2x32xf32>
    %734 = arith.divf %732, %733 : vector<2x32xf32>
    %735 = arith.mulf %729, %734 : vector<2x32xf32>
    %c1560 = arith.constant 1560 : index
    %c0_273 = arith.constant 0 : index
    %736 = vector.load %arg5[%c1560, %c0_273] : memref<1600x256xf32, #tpu.memory_space<vmem>>, vector<32x128xf32>
    %cst_274 = arith.constant dense<0.000000e+00> : vector<2x128xf32>
    %737 = tpu.matmul %735, %736, %cst_274 {dimension_numbers = #tpu.dot_dimension_numbers<[1], [0], [0], [1], [0, 0, 1, 1], [], []>} : vector<2x32xf32>, vector<32x128xf32>, vector<2x128xf32> -> vector<2x128xf32>
    %c1592 = arith.constant 1592 : index
    %c0_275 = arith.constant 0 : index
    %738 = vector.load %arg5[%c1592, %c0_275] : memref<1600x256xf32, #tpu.memory_space<vmem>>, vector<1x128xf32>
    %739 = vector.broadcast %738 : vector<1x128xf32> to vector<2x128xf32>
    %740 = arith.addf %737, %739 : vector<2x128xf32>
    %741 = vector.shape_cast %740 : vector<2x128xf32> to vector<2x1x128xf32>
    %c0_276 = arith.constant 0 : index
    %c0_277 = arith.constant 0 : index
    %c0_278 = arith.constant 0 : index
    %742 = vector.load %arg7[%c0_276, %c0_277, %c0_278] : memref<2x1x128xf32, #tpu.memory_space<vmem>>, vector<2x1x128xf32>
    tpu.vector_store %arg7[%c0_276, %c0_277, %c0_278], %741 {strides = array<i32>} : memref<2x1x128xf32, #tpu.memory_space<vmem>>, vector<2x1x128xf32>,
    return
  }
  func.func @transform_0(%arg0: i32) -> (i32, i32, i32) {
    %c0_i32 = arith.constant 0 : i32
    %c0_i32_0 = arith.constant 0 : i32
    %c0_i32_1 = arith.constant 0 : i32
    return %arg0, %c0_i32, %c0_i32_0 : i32, i32, i32
  }
  func.func @transform_1(%arg0: i32) -> (i32, i32, i32) {
    %c0_i32 = arith.constant 0 : i32
    %c0_i32_0 = arith.constant 0 : i32
    %c0_i32_1 = arith.constant 0 : i32
    return %arg0, %c0_i32, %c0_i32_0 : i32, i32, i32
  }
  func.func @transform_2(%arg0: i32) -> (i32, i32, i32) {
    %c0_i32 = arith.constant 0 : i32
    %c0_i32_0 = arith.constant 0 : i32
    %c0_i32_1 = arith.constant 0 : i32
    return %arg0, %c0_i32, %c0_i32_0 : i32, i32, i32
  }
  func.func @transform_3(%arg0: i32) -> (i32, i32, i32) {
    %c0_i32 = arith.constant 0 : i32
    %c0_i32_0 = arith.constant 0 : i32
    %c0_i32_1 = arith.constant 0 : i32
    return %arg0, %c0_i32, %c0_i32_0 : i32, i32, i32
  }
  func.func @transform_4(%arg0: i32) -> (i32, i32) {
    %c0_i32 = arith.constant 0 : i32
    %c0_i32_0 = arith.constant 0 : i32
    %c0_i32_1 = arith.constant 0 : i32
    return %c0_i32, %c0_i32_0 : i32, i32
  }
  func.func @transform_5(%arg0: i32) -> (i32, i32, i32) {
    %c0_i32 = arith.constant 0 : i32
    %c0_i32_0 = arith.constant 0 : i32
    %c0_i32_1 = arith.constant 0 : i32
    return %arg0, %c0_i32, %c0_i32_0 : i32, i32, i32
  }
  func.func @transform_6(%arg0: i32) -> (i32, i32, i32) {
    %c0_i32 = arith.constant 0 : i32
    %c0_i32_0 = arith.constant 0 : i32
    %c0_i32_1 = arith.constant 0 : i32
    return %arg0, %c0_i32, %c0_i32_0 : i32, i32, i32
  }
}

</mosaic_0001>

<bundles_post_ra>
// kernel: custom-call
= control target key start
LH: loop header
LB: loop body
LE: loop exit
PB: predicated region body
PF: predicated region fallthrough
CT: control target
= control target key end

     0   :  { %s6_s0 = inlined_call_operand.vmem [shape: u32[8], index: 0, kind: output, shape index: {}]  }

// kernel: _fwd.1
= control target key start
LH: loop header
LB: loop body
LE: loop exit
PB: predicated region body
PF: predicated region fallthrough
CT: control target
= control target key end

     0   :  { %12 = vsyncpa [#allocation3], 0  ;;  %s5625_s0 = inlined_call_operand.vmem [shape: f32[2,8,3], index: 0, kind: input, shape index: {}]   ;;  %s5626_s1 = inlined_call_operand.vmem [shape: f32[2,8,16], index: 1, kind: input, shape index: {}]   ;;  %s5627_s2 = inlined_call_operand.vmem [shape: f32[2,1,8], index: 2, kind: input, shape index: {}]   ;;  %s5628_s3 = inlined_call_operand.vmem [shape: f32[2,1,8], index: 3, kind: input, shape index: {}]   ;;  %s5629_s4 = inlined_call_operand.hbm [shape: f32[1600,256], index: 4, kind: input, shape index: {}]   ;;  %s5630_s5 = inlined_call_operand.vmem [shape: f32[2,8,128], index: 5, kind: output, shape index: {0}]   ;;  %s5631_s6 = inlined_call_operand.hbm [shape: f32[2,1,128], index: 6, kind: output, shape index: {1}]  }
   0x1   :  { %13 = vsyncpa [#allocation4], 0  ;;  %s26_s23 = sshll.u32 %s5629_s4, 4  ;;  %s4825_s24 = smov [#allocation2]   ;;  %s27_s23 = int_to_ptr.hbm [resolvable:$true] %s26_s23 }
   0x2   :  { %s28_s25 = sshll.u32 %s4825_s24, 4  ;;  %s4826_s26 = smov 256   ;;  %s29_s25 = int_to_ptr.vmem [resolvable:$true] %s28_s25 }
   0x3   :  { %s4827_s27 = smov 16  }
   0x4   :  { %34 = dma.hbm_to_vmem [thread:$0]  %s27_s23, 51200, %s29_s25, [#allocation3], %s4826_s26, %s4826_s26, %s4827_s27  }
   0x5   :  { %4821 = dma.done.wait [#allocation3], 51200  }
   0x6   :  { %4822 = vsyncadd [#allocation3], 4294916096  ;;  %vm49_vm0 = vcmask 130048   ;;  %vm196_vm1 = vcmask 1042432   ;;  %v41_v0 = vld [vmem:[%s5626_s1] sm:$0xff]  ;;  %vm189_vm2 = vcmask 23552  }
   0x7   :  { %v4900_v1 = vld [vmem:[%s5628_s3] sm:$0x1]  ;;  %v4905_v2 = vld [vmem:[%s5628_s3 + $0x1] sm:$0x1]  ;;  %v50_v3 = vsel %vm49_vm0, %v41_v0, 0.0  ;;  %vm114_vm3 = vcmask 41984  }
   0x8   :  { %109 = vst [vmem:[#allocation1] ss:$9 sm:$0xff] %v4900_v1  ;;  %v188_v4 = vld [vmem:[#allocation2 + $0x40] sm:$0x7]  ;;  %v39_v5 = vld [vmem:[%s5625_s0] sm:$0xff]  ;;  %51 = vadd.xlane.f32.xlu1 %v50_v3  ;;  %v4828_v8 = vmov 16.0  }
   0x9   :  { %111 = vst [vmem:[#allocation1 + $0x1] ss:$9 sm:$0xff] %v4905_v2  ;;  %4383 = vmatpush.msk.msra.mxu0 %vm196_vm1, %v188_v4  ;;  %4548 = vmatpush.msk.msra.mxu3 %vm196_vm1, %v188_v4  ;;  %4589 = vrcp.f32 %v4828_v8  ;;  %v4829_v11 = vmov 6.0   ;;  %v4830_v47 = vmov 683565275   ;;  %s4838_s13 = smov 118  }
   0xa   :  { %4384 = vmatmul.msk.f32.vlgmr.msra.gmra.mxu0 %vm189_vm2, %v39_v5  ;;  %4591 = vrcp.f32 %v4829_v11  ;;  %v4831_v49 = vmov 2475754826   ;;  %v4832_v52 = vmov 2131351028   ;;  %v4833_v54 = vmov 2102212464  }
   0xb   :  { %v4834_v56 = vmov 920167782   ;;  %v4835_v63 = vmov 1326507024   ;;  %s4839_s14 = smov 78   ;;  %s4840_s15 = smov 88  }
   0xc   :  { %s4841_s16 = smov 38   ;;  %s4842_s19 = smov 48  }
   0xd   :  { %s4844_s22 = smov 68   ;;  %s4845_s23 = smov 28  }
   0xe   :  { %s4846_s24 = smov 98   ;;  %s4847_s25 = smov 58  }
   0xf   :  { %v4590_v9 = vpop.eup %4589  ;;  %s4848_s26 = smov 18   ;;  %s4849_s28 = smov 121  }
  0x10   :  { %v112_v6 = vld [vmem:[#allocation1] sm:$0xff]  ;;  %v57_v10 = vmul.f32 16.0, %v4590_v9  ;;  %v4592_v13 = vpop.eup %4591  ;;  %vm61_vm4 = vweird.f32 %v4590_v9  ;;  %s4368_s7 = sshll.u32 %s5631_s6, 4  ;;  %s4853_s4 = smov [#allocation5]   ;;  %s4369_s7 = int_to_ptr.hbm [resolvable:$true] %s4368_s7 }
  0x11   :  { %v115_v7 = vsel %vm114_vm3, %v112_v6, 0.0  ;;  %v119_v15 = vmul.f32 6.0, %v4592_v13  ;;  %vm123_vm5 = vweird.f32 %v4592_v13  ;;  %s4366_s8 = sshll.u32 %s4853_s4, 4  ;;  %s4854_s9 = smov 1   ;;  %s4367_s8 = int_to_ptr.vmem [resolvable:$true] %s4366_s8 }
  0x12   :  { %116 = vadd.xlane.f32.xlu0 %v115_v7  ;;  %v58_v12 = vsub.f32 1.0, %v57_v10 }
  0x13   :  { %v120_v17 = vsub.f32 1.0, %v119_v15 }
  0x14   :  { %v59_v14 = vmul.f32 %v4590_v9, %v58_v12 }
  0x15   :  { %v121_v19 = vmul.f32 %v4592_v13, %v120_v17 }
  0x16   :  { %v60_v16 = vadd.f32 %v4590_v9, %v59_v14 }
  0x17   :  { %v122_v23 = vadd.f32 %v4592_v13, %v121_v19 }
  0x18   :  { %v4915_v18 = vsel %vm61_vm4, %v4590_v9, %v60_v16 }
  0x19   :  { %v4922_v25 = vsel %vm123_vm5, %v4592_v13, %v122_v23 }
  0x7b   :  { %v52_v20 = vpop.xlane.xlu1 %51 }
  0x7c   :  { %v63_v21 = vmul.f32 %v4915_v18, %v52_v20 }
  0x7e   :  { %v4918_v22 = vsub.f32 %v41_v0, %v63_v21 }
  0x80   :  { %v67_v24 = vmul.f32 %v4918_v22, %v4918_v22 }
  0x82   :  { %v69_v26 = vsel %vm49_vm0, %v67_v24, 0.0 }
  0x83   :  { %70 = vadd.xlane.f32.xlu1 %v69_v26 }
  0x85   :  { %v117_v27 = vpop.xlane.xlu0 %116 }
  0x86   :  { %v125_v28 = vmul.f32 %v4922_v25, %v117_v27 }
  0x87   :  { %v4926_v29 = vpop.f32.mrf.mxu0 }
  0x88   :  { %v127_v30 = vperm.slane %v125_v28, 0  ;;  %v128_v31 = vperm.slane %v125_v28, 1  ;;  %v226_v32 = vand.u32 2139095040, %v4926_v29  ;;  %v223_v38 = vand.u32 2147483647, %v4926_v29 }
  0x89   :  { %vm225_vm4 = vcmp.lt.s32.totalorder %v4926_v29, 0 }
  0x8a   :  { %v4930_v33 = vsub.f32 %v4900_v1, %v127_v30  ;;  %v4933_v34 = vsub.f32 %v4905_v2, %v128_v31  ;;  %v227_v35 = vshrl.u32 %v226_v32, 23  ;;  %v230_v41 = vand.u32 8388607, %v223_v38 }
  0x8b   :  { %vm4996_vm5 = vcmp.le.f32.partialorder %v223_v38, 0.7853982 }
  0x8c   :  { %v133_v36 = vmul.f32 %v4930_v33, %v4930_v33  ;;  %v134_v37 = vmul.f32 %v4933_v34, %v4933_v34  ;;  %v4386_v39 = vadd.s32 4294967169, %v227_v35  ;;  %v231_v45 = vor.u32 8388608, %v230_v41 }
  0x8e   :  { %137 = vst [vmem:[#allocation1] ss:$9 sm:$0xff] %v133_v36  ;;  %v233_v40 = vadd.s32 1, %v4386_v39  ;;  %v4957_v5 = vshll.u32 %v231_v45, 8 }
  0x8f   :  { %139 = vst [vmem:[#allocation1 + $0x1] ss:$9 sm:$0xff] %v134_v37 }
  0x90   :  { %vm234_vm6 = vcmp.gt.s32.totalorder %v233_v40, 0  ;;  %v272_v15 = vand.u32 65535, %v4957_v5  ;;  %v273_v16 = vshrl.u32 %v4957_v5, 16 }
  0x91   :  { %v235_v42 = vsel %vm234_vm6, %v233_v40, 0  ;;  %vm5632_vm6 = vcmask 1043456  }
  0x92   :  { %v237_v43 = vand.u32 31, %v235_v42  ;;  %v4942_v44 = vshrl.u32 %v235_v42, 5 }
  0x94   :  { %v238_v46 = vsub.s32 32, %v237_v43  ;;  %v240_v48 = vshll.u32 %v4830_v47, %v237_v43  ;;  %v243_v50 = vshll.u32 %v4831_v49, %v237_v43  ;;  %v246_v53 = vshll.u32 %v4832_v52, %v237_v43 }
  0x95   :  { %v249_v55 = vshll.u32 %v4833_v54, %v237_v43  ;;  %v252_v57 = vshll.u32 %v4834_v56, %v237_v43  ;;  %vm255_vm7 = vcmp.lt.s32.totalorder %v4942_v44, 1  ;;  %vm258_vm8 = vcmp.lt.s32.totalorder %v4942_v44, 4 }
  0x96   :  { %v140_v51 = vld [vmem:[#allocation1] sm:$0xff]  ;;  %v241_v59 = vshrl.u32 %v4831_v49, %v238_v46  ;;  %v244_v60 = vshrl.u32 %v4832_v52, %v238_v46  ;;  %v247_v61 = vshrl.u32 %v4833_v54, %v238_v46  ;;  %v250_v62 = vshrl.u32 %v4834_v56, %v238_v46 }
  0x97   :  { %v142_v58 = vsel %vm114_vm3, %v140_v51, 0.0  ;;  %v253_v0 = vshrl.u32 %v4835_v63, %v238_v46  ;;  %vm257_vm9 = vcmp.lt.s32.totalorder %v4942_v44, 3  ;;  %vm256_vm10 = vcmp.lt.s32.totalorder %v4942_v44, 2 }
  0x98   :  { %143 = vadd.xlane.f32.xlu0 %v142_v58  ;;  %v242_v3 = vor.u32 %v241_v59, %v240_v48  ;;  %v245_v4 = vor.u32 %v244_v60, %v243_v50  ;;  %v248_v6 = vor.u32 %v247_v61, %v246_v53  ;;  %v251_v7 = vor.u32 %v250_v62, %v249_v55 }
  0x99   :  { %v254_v8 = vor.u32 %v253_v0, %v252_v57  ;;  %v239_v26 = vshrl.u32 %v4830_v47, %v238_v46  ;;  %v4836_v48 = vmov 0  }
  0x9a   :  { %v263_v9 = vsel %vm255_vm7, %v242_v3, %v245_v4  ;;  %v264_v10 = vsel %vm258_vm8, %v251_v7, 920167782  ;;  %v267_v11 = vsel %vm255_vm7, %v245_v4, %v248_v6  ;;  %v260_v46 = vsel %vm258_vm8, %v248_v6, 2102212464 }
  0x9b   :  { %v268_v12 = vsel %vm258_vm8, %v254_v8, 1326507024  ;;  %v265_v13 = vsel %vm257_vm9, %v248_v6, %v264_v10  ;;  %v259_v43 = vsel %vm255_vm7, %v239_v26, %v242_v3  ;;  %v261_v61 = vsel %vm257_vm9, %v245_v4, %v260_v46 }
  0x9c   :  { %v269_v14 = vsel %vm257_vm9, %v251_v7, %v268_v12  ;;  %v266_v17 = vsel %vm256_vm10, %v263_v9, %v265_v13  ;;  %v262_v10 = vsel %vm256_vm10, %v259_v43, %v261_v61 }
  0x9d   :  { %v270_v19 = vsel %vm256_vm10, %v267_v11, %v269_v14  ;;  %v296_v23 = vand.u32 65535, %v266_v17  ;;  %v297_v24 = vshrl.u32 %v266_v17, 16  ;;  %v316_v14 = vmul.u32 %v4957_v5, %v262_v10 }
  0x9e   :  { %v274_v20 = vand.u32 65535, %v270_v19  ;;  %v275_v21 = vshrl.u32 %v270_v19, 16  ;;  %vm845_vm10 = vcmask 97280  }
  0x9f   :  { %v298_v31 = vmul.u32 %v296_v23, %v272_v15  ;;  %v299_v32 = vmul.u32 %v297_v24, %v272_v15  ;;  %v300_v35 = vmul.u32 %v296_v23, %v273_v16  ;;  %v301_v40 = vmul.u32 %v297_v24, %v273_v16 }
  0xa0   :  { %v276_v27 = vmul.u32 %v274_v20, %v272_v15  ;;  %v277_v28 = vmul.u32 %v275_v21, %v272_v15  ;;  %v278_v30 = vmul.u32 %v274_v20, %v273_v16  ;;  %v279_v36 = vmul.u32 %v275_v21, %v273_v16 }
  0xa1   :  { %v302_v41 = vshll.u32 %v299_v32, 16  ;;  %v304_v42 = vshll.u32 %v300_v35, 16  ;;  %v303_v59 = vshrl.u32 %v299_v32, 16  ;;  %v305_v6 = vshrl.u32 %v300_v35, 16 }
  0xa2   :  { %v280_v37 = vshll.u32 %v277_v28, 16  ;;  %v282_v39 = vshll.u32 %v278_v30, 16  ;;  %v281_v53 = vshrl.u32 %v277_v28, 16  ;;  %v283_v62 = vshrl.u32 %v278_v30, 16 }
  0xa3   :  { %vm306_vm12 = vc.u32 %v298_v31, %v302_v41  ;;  %v308_v51 = vadd.s32 %v302_v41, %v298_v31 }
  0xa4   :  { %vm284_vm11 = vc.u32 %v276_v27, %v280_v37  ;;  %v286_v45 = vadd.s32 %v280_v37, %v276_v27  ;;  %v307_v57 = vsel %vm306_vm12, 1, %v4836_v48 }
  0xa5   :  { %v285_v50 = vsel %vm284_vm11, 1, %v4836_v48  ;;  %v309_v60 = vadd.s32 %v307_v57, %v301_v40  ;;  %vm310_vm14 = vc.u32 %v308_v51, %v304_v42  ;;  %v312_v9 = vadd.s32 %v308_v51, %v304_v42 }
  0xa6   :  { %v287_v55 = vadd.s32 %v285_v50, %v279_v36  ;;  %vm288_vm13 = vc.u32 %v286_v45, %v282_v39  ;;  %v311_v3 = vsel %vm310_vm14, 1, %v4836_v48 }
  0xa7   :  { %v289_v58 = vsel %vm288_vm13, 1, %v4836_v48  ;;  %v313_v7 = vadd.s32 %v311_v3, %v309_v60 }
  0xa8   :  { %v291_v0 = vadd.s32 %v289_v58, %v287_v55  ;;  %v5008_v55 = vld [vmem:[%s5626_s1 + $0x8] sm:$0xff] }
  0xa9   :  { %v314_v11 = vadd.s32 %v313_v7, %v303_v59  ;;  %v53_v38 = vsel %vm49_vm0, %v5008_v55, 0.0 }
  0xaa   :  { %v292_v8 = vadd.s32 %v291_v0, %v281_v53  ;;  %54 = vadd.xlane.f32.xlu2 %v53_v38 }
  0xab   :  { %v315_v13 = vadd.s32 %v314_v11, %v305_v6  ;;  %v40_v11 = vld [vmem:[%s5625_s0 + $0x8] sm:$0xff]  ;;  %s4837_s0 = smov 40  }
  0xac   :  { %v293_v12 = vadd.s32 %v292_v8, %v283_v62  ;;  %4385 = vmatmul.msk.f32.vlgmr.msra.gmra.mxu3 %vm189_vm2, %v40_v11  ;;  %vm366_vm2 = vweird.f32 %v4926_v29 }
  0xad   :  { %v319_v15 = vadd.s32 1, %v315_v13 }
  0xae   :  { %vm318_vm15 = vc.u32 %v293_v12, %v312_v9  ;;  %v317_v44 = vadd.s32 %v312_v9, %v293_v12 }
  0xaf   :  { %v320_v16 = vsel %vm318_vm15, %v319_v15, %v315_v13 }
  0xb0   :  { %v321_v4 = vadd.s32 %v320_v16, %v316_v14  ;;  %v842_v14 = vld [vmem:[#allocation2 + $0x60] sm:$0xff] }
  0xb1   :  { %899 = vmatpush.msra.mxu2 %v842_v14 }
  0xb2   :  { %v322_v17 = vadd.s32 536870912, %v321_v4 }
  0xb4   :  { %v323_v19 = vshrl.u32 %v322_v17, 30  ;;  %v841_v17 = vld [vmem:[#allocation2 + $0x50] sm:$0xff] }
  0xb5   :  { %900 = vmatpush.msra.mxu2 %v841_v17 }
  0xb6   :  { %v324_v20 = vshll.u32 %v323_v19, 30  ;;  %v347_v62 = vsub.s32 4, %v323_v19 }
  0xb8   :  { %v325_v21 = vsub.s32 %v321_v4, %v324_v20  ;;  %v348_v7 = vsel %vm225_vm4, %v347_v62, %v323_v19  ;;  %v909_v19 = vld [vmem:[#allocation2 + $0xa0] sm:$0xf] }
  0xb9   :  { %v350_v9 = vsel %vm4996_vm5, 0, %v348_v7  ;;  %4403 = vmatpush.msk.msrb.mxu3 %vm5632_vm6, %v909_v19  ;;  %v105_v7 = vld [vmem:[#allocation2 + $0x20] ss:$0 sm:$0xff] }
  0xba   :  { %vm326_vm1 = vcmp.lt.s32.totalorder %v325_v21, 0  ;;  %v327_v23 = vsub.s32 0, %v325_v21  ;;  %v677_v15 = vand.u32 3, %v350_v9 }
  0xbc   :  { %v328_v24 = vsel %vm326_vm1, %v327_v23, %v325_v21  ;;  %vm679_vm7 = vcmp.eq.s32.totalorder %v677_v15, 0  ;;  %vm682_vm8 = vcmp.eq.s32.totalorder %v677_v15, 2  ;;  %vm678_vm9 = vcmp.lt.s32.totalorder %v677_v15, 2 }
  0xbd   :  { %v329_v26 = vclz %v328_v24  ;;  %v367_v24 = vadd.s32 3, %v350_v9 }
  0xbf   :  { %v4387_v27 = vadd.s32 4294967294, %v329_v26 }
  0xc1   :  { %vm4388_vm3 = vcmp.lt.s32.totalorder %v4387_v27, 0 }
  0xc2   :  { %v332_v28 = vsel %vm4388_vm3, 0, %v4387_v27  ;;  %v908_v27 = vld [vmem:[#allocation2 + $0x90] sm:$0xff]  ;;  %vm5637_vm3 = vcmask 1046528  }
  0xc3   :  { %v333_v30 = vsub.s32 32, %v332_v28  ;;  %v334_v31 = vshll.u32 %v325_v21, %v332_v28  ;;  %v337_v32 = vsub.s32 4294967266, %v332_v28  ;;  %934 = vmatpush.msrb.mxu3 %v908_v27 }
  0xc5   :  { %v335_v5 = vshrl.u32 %v317_v44, %v333_v30  ;;  %v338_v35 = vadd.s32 127, %v337_v32  ;;  %v368_v30 = vand.u32 3, %v367_v24  ;;  %v844_v32 = vld [vmem:[#allocation2 + $0x80] sm:$0xf] }
  0xc6   :  { %4398 = vmatpush.msk.msra.mxu1 %vm5632_vm6, %v844_v32 }
  0xc7   :  { %v336_v36 = vor.u32 %v335_v5, %v334_v31  ;;  %v339_v37 = vshll.u32 %v338_v35, 23  ;;  %vm369_vm11 = vcmp.lt.s32.totalorder %v368_v30, 2  ;;  %vm370_vm12 = vcmp.eq.s32.totalorder %v368_v30, 0  ;;  %v843_v5 = vld [vmem:[#allocation2 + $0x70] sm:$0xff] }
  0xc8   :  { %vm373_vm13 = vcmp.eq.s32.totalorder %v368_v30, 2  ;;  %871 = vmatpush.msra.mxu1 %v843_v5 }
  0xc9   :  { %v340_v39 = vor.u32 4788187, %v339_v37  ;;  %v343_v40 = vcvt.s32.f32 %v336_v36 }
  0xcb   :  { %v341_v41 = vand.u32 2147483647, %v340_v39 }
  0xcd   :  { %v344_v42 = vmul.f32 %v343_v40, %v341_v41 }
  0xcf   :  { %v345_v45 = vxor.u32 2147483648, %v344_v42 }
  0xd1   :  { %v346_v46 = vsel %vm225_vm4, %v345_v45, %v344_v42 }
  0xd2   :  { %v349_v50 = vsel %vm4996_vm5, %v4926_v29, %v346_v46 }
  0xd3   :  { %v351_v51 = vmul.f32 %v349_v50, %v349_v50 }
  0xd5   :  { %v359_v53 = vmul.f32 -0.00019511016, %v351_v51  ;;  %v352_v61 = vmul.f32 -0.001358992, %v351_v51 }
  0xd7   :  { %v360_v57 = vadd.f32 0.008332121, %v359_v53  ;;  %v353_v0 = vadd.f32 0.041655596, %v352_v61 }
  0xd9   :  { %v361_v58 = vmul.f32 %v360_v57, %v351_v51  ;;  %v354_v6 = vmul.f32 %v353_v0, %v351_v51  ;;  %v5032_v57 = vld [vmem:[#allocation2] ss:$0 sm:$0xff] }
  0xdb   :  { %v362_v59 = vadd.f32 -0.16666654, %v361_v58  ;;  %v355_v8 = vadd.f32 -0.4999988, %v354_v6 }
  0xdd   :  { %v363_v60 = vmul.f32 %v362_v59, %v351_v51  ;;  %v356_v12 = vmul.f32 %v355_v8, %v351_v51  ;;  %v947_v51 = vld [vmem:[#allocation2 + $0xb0] sm:$0x7f] }
  0xde   :  { %4406 = vmatpush.msk.msrb.mxu0 %vm5637_vm3, %v947_v51  ;;  %v5035_v59 = vld [vmem:[#allocation2 + $0x10] ss:$0 sm:$0xff] }
  0xdf   :  { %v364_v3 = vadd.f32 1.0, %v363_v60  ;;  %v357_v13 = vadd.f32 1.0, %v356_v12 }
  0xe1   :  { %v365_v10 = vmul.f32 %v364_v3, %v349_v50  ;;  %v374_v4 = vxor.u32 2147483648, %v357_v13 }
  0xe3   :  { %v371_v16 = vxor.u32 2147483648, %v365_v10  ;;  %v684_v23 = vsel %vm682_vm8, %v374_v4, %v365_v10  ;;  %v375_v36 = vsel %vm373_vm13, %v374_v4, %v365_v10  ;;  %v165_v10 = vrot.slane %v105_v7, 1 }
  0xe4   :  { %vm186_vm8 = vcmask 48128  }
  0xe5   :  { %v681_v21 = vsel %vm679_vm7, %v357_v13, %v371_v16  ;;  %v372_v35 = vsel %vm370_vm12, %v357_v13, %v371_v16 }
  0xe6   :  { %v685_v44 = vsel %vm678_vm9, %v681_v21, %v684_v23  ;;  %v376_v37 = vsel %vm369_vm11, %v372_v35, %v375_v36  ;;  %vm948_vm9 = vcmask 56320  }
  0xe7   :  { %v686_v28 = vsel %vm366_vm2, nan, %v685_v44  ;;  %v377_v39 = vsel %vm366_vm2, nan, %v376_v37 }
  0xe8   :  { %4404 = vmatmul.msk.f32.vlgmr.msrb.gmra.mxu3 %vm845_vm10, %v686_v28  ;;  %4399 = vmatmul.msk.f32.vlgmr.msra.gmra.mxu1 %vm845_vm10, %v377_v39 }
  0xf6   :  { %v71_v20 = vpop.xlane.xlu1 %70 }
  0xf7   :  { %v75_v26 = vmul.f32 %v71_v20, %v4915_v18 }
  0xf9   :  { %v77_v31 = vadd.f32 1e-05, %v75_v26 }
  0xfb   :  { %4593 = vrsqrt.f32 %v77_v31  ;;  %vm85_vm14 = vweird.f32 %v77_v31 }
 0x101   :  { %v4594_v40 = vpop.eup %4593 }
 0x102   :  { %v80_v41 = vmul.f32 %v4594_v40, %v77_v31  ;;  %vm86_vm15 = vweird.f32 %v4594_v40 }
 0x103   :  { %vm87_vm1 = vmor %vm85_vm14, %vm86_vm15 }
 0x104   :  { %v81_v42 = vmul.f32 %v4594_v40, %v80_v41 }
 0x106   :  { %v82_v43 = vmul.f32 0.5, %v81_v42 }
 0x108   :  { %v83_v45 = vsub.f32 1.5, %v82_v43 }
 0x10a   :  { %v84_v46 = vmul.f32 %v4594_v40, %v83_v45 }
 0x10b   :  { %v144_v50 = vpop.xlane.xlu0 %143 }
 0x10c   :  { %v145_v53 = vmul.f32 %v144_v50, %v4922_v25  ;;  %v88_v29 = vsel %vm87_vm1, %v4594_v40, %v84_v46 }
 0x10d   :  { %v99_v58 = vmul.f32 %v88_v29, %v4918_v22  ;;  %v106_v22 = vld [vmem:[#allocation2 + $0x30] ss:$0 sm:$0xff] }
 0x10e   :  { %v146_v38 = vadd.f32 1e-05, %v145_v53  ;;  %v170_v13 = vrot.slane %v106_v22, 1 }
 0x10f   :  { %v101_v60 = vmul.f32 %v99_v58, %v5032_v57 }
 0x110   :  { %4595 = vrsqrt.f32 %v146_v38  ;;  %vm153_vm5 = vweird.f32 %v146_v38 }
 0x111   :  { %v103_v61 = vadd.f32 %v101_v60, %v5035_v59 }
 0x113   :  { %4401 = vmatmul.msk.f32.vlgmr.msra.gmra.mxu2 %vm49_vm0, %v103_v61 }
 0x116   :  { %v4596_v62 = vpop.eup %4595 }
 0x117   :  { %v148_v0 = vmul.f32 %v4596_v62, %v146_v38  ;;  %vm154_vm4 = vweird.f32 %v4596_v62 }
 0x118   :  { %vm155_vm7 = vmor %vm153_vm5, %vm154_vm4 }
 0x119   :  { %v149_v25 = vmul.f32 %v4596_v62, %v148_v0 }
 0x11b   :  { %v150_v3 = vmul.f32 0.5, %v149_v25 }
 0x11d   :  { %v151_v6 = vsub.f32 1.5, %v150_v3 }
 0x11f   :  { %v152_v8 = vmul.f32 %v4596_v62, %v151_v6 }
 0x121   :  { %v156_v9 = vsel %vm155_vm7, %v4596_v62, %v152_v8 }
 0x122   :  { %v158_v11 = vperm.slane %v156_v9, 0  ;;  %v159_v12 = vperm.slane %v156_v9, 1 }
 0x124   :  { %v162_v14 = vmul.f32 %v158_v11, %v4930_v33  ;;  %v163_v15 = vmul.f32 %v159_v12, %v4933_v34  ;;  %v55_v33 = vpop.xlane.xlu2 %54 }
 0x125   :  { %v64_v34 = vmul.f32 %v4915_v18, %v55_v33 }
 0x126   :  { %v167_v16 = vmul.f32 %v162_v14, %v105_v7  ;;  %v168_v4 = vmul.f32 %v165_v10, %v163_v15 }
 0x127   :  { %v5050_v24 = vsub.f32 %v5008_v55, %v64_v34 }
 0x128   :  { %v172_v17 = vadd.f32 %v167_v16, %v106_v22  ;;  %v173_v19 = vadd.f32 %v170_v13, %v168_v4 }
 0x129   :  { %v68_v26 = vmul.f32 %v5050_v24, %v5050_v24 }
 0x12a   :  { %176 = vst [vmem:[#allocation1] ss:$9 sm:$0xff] %v172_v17 }
 0x12b   :  { %178 = vst [vmem:[#allocation1 + $0x1] ss:$9 sm:$0xff] %v173_v19 }
 0x132   :  { %v179_v20 = vld [vmem:[#allocation1] sm:$0xff] }
 0x133   :  { %181 = vst [vmem:[#allocation1] ss:$9 sm:$0xff] %v4900_v1  ;;  %v72_v1 = vsel %vm49_vm0, %v68_v26, 0.0 }
 0x134   :  { %183 = vst [vmem:[#allocation1 + $0x1] ss:$9 sm:$0xff] %v4905_v2  ;;  %73 = vadd.xlane.f32.xlu2 %v72_v1  ;;  %v5055_v2 = vpop.f32.mrf.mxu3 }
 0x135   :  { %v381_v27 = vand.u32 2139095040, %v5055_v2  ;;  %v378_v36 = vand.u32 2147483647, %v5055_v2 }
 0x137   :  { %v382_v44 = vshrl.u32 %v381_v27, 23  ;;  %v385_v45 = vand.u32 8388607, %v378_v36 }
 0x139   :  { %v4389_v28 = vadd.s32 4294967169, %v382_v44  ;;  %v386_v53 = vor.u32 8388608, %v385_v45 }
 0x13b   :  { %v184_v21 = vld [vmem:[#allocation1] sm:$0xff]  ;;  %v388_v30 = vadd.s32 1, %v4389_v28  ;;  %v426_v60 = vshll.u32 %v386_v53, 8 }
 0x13c   :  { %v5044_v23 = vsel %vm186_vm8, %v179_v20, %v184_v21 }
 0x13d   :  { %4407 = vmatmul.msk.f32.vlgmr.msrb.gmra.mxu0 %vm948_vm9, %v5044_v23  ;;  %vm389_vm2 = vcmp.gt.s32.totalorder %v388_v30, 0  ;;  %v427_v25 = vand.u32 65535, %v426_v60  ;;  %v428_v10 = vshrl.u32 %v426_v60, 16 }
 0x13e   :  { %v390_v31 = vsel %vm389_vm2, %v388_v30, 0 }
 0x13f   :  { %v392_v32 = vand.u32 31, %v390_v31  ;;  %v5061_v37 = vshrl.u32 %v390_v31, 5 }
 0x141   :  { %v393_v5 = vsub.s32 32, %v392_v32  ;;  %v407_v55 = vshll.u32 %v4834_v56, %v392_v32  ;;  %v398_v39 = vshll.u32 %v4831_v49, %v392_v32  ;;  %v401_v41 = vshll.u32 %v4832_v52, %v392_v32 }
 0x142   :  { %v404_v46 = vshll.u32 %v4833_v54, %v392_v32  ;;  %vm413_vm11 = vcmp.lt.s32.totalorder %v5061_v37, 4  ;;  %vm410_vm12 = vcmp.lt.s32.totalorder %v5061_v37, 1  ;;  %vm412_vm13 = vcmp.lt.s32.totalorder %v5061_v37, 3 }
 0x143   :  { %v408_v35 = vshrl.u32 %v4835_v63, %v393_v5  ;;  %v399_v40 = vshrl.u32 %v4832_v52, %v393_v5  ;;  %v402_v42 = vshrl.u32 %v4833_v54, %v393_v5  ;;  %v405_v63 = vshrl.u32 %v4834_v56, %v393_v5 }
 0x144   :  { %v395_v38 = vshll.u32 %v4830_v47, %v392_v32  ;;  %v396_v58 = vshrl.u32 %v4831_v49, %v393_v5  ;;  %vm411_vm14 = vcmp.lt.s32.totalorder %v5061_v37, 2  ;;  %v394_v33 = vshrl.u32 %v4830_v47, %v393_v5 }
 0x145   :  { %v409_v43 = vor.u32 %v408_v35, %v407_v55  ;;  %v400_v50 = vor.u32 %v399_v40, %v398_v39  ;;  %v403_v51 = vor.u32 %v402_v42, %v401_v41  ;;  %v406_v29 = vor.u32 %v405_v63, %v404_v46 }
 0x146   :  { %v397_v61 = vor.u32 %v396_v58, %v395_v38 }
 0x147   :  { %v423_v52 = vsel %vm413_vm11, %v409_v43, 1326507024  ;;  %v422_v54 = vsel %vm410_vm12, %v400_v50, %v403_v51  ;;  %v419_v0 = vsel %vm413_vm11, %v406_v29, 920167782  ;;  %v415_v1 = vsel %vm413_vm11, %v403_v51, 2102212464 }
 0x148   :  { %v424_v56 = vsel %vm412_vm13, %v406_v29, %v423_v52  ;;  %v418_v49 = vsel %vm410_vm12, %v397_v61, %v400_v50  ;;  %v420_v6 = vsel %vm412_vm13, %v403_v51, %v419_v0  ;;  %v414_v32 = vsel %vm410_vm12, %v394_v33, %v397_v61 }
 0x149   :  { %v425_v62 = vsel %vm411_vm14, %v422_v54, %v424_v56  ;;  %v421_v7 = vsel %vm411_vm14, %v418_v49, %v420_v6  ;;  %v416_v55 = vsel %vm412_vm13, %v400_v50, %v415_v1  ;;  %vm380_vm11 = vcmp.lt.s32.totalorder %v5055_v2, 0 }
 0x14a   :  { %v430_v3 = vshrl.u32 %v425_v62, 16  ;;  %v429_v8 = vand.u32 65535, %v425_v62  ;;  %v452_v9 = vshrl.u32 %v421_v7, 16  ;;  %v451_v13 = vand.u32 65535, %v421_v7 }
 0x14b   :  { %v417_v42 = vsel %vm411_vm14, %v414_v32, %v416_v55  ;;  %vm379_vm12 = vcmp.le.f32.partialorder %v378_v36, 0.7853982 }
 0x14c   :  { %v432_v22 = vmul.u32 %v430_v3, %v427_v25  ;;  %v431_v11 = vmul.u32 %v429_v8, %v427_v25  ;;  %v454_v14 = vmul.u32 %v452_v9, %v427_v25  ;;  %v433_v15 = vmul.u32 %v429_v8, %v428_v10  ;;  %v5110_v8 = vld [vmem:[#allocation2 + $0xc0] ss:$0 sm:$0xff] }
 0x14d   :  { %v453_v16 = vmul.u32 %v451_v13, %v427_v25  ;;  %v455_v4 = vmul.u32 %v451_v13, %v428_v10  ;;  %v434_v17 = vmul.u32 %v430_v3, %v428_v10  ;;  %v456_v20 = vmul.u32 %v452_v9, %v428_v10 }
 0x14e   :  { %v435_v12 = vshll.u32 %v432_v22, 16  ;;  %v457_v21 = vshll.u32 %v454_v14, 16  ;;  %v437_v34 = vshll.u32 %v433_v15, 16  ;;  %v458_v35 = vshrl.u32 %v454_v14, 16 }
 0x14f   :  { %v459_v27 = vshll.u32 %v455_v4, 16  ;;  %v436_v40 = vshrl.u32 %v432_v22, 16  ;;  %v460_v43 = vshrl.u32 %v455_v4, 16  ;;  %v438_v46 = vshrl.u32 %v433_v15, 16 }
 0x150   :  { %vm439_vm15 = vc.u32 %v431_v11, %v435_v12  ;;  %v441_v26 = vadd.s32 %v435_v12, %v431_v11  ;;  %vm461_vm1 = vc.u32 %v453_v16, %v457_v21  ;;  %v463_v44 = vadd.s32 %v457_v21, %v453_v16 }
 0x151   :  { %v440_v19 = vsel %vm439_vm15, 1, %v4836_v48  ;;  %v462_v30 = vsel %vm461_vm1, 1, %v4836_v48  ;;  %v471_v52 = vmul.u32 %v426_v60, %v417_v42 }
 0x152   :  { %v442_v28 = vadd.s32 %v440_v19, %v434_v17  ;;  %v464_v31 = vadd.s32 %v462_v30, %v456_v20  ;;  %vm465_vm4 = vc.u32 %v463_v44, %v459_v27  ;;  %vm443_vm5 = vc.u32 %v441_v26, %v437_v34 }
 0x153   :  { %v466_v47 = vsel %vm465_vm4, 1, %v4836_v48  ;;  %v444_v5 = vsel %vm443_vm5, 1, %v4836_v48  ;;  %v467_v50 = vadd.s32 %v463_v44, %v459_v27 }
 0x154   :  { %v468_v39 = vadd.s32 %v466_v47, %v464_v31  ;;  %v446_v41 = vadd.s32 %v444_v5, %v442_v28 }
 0x156   :  { %v469_v45 = vadd.s32 %v468_v39, %v458_v35  ;;  %v447_v63 = vadd.s32 %v446_v41, %v436_v40 }
 0x158   :  { %v470_v51 = vadd.s32 %v469_v45, %v460_v43  ;;  %v448_v53 = vadd.s32 %v447_v63, %v438_v46 }
 0x15a   :  { %v474_v29 = vadd.s32 1, %v470_v51  ;;  %vm473_vm7 = vc.u32 %v448_v53, %v467_v50  ;;  %v472_v14 = vadd.s32 %v467_v50, %v448_v53 }
 0x15c   :  { %v475_v38 = vsel %vm473_vm7, %v474_v29, %v470_v51 }
 0x15d   :  { %v476_v58 = vadd.s32 %v475_v38, %v471_v52 }
 0x15f   :  { %v477_v54 = vadd.s32 536870912, %v476_v58 }
 0x161   :  { %v478_v62 = vshrl.u32 %v477_v54, 30 }
 0x163   :  { %v479_v3 = vshll.u32 %v478_v62, 30  ;;  %v502_v30 = vsub.s32 4, %v478_v62 }
 0x165   :  { %v873_v56 = vpop.f32.mrf.mxu1  ;;  %v480_v60 = vsub.s32 %v476_v58, %v479_v3 }
 0x167   :  { %v482_v7 = vsub.s32 0, %v480_v60  ;;  %vm481_vm8 = vcmp.lt.s32.totalorder %v480_v60, 0 }
 0x169   :  { %v483_v22 = vsel %vm481_vm8, %v482_v7, %v480_v60 }
 0x16a   :  { %v484_v9 = vclz %v483_v22 }
 0x16b   :  { %v936_v49 = vpop.f32.mrf.mxu3 }
 0x16c   :  { %v4390_v11 = vadd.s32 4294967294, %v484_v9 }
 0x16e   :  { %vm4391_vm2 = vcmp.lt.s32.totalorder %v4390_v11, 0 }
 0x16f   :  { %v487_v12 = vsel %vm4391_vm2, 0, %v4390_v11 }
 0x170   :  { %v492_v13 = vsub.s32 4294967266, %v487_v12  ;;  %v488_v15 = vsub.s32 32, %v487_v12  ;;  %v489_v16 = vshll.u32 %v480_v60, %v487_v12 }
 0x172   :  { %v493_v4 = vadd.s32 127, %v492_v13  ;;  %v490_v17 = vshrl.u32 %v472_v14, %v488_v15 }
 0x174   :  { %v494_v20 = vshll.u32 %v493_v4, 23  ;;  %v491_v33 = vor.u32 %v490_v17, %v489_v16 }
 0x176   :  { %v495_v34 = vor.u32 4788187, %v494_v20  ;;  %v498_v1 = vcvt.s32.f32 %v491_v33 }
 0x178   :  { %v496_v27 = vand.u32 2147483647, %v495_v34 }
 0x17a   :  { %v499_v44 = vmul.f32 %v498_v1, %v496_v27  ;;  %v5159_v27 = vld [vmem:[%s5627_s2] sm:$0x1] }
 0x17c   :  { %v500_v28 = vxor.u32 2147483648, %v499_v44 }
 0x17e   :  { %v501_v31 = vsel %vm380_vm11, %v500_v28, %v499_v44 }
 0x17f   :  { %v504_v55 = vsel %vm379_vm12, %v5055_v2, %v501_v31 }
 0x180   :  { %v506_v5 = vmul.f32 %v504_v55, %v504_v55 }
 0x182   :  { %v507_v39 = vmul.f32 -0.001358992, %v506_v5  ;;  %v514_v40 = vmul.f32 -0.00019511016, %v506_v5 }
 0x184   :  { %v508_v43 = vadd.f32 0.041655596, %v507_v39  ;;  %v515_v45 = vadd.f32 0.008332121, %v514_v40  ;;  %v5184_v40 = vld [vmem:[%s5627_s2 + $0x1] sm:$0x1] }
 0x185   :  { %s4843_s2 = smov 108  }
 0x186   :  { %v509_v63 = vmul.f32 %v508_v43, %v506_v5  ;;  %v516_v51 = vmul.f32 %v515_v45, %v506_v5 }
 0x188   :  { %v510_v53 = vadd.f32 -0.4999988, %v509_v63  ;;  %v517_v50 = vadd.f32 -0.16666654, %v516_v51 }
 0x18a   :  { %v511_v54 = vmul.f32 %v510_v53, %v506_v5 }
 0x196   :  { %v902_v61 = vpop.f32.mrf.mxu2 }
 0x197   :  { %v903_v37 = vadd.f32 %v902_v61, %v873_v56  ;;  %v518_v56 = vmul.f32 %v517_v50, %v506_v5 }
 0x199   :  { %v942_v6 = vadd.f32 %v936_v49, %v903_v37  ;;  %v519_v37 = vadd.f32 1.0, %v518_v56 }
 0x19b   :  { %v5113_v10 = vadd.f32 %v5110_v8, %v942_v6  ;;  %v520_v3 = vmul.f32 %v519_v37, %v504_v55 }
 0x19d   :  { %v526_v6 = vxor.u32 2147483648, %v520_v3 }
 0x1a7   :  { %v74_v19 = vpop.xlane.xlu2 %73 }
 0x1a8   :  { %v76_v21 = vmul.f32 %v74_v19, %v4915_v18  ;;  %v503_v18 = vsel %vm380_vm11, %v502_v30, %v478_v62  ;;  %v512_v62 = vadd.f32 1.0, %v511_v54  ;;  %vm521_vm11 = vweird.f32 %v5055_v2 }
 0x1a9   :  { %v505_v41 = vsel %vm379_vm12, 0, %v503_v18 }
 0x1aa   :  { %v78_v26 = vadd.f32 1e-05, %v76_v21  ;;  %v522_v46 = vadd.s32 3, %v505_v41  ;;  %v831_v29 = vand.u32 3, %v505_v41  ;;  %v529_v49 = vxor.u32 2147483648, %v512_v62 }
 0x1ac   :  { %4597 = vrsqrt.f32 %v78_v26  ;;  %vm95_vm13 = vweird.f32 %v78_v26  ;;  %v523_v38 = vand.u32 3, %v522_v46  ;;  %vm836_vm1 = vcmp.eq.s32.totalorder %v831_v29, 2 }
 0x1ad   :  { %vm832_vm5 = vcmp.lt.s32.totalorder %v831_v29, 2  ;;  %vm833_vm7 = vcmp.eq.s32.totalorder %v831_v29, 0  ;;  %v838_v7 = vsel %vm836_vm1, %v529_v49, %v520_v3 }
 0x1ae   :  { %vm528_vm4 = vcmp.eq.s32.totalorder %v523_v38, 2  ;;  %vm525_vm8 = vcmp.eq.s32.totalorder %v523_v38, 0  ;;  %vm524_vm2 = vcmp.lt.s32.totalorder %v523_v38, 2 }
 0x1af   :  { %v530_v22 = vsel %vm528_vm4, %v529_v49, %v520_v3  ;;  %v527_v9 = vsel %vm525_vm8, %v512_v62, %v526_v6 }
 0x1b0   :  { %v531_v11 = vsel %vm524_vm2, %v527_v9, %v530_v22 }
 0x1b1   :  { %v532_v13 = vsel %vm521_vm11, nan, %v531_v11 }
 0x1b2   :  { %v4598_v32 = vpop.eup %4597  ;;  %4400 = vmatmul.msk.f32.gmra.mxu1 %vm845_vm10, %v532_v13 }
 0x1b3   :  { %v90_v47 = vmul.f32 %v4598_v32, %v78_v26  ;;  %vm96_vm14 = vweird.f32 %v4598_v32 }
 0x1b4   :  { %vm97_vm15 = vmor %vm95_vm13, %vm96_vm14  ;;  %vm1057_vm13 = vcmask 64512   ;;  %vm5636_vm14 = vcmp.gt.f32.partialorder %v5184_v40, 0.5 }
 0x1b5   :  { %v91_v35 = vmul.f32 %v4598_v32, %v90_v47  ;;  %v1050_v41 = vsel %vm5636_vm14, 1, %v4836_v48 }
 0x1b7   :  { %v92_v42 = vmul.f32 0.5, %v91_v35 }
 0x1b9   :  { %v93_v36 = vsub.f32 1.5, %v92_v42  ;;  %v1052_v42 = vperm.slane %v1050_v41, 0 }
 0x1ba   :  { %v5106_v0 = vpop.f32.mrf.mxu0 }
 0x1bb   :  { %v978_v25 = vperm.slane %v5106_v0, 0  ;;  %v94_v52 = vmul.f32 %v4598_v32, %v93_v36  ;;  %v977_v2 = vrot.slane %v5106_v0, 1 }
 0x1bd   :  { %980 = vrot.lane.b32.xlu0 %v978_v25, %s4837_s0  ;;  %v98_v58 = vsel %vm97_vm15, %v4598_v32, %v94_v52  ;;  %v979_v15 = vperm.slane %v977_v2, 0  ;;  %vm5190_vm15 = vcmp.eq.s32.totalorder %v1052_v42, 1 }
 0x1be   :  { %v100_v61 = vmul.f32 %v98_v58, %v5050_v24  ;;  %v835_v24 = vsel %vm833_vm7, %v512_v62, %v526_v6 }
 0x1c0   :  { %v102_v25 = vmul.f32 %v100_v61, %v5032_v57  ;;  %v839_v57 = vsel %vm832_vm5, %v835_v24, %v838_v7 }
 0x1c1   :  { %v840_v12 = vsel %vm521_vm11, nan, %v839_v57 }
 0x1c2   :  { %v104_v60 = vadd.f32 %v102_v25, %v5035_v59  ;;  %4405 = vmatmul.msk.f32.gmra.mxu3 %vm845_vm10, %v840_v12  ;;  %vm1047_vm10 = vcmp.gt.f32.partialorder %v5159_v27, 0.5 }
 0x1c3   :  { %v1049_v44 = vsel %vm1047_vm10, 1, %v4836_v48 }
 0x1c4   :  { %4402 = vmatmul.msk.f32.gmra.mxu2 %vm49_vm0, %v104_v60  ;;  %vm991_vm0 = vcmask 80896   ;;  %v1051_v28 = vperm.slane %v1049_v44, 0 }
 0x1c5   :  { %1160 = vrot.lane.b32.xlu0 %v5113_v10, %s4838_s13 }
 0x1c6   :  { %vm5165_vm12 = vcmp.eq.s32.totalorder %v1051_v28, 1 }
 0x22f   :  { %v981_v59 = vpop.permute.xlu0 %980  ;;  %v876_v16 = vpop.f32.mrf.mxu1 }
 0x230   :  { %v5130_v14 = vadd.f32 %v981_v59, %v5113_v10 }
 0x232   :  { %1162 = vrot.lane.b32.xlu2 %v5130_v14, %s4839_s14  ;;  %989 = vrot.lane.b32.xlu1 %v5130_v14, %s4840_s15 }
 0x23a   :  { %982 = vrot.lane.b32.xlu2 %v979_v15, %s4837_s0 }
 0x245   :  { %v939_v19 = vpop.f32.mrf.mxu3 }
 0x247   :  { %v905_v4 = vpop.f32.mrf.mxu2 }
 0x248   :  { %v906_v17 = vadd.f32 %v905_v4, %v876_v16 }
 0x24a   :  { %v943_v21 = vadd.f32 %v939_v19, %v906_v17 }
 0x24c   :  { %v5139_v33 = vadd.f32 %v5110_v8, %v943_v21  ;;  %v1161_v8 = vpop.permute.xlu0 %1160 }
 0x28c   :  { %v1163_v20 = vpop.permute.xlu2 %1162 }
 0x294   :  { %v983_v34 = vpop.permute.xlu2 %982 }
 0x295   :  { %v5142_v26 = vadd.f32 %v983_v34, %v5139_v33 }
 0x297   :  { %1018 = vrot.lane.b32.xlu1 %v5142_v26, %s4840_s15 }
 0x29f   :  { %1268 = vrot.lane.b32.xlu1 %v5130_v14, %s4841_s16 }
 0x2a4   :  { %v990_v0 = vpop.permute.xlu1 %989 }
 0x2a5   :  { %4408 = vmatpush.xpose.msk.msrb.mxu1 %vm991_vm0, %v990_v0 }
 0x2a8   :  { %4409 = vmatmul.msk.f32.vlgmr.msrb.gmra.mxu1 %vm991_vm0, %v5113_v10 }
 0x2a9   :  { %4414 = vmatpush.xpose.msk.msra.mxu1 %vm991_vm0, %v1163_v20 }
 0x2b0   :  { %4415 = vmatmul.msk.f32.vlgmr.msra.gmra.mxu1 %vm991_vm0, %v1161_v8 }
 0x309   :  { %v1019_v1 = vpop.permute.xlu1 %1018 }
 0x30a   :  { %4410 = vmatpush.xpose.msk.msrb.mxu2 %vm991_vm0, %v1019_v1 }
 0x30d   :  { %4411 = vmatmul.msk.f32.vlgmr.msrb.gmra.mxu2 %vm991_vm0, %v5139_v33 }
 0x311   :  { %v1269_v56 = vpop.permute.xlu1 %1268 }
 0x325   :  { %v1014_v30 = vpop.f32.mrf.mxu1 }
 0x326   :  { %v1045_v32 = vmul.f32 0.31622776, %v1014_v30 }
 0x328   :  { %v1055_v55 = vsel %vm5165_vm12, -1e+30, %v1045_v32 }
 0x329   :  { %v1058_v47 = vsel %vm1057_vm13, %v1055_v55, -inf }
 0x32a   :  { %1059 = vmax.xlane.f32.xlu0 %v1058_v47 }
 0x32d   :  { %v1185_v18 = vpop.f32.mrf.mxu1 }
 0x32e   :  { %v1216_v5 = vmul.f32 0.31622776, %v1185_v18 }
 0x330   :  { %v1218_v35 = vsel %vm5165_vm12, -1e+30, %v1216_v5 }
 0x331   :  { %v1220_v39 = vsel %vm1057_vm13, %v1218_v35, -inf }
 0x332   :  { %1221 = vmax.xlane.f32.xlu2 %v1220_v39 }
 0x33e   :  { %1190 = vrot.lane.b32.xlu0 %v5142_v26, %s4839_s14 }
 0x34a   :  { %1106 = vrot.lane.b32.xlu2 %v5130_v14, %s4842_s19 }
 0x352   :  { %1188 = vrot.lane.b32.xlu2 %v5139_v33, %s4838_s13 }
 0x390   :  { %v1042_v43 = vpop.f32.mrf.mxu2 }
 0x391   :  { %v1046_v46 = vmul.f32 0.31622776, %v1042_v43 }
 0x393   :  { %v1056_v36 = vsel %vm5190_vm15, -1e+30, %v1046_v46 }
 0x394   :  { %v1061_v63 = vsel %vm1057_vm13, %v1056_v36, -inf }
 0x395   :  { %1062 = vmax.xlane.f32.xlu2 %v1061_v63  ;;  %v1159_v63 = vld [vmem:[#allocation2 + $0xe0] sm:$0x3] }
 0x39d   :  { %v1060_v51 = vpop.xlane.xlu0 %1059 }
 0x39e   :  { %v1064_v52 = vsub.f32 %v1055_v55, %v1060_v51 }
 0x3a0   :  { %v1066_v53 = vmul.f32 1.442695, %v1064_v52 }
 0x3a2   :  { %4599 = vpow2.f32 %v1066_v53 }
 0x3a5   :  { %v1222_v50 = vpop.xlane.xlu2 %1221 }
 0x3a6   :  { %v1226_v29 = vsub.f32 %v1218_v35, %v1222_v50  ;;  %v1158_v50 = vld [vmem:[#allocation2 + $0xd0] sm:$0xff] }
 0x3a8   :  { %v4600_v48 = vpop.eup %4599  ;;  %v1228_v38 = vmul.f32 1.442695, %v1226_v29 }
 0x3a9   :  { %v1070_v58 = vsel %vm1057_vm13, %v4600_v48, 0.0 }
 0x3aa   :  { %4601 = vpow2.f32 %v1228_v38  ;;  %1071 = vadd.xlane.f32.xlu1 %v1070_v58 }
 0x3ad   :  { %v1107_v54 = vpop.permute.xlu2 %1106 }
 0x3ae   :  { %1127 = vmatpush.msra.mxu3 %v1107_v54 }
 0x3b0   :  { %1289 = vmatpush.msrb.mxu3 %v1269_v56  ;;  %v4602_v61 = vpop.eup %4601  ;;  %v1191_v62 = vpop.permute.xlu0 %1190 }
 0x3b1   :  { %4416 = vmatpush.xpose.msk.msra.mxu2 %vm991_vm0, %v1191_v62  ;;  %v1232_v37 = vsel %vm1057_vm13, %v4602_v61, 0.0 }
 0x3b2   :  { %1233 = vadd.xlane.f32.xlu0 %v1232_v37 }
 0x3b5   :  { %v1189_v25 = vpop.permute.xlu2 %1188 }
 0x3b6   :  { %4417 = vmatmul.msk.f32.vlgmr.msra.gmra.mxu2 %vm991_vm0, %v1189_v25 }
 0x3c3   :  { %1387 = vrot.lane.b32.xlu1 %v5113_v10, %s4843_s2 }
 0x3c6   :  { %1389 = vrot.lane.b32.xlu0 %v5130_v14, %s4844_s22 }
 0x3cb   :  { %1132 = vrot.lane.b32.xlu1 %v5142_v26, %s4842_s19 }
 0x408   :  { %v1063_v3 = vpop.xlane.xlu2 %1062 }
 0x409   :  { %v1065_v49 = vsub.f32 %v1056_v36, %v1063_v3 }
 0x40b   :  { %v1068_v60 = vmul.f32 1.442695, %v1065_v49 }
 0x40d   :  { %4603 = vpow2.f32 %v1068_v60 }
 0x413   :  { %v5207_v6 = vpop.eup %4603 }
 0x414   :  { %v1073_v7 = vsel %vm1057_vm13, %v5207_v6, 0.0 }
 0x415   :  { %1074 = vadd.xlane.f32.xlu0 %v1073_v7 }
 0x41d   :  { %v1072_v22 = vpop.xlane.xlu1 %1071 }
 0x41e   :  { %4605 = vrcp.f32 %v1072_v22  ;;  %v1087_v12 = vand.u32 2147483648, %v1072_v22  ;;  %v1085_v59 = vand.u32 2147483647, %v1072_v22  ;;  %vm1081_vm4 = vweird.f32 %v1072_v22 }
 0x420   :  { %v1088_v16 = vor.u32 1.1754944e-38, %v1087_v12  ;;  %vm1086_vm7 = vcmp.eq.f32.partialorder %v1085_v59, 8.507059e+37 }
 0x424   :  { %v4606_v24 = vpop.eup %4605 }
 0x425   :  { %v1077_v9 = vmul.f32 %v4606_v24, %v1072_v22  ;;  %v1234_v57 = vpop.xlane.xlu0 %1233  ;;  %vm1082_vm1 = vweird.f32 %v4606_v24 }
 0x426   :  { %4607 = vrcp.f32 %v1234_v57  ;;  %vm1083_vm5 = vmor %vm1081_vm4, %vm1082_vm1  ;;  %v1249_v34 = vand.u32 2147483648, %v1234_v57  ;;  %v1247_v8 = vand.u32 2147483647, %v1234_v57  ;;  %vm1243_vm2 = vweird.f32 %v1234_v57 }
 0x427   :  { %v1078_v11 = vsub.f32 1.0, %v1077_v9 }
 0x428   :  { %v1250_v44 = vor.u32 1.1754944e-38, %v1249_v34  ;;  %vm1248_vm6 = vcmp.eq.f32.partialorder %v1247_v8, 8.507059e+37 }
 0x429   :  { %v1079_v13 = vmul.f32 %v4606_v24, %v1078_v11  ;;  %1294 = vrot.lane.b32.xlu0 %v5142_v26, %s4841_s16 }
 0x42b   :  { %v1080_v2 = vadd.f32 %v4606_v24, %v1079_v13 }
 0x42c   :  { %v4608_v15 = vpop.eup %4607 }
 0x42d   :  { %v1084_v4 = vsel %vm1083_vm5, %v4606_v24, %v1080_v2  ;;  %v1239_v17 = vmul.f32 %v4608_v15, %v1234_v57  ;;  %vm1244_vm8 = vweird.f32 %v4608_v15 }
 0x42e   :  { %v1089_v19 = vsel %vm1086_vm7, %v1088_v16, %v1084_v4  ;;  %vm1245_vm11 = vmor %vm1243_vm2, %vm1244_vm8 }
 0x42f   :  { %v1240_v20 = vsub.f32 1.0, %v1239_v17  ;;  %v1090_v21 = vmul.f32 %v4600_v48, %v1089_v19  ;;  %v1321_v48 = vld [vmem:[#allocation2 + $0x100] sm:$0x3] }
 0x431   :  { %v1241_v0 = vmul.f32 %v4608_v15, %v1240_v20  ;;  %4412 = vmatmul.msk.f32.vlgmr.msra.gmra.mxu3 %vm1057_vm13, %v1090_v21 }
 0x433   :  { %v1242_v1 = vadd.f32 %v4608_v15, %v1241_v0 }
 0x435   :  { %v1246_v28 = vsel %vm1245_vm11, %v4608_v15, %v1242_v1  ;;  %v1388_v30 = vpop.permute.xlu1 %1387 }
 0x436   :  { %v1251_v32 = vsel %vm1248_vm6, %v1250_v44, %v1246_v28  ;;  %vm1328_vm6 = vcmask 1041408  }
 0x437   :  { %v1252_v55 = vmul.f32 %v4602_v61, %v1251_v32  ;;  %4423 = vmatpush.msk.msrb.mxu2 %vm1328_vm6, %v1159_v63  ;;  %4420 = vmatpush.msk.msrb.mxu1 %vm1328_vm6, %v1321_v48  ;;  %v1320_v61 = vld [vmem:[#allocation2 + $0xf0] sm:$0xff] }
 0x438   :  { %v1390_v47 = vpop.permute.xlu0 %1389 }
 0x439   :  { %v1213_v18 = vpop.f32.mrf.mxu2  ;;  %4418 = vmatmul.msk.f32.vlgmr.msrb.gmra.mxu3 %vm1057_vm13, %v1252_v55  ;;  %1379 = vmatpush.msrb.mxu2 %v1158_v50 }
 0x43a   :  { %v1217_v5 = vmul.f32 0.31622776, %v1213_v18  ;;  %4426 = vmatpush.xpose.msk.msra.mxu3 %vm991_vm0, %v1390_v47  ;;  %1347 = vmatpush.msrb.mxu1 %v1320_v61 }
 0x43c   :  { %v1219_v35 = vsel %vm5190_vm15, -1e+30, %v1217_v5 }
 0x43d   :  { %v1133_v39 = vpop.permute.xlu1 %1132  ;;  %v1223_v41 = vsel %vm1057_vm13, %v1219_v35, -inf }
 0x43e   :  { %1224 = vmax.xlane.f32.xlu1 %v1223_v41  ;;  %1153 = vmatpush.msra.mxu0 %v1133_v39 }
 0x441   :  { %4427 = vmatmul.msk.f32.vlgmr.msra.gmra.mxu3 %vm991_vm0, %v1388_v30 }
 0x457   :  { %1495 = vrot.lane.b32.xlu1 %v5130_v14, %s4845_s23 }
 0x45f   :  { %1415 = vrot.lane.b32.xlu1 %v5139_v33, %s4843_s2 }
 0x467   :  { %1611 = vrot.lane.b32.xlu1 %v5139_v33, %s4846_s24 }
 0x488   :  { %v1075_v42 = vpop.xlane.xlu0 %1074 }
 0x489   :  { %4609 = vrcp.f32 %v1075_v42  ;;  %v1102_v51 = vand.u32 2147483648, %v1075_v42  ;;  %v1100_v53 = vand.u32 2147483647, %v1075_v42  ;;  %vm1096_vm4 = vweird.f32 %v1075_v42 }
 0x48b   :  { %v1103_v33 = vor.u32 1.1754944e-38, %v1102_v51  ;;  %vm1101_vm7 = vcmp.eq.f32.partialorder %v1100_v53, 8.507059e+37 }
 0x48f   :  { %v4610_v43 = vpop.eup %4609 }
 0x490   :  { %v1092_v46 = vmul.f32 %v4610_v43, %v1075_v42  ;;  %vm1097_vm1 = vweird.f32 %v4610_v43 }
 0x491   :  { %vm1098_vm5 = vmor %vm1096_vm4, %vm1097_vm1 }
 0x492   :  { %v1093_v36 = vsub.f32 1.0, %v1092_v46 }
 0x494   :  { %v1094_v52 = vmul.f32 %v4610_v43, %v1093_v36 }
 0x496   :  { %v1095_v29 = vadd.f32 %v4610_v43, %v1094_v52 }
 0x498   :  { %v1099_v38 = vsel %vm1098_vm5, %v4610_v43, %v1095_v29 }
 0x499   :  { %v1104_v58 = vsel %vm1101_vm7, %v1103_v33, %v1099_v38 }
 0x49a   :  { %v1105_v54 = vmul.f32 %v5207_v6, %v1104_v58  ;;  %v1548_v58 = vld [vmem:[#allocation2 + $0x120] sm:$0x3] }
 0x49b   :  { %v1295_v56 = vpop.permute.xlu0 %1294  ;;  %4432 = vmatpush.msk.msra.mxu1 %vm1328_vm6, %v1548_v58 }
 0x49c   :  { %4413 = vmatmul.msk.f32.vlgmr.msra.gmra.mxu0 %vm1057_vm13, %v1105_v54  ;;  %v1547_v54 = vld [vmem:[#allocation2 + $0x110] sm:$0xff] }
 0x49d   :  { %1315 = vmatpush.msrb.mxu0 %v1295_v56  ;;  %1573 = vmatpush.msra.mxu1 %v1547_v54 }
 0x4b1   :  { %v1225_v62 = vpop.xlane.xlu1 %1224 }
 0x4b2   :  { %v1227_v37 = vsub.f32 %v1219_v35, %v1225_v62 }
 0x4b4   :  { %v1230_v25 = vmul.f32 1.442695, %v1227_v37  ;;  %v1129_v3 = vpop.f32.mrf.mxu3 }
 0x4b5   :  { %4424 = vmatmul.msk.f32.vlgmr.msrb.gmra.mxu2 %vm991_vm0, %v1129_v3 }
 0x4b6   :  { %4611 = vpow2.f32 %v1230_v25 }
 0x4bc   :  { %v4612_v49 = vpop.eup %4611  ;;  %v1291_v60 = vpop.f32.mrf.mxu3 }
 0x4bd   :  { %4421 = vmatmul.msk.f32.vlgmr.msrb.gmra.mxu1 %vm991_vm0, %v1291_v60  ;;  %v1235_v7 = vsel %vm1057_vm13, %v4612_v49, 0.0 }
 0x4be   :  { %1236 = vadd.xlane.f32.xlu0 %v1235_v7 }
 0x4c4   :  { %v1412_v6 = vpop.f32.mrf.mxu3 }
 0x4c5   :  { %v1443_v22 = vmul.f32 0.31622776, %v1412_v6 }
 0x4c7   :  { %v1445_v24 = vsel %vm5165_vm12, -1e+30, %v1443_v22 }
 0x4c8   :  { %v1447_v9 = vsel %vm1057_vm13, %v1445_v24, -inf }
 0x4c9   :  { %1448 = vmax.xlane.f32.xlu2 %v1447_v9  ;;  %v1496_v57 = vpop.permute.xlu1 %1495 }
 0x4ca   :  { %1516 = vmatpush.msrb.mxu3 %v1496_v57 }
 0x4d1   :  { %v1416_v55 = vpop.permute.xlu1 %1415 }
 0x4d2   :  { %1585 = vrot.lane.b32.xlu0 %v5130_v14, %s4847_s25 }
 0x4d9   :  { %v1612_v38 = vpop.permute.xlu1 %1611 }
 0x4da   :  { %1613 = vrot.lane.b32.xlu0 %v5142_v26, %s4847_s25 }
 0x4e1   :  { %1417 = vrot.lane.b32.xlu2 %v5142_v26, %s4844_s22 }
 0x519   :  { %v1155_v11 = vpop.f32.mrf.mxu0 }
 0x51a   :  { %4425 = vmatmul.msk.f32.gmra.mxu2 %vm991_vm0, %v1155_v11 }
 0x531   :  { %v1237_v12 = vpop.xlane.xlu0 %1236 }
 0x532   :  { %4613 = vrcp.f32 %v1237_v12  ;;  %v1264_v15 = vand.u32 2147483648, %v1237_v12  ;;  %v1262_v17 = vand.u32 2147483647, %v1237_v12  ;;  %vm1258_vm2 = vweird.f32 %v1237_v12 }
 0x534   :  { %v1265_v34 = vor.u32 1.1754944e-38, %v1264_v15  ;;  %vm1263_vm1 = vcmp.eq.f32.partialorder %v1262_v17, 8.507059e+37 }
 0x538   :  { %v4614_v13 = vpop.eup %4613  ;;  %v5257_v56 = vpop.f32.mrf.mxu2 }
 0x539   :  { %v1254_v59 = vmul.f32 %v4614_v13, %v1237_v12  ;;  %vm1259_vm8 = vweird.f32 %v4614_v13 }
 0x53a   :  { %vm1260_vm11 = vmor %vm1258_vm2, %vm1259_vm8 }
 0x53b   :  { %v1255_v2 = vsub.f32 1.0, %v1254_v59 }
 0x53c   :  { %v1449_v16 = vpop.xlane.xlu2 %1448 }
 0x53d   :  { %v1256_v4 = vmul.f32 %v4614_v13, %v1255_v2  ;;  %v1453_v19 = vsub.f32 %v1445_v24, %v1449_v16 }
 0x53f   :  { %v1257_v20 = vadd.f32 %v4614_v13, %v1256_v4  ;;  %v1455_v21 = vmul.f32 1.442695, %v1453_v19 }
 0x541   :  { %v1261_v0 = vsel %vm1260_vm11, %v4614_v13, %v1257_v20  ;;  %4615 = vpow2.f32 %v1455_v21 }
 0x542   :  { %v1266_v8 = vsel %vm1263_vm1, %v1265_v34, %v1261_v0 }
 0x543   :  { %v1267_v1 = vmul.f32 %v4612_v49, %v1266_v8 }
 0x544   :  { %v1418_v44 = vpop.permute.xlu2 %1417  ;;  %v1586_v28 = vpop.permute.xlu0 %1585 }
 0x545   :  { %4419 = vmatmul.msk.f32.vlgmr.msrb.gmra.mxu0 %vm1057_vm13, %v1267_v1  ;;  %4435 = vmatpush.xpose.msk.msra.mxu2 %vm991_vm0, %v1586_v28 }
 0x546   :  { %4428 = vmatpush.xpose.msk.msra.mxu0 %vm991_vm0, %v1418_v44 }
 0x547   :  { %v4616_v30 = vpop.eup %4615 }
 0x548   :  { %v1459_v32 = vsel %vm1057_vm13, %v4616_v30, 0.0 }
 0x549   :  { %1460 = vadd.xlane.f32.xlu2 %v1459_v32 }
 0x54c   :  { %v1614_v47 = vpop.permute.xlu0 %1613 }
 0x54d   :  { %4429 = vmatmul.msk.f32.vlgmr.msra.gmra.mxu0 %vm991_vm0, %v1416_v55  ;;  %4437 = vmatpush.xpose.msk.msra.mxu3 %vm991_vm0, %v1614_v47 }
 0x561   :  { %1583 = vrot.lane.b32.xlu2 %v5113_v10, %s4846_s24 }
 0x59d   :  { %v5259_v61 = vpop.f32.mrf.mxu2 }
 0x5bc   :  { %v1461_v18 = vpop.xlane.xlu2 %1460 }
 0x5bd   :  { %4617 = vrcp.f32 %v1461_v18  ;;  %v1476_v43 = vand.u32 2147483648, %v1461_v18  ;;  %v1474_v36 = vand.u32 2147483647, %v1461_v18  ;;  %vm1470_vm5 = vweird.f32 %v1461_v18 }
 0x5bf   :  { %v1477_v10 = vor.u32 1.1754944e-38, %v1476_v43  ;;  %vm1475_vm8 = vcmp.eq.f32.partialorder %v1474_v36, 8.507059e+37 }
 0x5c2   :  { %v1317_v5 = vpop.f32.mrf.mxu0 }
 0x5c3   :  { %v4618_v35 = vpop.eup %4617  ;;  %4422 = vmatmul.msk.f32.gmra.mxu1 %vm991_vm0, %v1317_v5 }
 0x5c4   :  { %v1466_v39 = vmul.f32 %v4618_v35, %v1461_v18  ;;  %v1584_v41 = vpop.permute.xlu2 %1583  ;;  %vm1471_vm4 = vweird.f32 %v4618_v35 }
 0x5c5   :  { %4436 = vmatmul.msk.f32.vlgmr.msra.gmra.mxu2 %vm991_vm0, %v1584_v41  ;;  %vm1472_vm7 = vmor %vm1470_vm5, %vm1471_vm4 }
 0x5c6   :  { %v1467_v42 = vsub.f32 1.0, %v1466_v39  ;;  %v4579_v39 = vpack.i.bf16 %v5142_v26, %v5130_v14 }
 0x5c8   :  { %v1468_v46 = vmul.f32 %v4618_v35, %v1467_v42 }
 0x5ca   :  { %v1469_v63 = vadd.f32 %v4618_v35, %v1468_v46  ;;  %v1440_v51 = vpop.f32.mrf.mxu0 }
 0x5cb   :  { %v1444_v52 = vmul.f32 0.31622776, %v1440_v51  ;;  %v1840_v51 = vld [vmem:[#allocation2 + $0x1a0] sm:$0x7f] }
 0x5cc   :  { %v1473_v53 = vsel %vm1472_vm7, %v4618_v35, %v1469_v63 }
 0x5cd   :  { %v1478_v50 = vsel %vm1475_vm8, %v1477_v10, %v1473_v53  ;;  %v1446_v29 = vsel %vm5190_vm15, -1e+30, %v1444_v52  ;;  %v1899_v10 = vld [vmem:[#allocation2 + $0x210] sm:$0x7f] }
 0x5ce   :  { %v1450_v48 = vsel %vm1057_vm13, %v1446_v29, -inf  ;;  %v1479_v33 = vmul.f32 %v4616_v30, %v1478_v50 }
 0x5cf   :  { %1451 = vmax.xlane.f32.xlu0 %v1450_v48  ;;  %v1744_v48 = vld [vmem:[#allocation2 + $0x140] sm:$0x3] }
 0x5d0   :  { %4430 = vmatmul.msk.f32.vlgmr.msrb.gmra.mxu3 %vm1057_vm13, %v1479_v33 }
 0x5d1   :  { %4441 = vmatpush.msk.msrb.mxu3 %vm1328_vm6, %v1744_v48  ;;  %v1869_v48 = vld [vmem:[#allocation2 + $0x200] sm:$0xff] }
 0x5d2   :  { %1887 = vmatpush.msrb.mxu1 %v1869_v48 }
 0x5d8   :  { %4438 = vmatmul.msk.f32.vlgmr.msra.gmra.mxu3 %vm991_vm0, %v1612_v38 }
 0x642   :  { %v1452_v62 = vpop.xlane.xlu0 %1451 }
 0x643   :  { %v1454_v37 = vsub.f32 %v1446_v29, %v1452_v62 }
 0x645   :  { %v1457_v25 = vmul.f32 1.442695, %v1454_v37 }
 0x647   :  { %4619 = vpow2.f32 %v1457_v25 }
 0x648   :  { %v1608_v3 = vpop.f32.mrf.mxu2 }
 0x649   :  { %v1639_v49 = vmul.f32 0.31622776, %v1608_v3 }
 0x64b   :  { %v1641_v60 = vsel %vm5165_vm12, -1e+30, %v1639_v49 }
 0x64c   :  { %v1643_v7 = vsel %vm1057_vm13, %v1641_v60, -inf }
 0x64d   :  { %v4620_v6 = vpop.eup %4619  ;;  %1644 = vmax.xlane.f32.xlu2 %v1643_v7 }
 0x64e   :  { %v1462_v22 = vsel %vm1057_vm13, %v4620_v6, 0.0 }
 0x64f   :  { %1463 = vadd.xlane.f32.xlu0 %v1462_v22 }
 0x653   :  { %v1518_v24 = vpop.f32.mrf.mxu3 }
 0x654   :  { %4433 = vmatmul.msk.f32.vlgmr.msra.gmra.mxu1 %vm991_vm0, %v1518_v24 }
 0x65b   :  { %v1636_v9 = vpop.f32.mrf.mxu3 }
 0x65c   :  { %v1640_v57 = vmul.f32 0.31622776, %v1636_v9 }
 0x65e   :  { %v1642_v11 = vsel %vm5190_vm15, -1e+30, %v1640_v57 }
 0x65f   :  { %v1646_v12 = vsel %vm1057_vm13, %v1642_v11, -inf }
 0x660   :  { %1647 = vmax.xlane.f32.xlu1 %v1646_v12 }
 0x663   :  { %1521 = vrot.lane.b32.xlu0 %v5142_v26, %s4845_s23 }
 0x6c0   :  { %v1645_v13 = vpop.xlane.xlu2 %1644 }
 0x6c1   :  { %v1649_v59 = vsub.f32 %v1641_v60, %v1645_v13  ;;  %v1841_v13 = vld [vmem:[#allocation2 + $0x1b0] ss:$0 sm:$0xff] }
 0x6c2   :  { %v1464_v2 = vpop.xlane.xlu0 %1463 }
 0x6c3   :  { %v1651_v15 = vmul.f32 1.442695, %v1649_v59  ;;  %4621 = vrcp.f32 %v1464_v2  ;;  %v1491_v21 = vand.u32 2147483648, %v1464_v2  ;;  %v1489_v0 = vand.u32 2147483647, %v1464_v2 }
 0x6c4   :  { %vm1485_vm11 = vweird.f32 %v1464_v2 }
 0x6c5   :  { %4623 = vpow2.f32 %v1651_v15  ;;  %v1492_v1 = vor.u32 1.1754944e-38, %v1491_v21  ;;  %vm1490_vm4 = vcmp.eq.f32.partialorder %v1489_v0, 8.507059e+37  ;;  %v1779_v0 = vld [vmem:[#allocation2 + $0x150] ss:$0 sm:$0xff] }
 0x6c9   :  { %v4622_v16 = vpop.eup %4621 }
 0x6ca   :  { %v1481_v4 = vmul.f32 %v4622_v16, %v1464_v2  ;;  %vm1486_vm2 = vweird.f32 %v4622_v16 }
 0x6cb   :  { %v4624_v17 = vpop.eup %4623  ;;  %vm1487_vm1 = vmor %vm1485_vm11, %vm1486_vm2 }
 0x6cc   :  { %v1482_v19 = vsub.f32 1.0, %v1481_v4  ;;  %v1655_v20 = vsel %vm1057_vm13, %v4624_v17, 0.0 }
 0x6cd   :  { %1656 = vadd.xlane.f32.xlu2 %v1655_v20 }
 0x6ce   :  { %v1483_v34 = vmul.f32 %v4622_v16, %v1482_v19 }
 0x6d0   :  { %v1484_v8 = vadd.f32 %v4622_v16, %v1483_v34 }
 0x6d2   :  { %v1488_v44 = vsel %vm1487_vm1, %v4622_v16, %v1484_v8 }
 0x6d3   :  { %v1493_v28 = vsel %vm1490_vm4, %v1492_v1, %v1488_v44  ;;  %v1648_v30 = vpop.xlane.xlu1 %1647 }
 0x6d4   :  { %v1650_v32 = vsub.f32 %v1642_v11, %v1648_v30  ;;  %v1494_v55 = vmul.f32 %v4620_v6, %v1493_v28  ;;  %v1743_v11 = vld [vmem:[#allocation2 + $0x130] sm:$0xff] }
 0x6d5   :  { %v1522_v47 = vpop.permute.xlu0 %1521  ;;  %1769 = vmatpush.msrb.mxu3 %v1743_v11  ;;  %v1783_v11 = vld [vmem:[#allocation2 + $0x170] ss:$0 sm:$0xff] }
 0x6d6   :  { %v1653_v18 = vmul.f32 1.442695, %v1650_v32  ;;  %1542 = vmatpush.msrb.mxu0 %v1522_v47 }
 0x6d7   :  { %4431 = vmatmul.msk.f32.vlgmr.msrb.gmra.mxu0 %vm1057_vm13, %v1494_v55 }
 0x6d8   :  { %4625 = vpow2.f32 %v1653_v18 }
 0x6de   :  { %v4626_v5 = vpop.eup %4625 }
 0x6df   :  { %v1658_v35 = vsel %vm1057_vm13, %v4626_v5, 0.0 }
 0x6e0   :  { %1659 = vadd.xlane.f32.xlu1 %v1658_v35 }
 0x6e5   :  { %4580 = vrot.lane.b32.xlu2 %v4579_v39, %s4848_s26 }
 0x740   :  { %v1657_v41 = vpop.xlane.xlu2 %1656 }
 0x741   :  { %4627 = vrcp.f32 %v1657_v41  ;;  %v1672_v53 = vand.u32 2147483648, %v1657_v41  ;;  %v1670_v29 = vand.u32 2147483647, %v1657_v41  ;;  %vm1666_vm7 = vweird.f32 %v1657_v41 }
 0x743   :  { %v1673_v26 = vor.u32 1.1754944e-38, %v1672_v53  ;;  %vm1671_vm2 = vcmp.eq.f32.partialorder %v1670_v29, 8.507059e+37 }
 0x747   :  { %v4628_v42 = vpop.eup %4627 }
 0x748   :  { %v1662_v43 = vmul.f32 %v4628_v42, %v1657_v41  ;;  %v4581_v46 = vpop.permute.xlu2 %4580  ;;  %vm1667_vm5 = vweird.f32 %v4628_v42 }
 0x749   :  { %v4583_v36 = vunpack.i.h.bf16 %v4581_v46  ;;  %v4582_v63 = vunpack.i.l.bf16 %v4581_v46  ;;  %vm1668_vm8 = vmor %vm1666_vm7, %vm1667_vm5  ;;  %vm1784_vm5 = vcmask 326656  }
 0x74a   :  { %v1663_v52 = vsub.f32 1.0, %v1662_v43 }
 0x74b   :  { %1712 = vmatpush.msra.mxu0 %v4582_v63  ;;  %1738 = vmatpush.msrb.mxu2 %v4583_v36 }
 0x74c   :  { %v1664_v50 = vmul.f32 %v4628_v42, %v1663_v52 }
 0x74d   :  { %4444 = vmatpush.msk.msrb.mxu0 %vm5637_vm3, %v1840_v51  ;;  %4448 = vmatpush.msk.msra.mxu2 %vm5637_vm3, %v1899_v10 }
 0x74e   :  { %v1665_v14 = vadd.f32 %v4628_v42, %v1664_v50 }
 0x750   :  { %v1669_v33 = vsel %vm1668_vm8, %v4628_v42, %v1665_v14 }
 0x751   :  { %v1674_v38 = vsel %vm1671_vm2, %v1673_v26, %v1669_v33  ;;  %v1868_v33 = vld [vmem:[#allocation2 + $0x1f0] sm:$0xff] }
 0x752   :  { %v1675_v58 = vmul.f32 %v4624_v17, %v1674_v38  ;;  %v1349_v17 = vpop.f32.mrf.mxu1  ;;  %1888 = vmatpush.msrb.mxu1 %v1868_v33  ;;  %v1867_v38 = vld [vmem:[#allocation2 + $0x1e0] sm:$0xff] }
 0x753   :  { %v1660_v54 = vpop.xlane.xlu1 %1659  ;;  %v1382_v20 = vadd.f32 %v5257_v56, %v1349_v17  ;;  %v4850_v56 = vmov 40.0  }
 0x754   :  { %4629 = vrcp.f32 %v1660_v54  ;;  %v1544_v62 = vpop.f32.mrf.mxu0  ;;  %4439 = vmatmul.msk.f32.vlgmr.msra.gmra.mxu0 %vm1057_vm13, %v1675_v58  ;;  %v1687_v49 = vand.u32 2147483648, %v1660_v54  ;;  %v1685_v7 = vand.u32 2147483647, %v1660_v54  ;;  %vm1681_vm6 = vweird.f32 %v1660_v54  ;;  %1889 = vmatpush.msrb.mxu1 %v1867_v38  ;;  %v1866_v58 = vld [vmem:[#allocation2 + $0x1d0] sm:$0xff] }
 0x755   :  { %4434 = vmatmul.msk.f32.gmra.mxu1 %vm991_vm0, %v1544_v62  ;;  %4631 = vrcp.f32 %v4850_v56 }
 0x756   :  { %v1688_v22 = vor.u32 1.1754944e-38, %v1687_v49  ;;  %vm1686_vm4 = vcmp.eq.f32.partialorder %v1685_v7, 8.507059e+37  ;;  %1890 = vmatpush.msrb.mxu1 %v1866_v58 }
 0x75a   :  { %v4630_v37 = vpop.eup %4629 }
 0x75b   :  { %v1677_v25 = vmul.f32 %v4630_v37, %v1660_v54  ;;  %vm1682_vm11 = vweird.f32 %v4630_v37  ;;  %v4632_v35 = vpop.eup %4631  ;;  %v1865_v54 = vld [vmem:[#allocation2 + $0x1c0] sm:$0xff] }
 0x75c   :  { %4445 = vmatmul.msk.f32.vlgmr.msrb.gmra.mxu0 %vm948_vm9, %v5044_v23  ;;  %vm1683_vm1 = vmor %vm1681_vm6, %vm1682_vm11  ;;  %v1792_v39 = vmul.f32 40.0, %v4632_v35  ;;  %1891 = vmatpush.msrb.mxu1 %v1865_v54 }
 0x75d   :  { %v1678_v3 = vsub.f32 1.0, %v1677_v25 }
 0x75e   :  { %v1793_v41 = vsub.f32 1.0, %v1792_v39 }
 0x75f   :  { %v1679_v60 = vmul.f32 %v4630_v37, %v1678_v3 }
 0x760   :  { %v1794_v42 = vmul.f32 %v4632_v35, %v1793_v41 }
 0x761   :  { %v1680_v6 = vadd.f32 %v4630_v37, %v1679_v60 }
 0x762   :  { %v1795_v43 = vadd.f32 %v4632_v35, %v1794_v42 }
 0x763   :  { %v1684_v24 = vsel %vm1683_vm1, %v4630_v37, %v1680_v6 }
 0x764   :  { %v1689_v9 = vsel %vm1686_vm4, %v1688_v22, %v1684_v24  ;;  %v1782_v24 = vld [vmem:[#allocation2 + $0x160] ss:$0 sm:$0xff]  ;;  %vm1994_vm4 = vcmask 57344  }
 0x765   :  { %v1690_v57 = vmul.f32 %v4626_v5, %v1689_v9 }
 0x767   :  { %4440 = vmatmul.msk.f32.vlgmr.msrb.gmra.mxu2 %vm1057_vm13, %v1690_v57 }
 0x76f   :  { %4449 = vmatmul.msk.f32.vlgmr.msra.gmra.mxu2 %vm948_vm9, %v5044_v23  ;;  %v1352_v23 = vpop.f32.mrf.mxu1 }
 0x770   :  { %v1385_v30 = vadd.f32 %v5259_v61, %v1352_v23 }
 0x777   :  { %v1575_v19 = vpop.f32.mrf.mxu1 }
 0x778   :  { %v1581_v21 = vadd.f32 %v1575_v19, %v1382_v20 }
 0x7d1   :  { %v1714_v12 = vpop.f32.mrf.mxu0 }
 0x7d2   :  { %4442 = vmatmul.msk.f32.vlgmr.msrb.gmra.mxu3 %vm991_vm0, %v1714_v12  ;;  %v1578_v28 = vpop.f32.mrf.mxu1 }
 0x7d3   :  { %v1582_v32 = vadd.f32 %v1578_v28, %v1385_v30 }
 0x7d9   :  { %v1862_v59 = vpop.f32.mrf.mxu0 }
 0x7da   :  { %v5287_v2 = vadd.f32 %v1862_v59, %v1841_v13 }
 0x7dc   :  { %v1933_v15 = vrot.slane %v5287_v2, 1  ;;  %v1934_v26 = vperm.slane %v5287_v2, 0 }
 0x7de   :  { %v1962_v16 = vperm.slane %v1933_v15, 0 }
 0x7e0   :  { %1963 = vrot.lane.b32.xlu2 %v1962_v16, %s4849_s28 }
 0x7ea   :  { %v1740_v4 = vpop.f32.mrf.mxu2 }
 0x7eb   :  { %4443 = vmatmul.msk.f32.gmra.mxu3 %vm991_vm0, %v1740_v4  ;;  %vm1796_vm0 = vweird.f32 %v4632_v35 }
 0x7ec   :  { %v5296_v46 = vsel %vm1796_vm0, %v4632_v35, %v1795_v43 }
 0x7f2   :  { %v1921_v28 = vpop.f32.mrf.mxu2 }
 0x83a   :  { %v1964_v41 = vpop.permute.xlu2 %1963 }
 0x855   :  { %v1771_v34 = vpop.f32.mrf.mxu3 }
 0x856   :  { %v1777_v8 = vadd.f32 %v1771_v34, %v1581_v21 }
 0x858   :  { %v1780_v1 = vadd.f32 %v1779_v0, %v1777_v8 }
 0x85a   :  { %v1785_v44 = vsel %vm1784_vm5, %v1780_v1, 0.0 }
 0x85b   :  { %1786 = vadd.xlane.f32.xlu1 %v1785_v44  ;;  %v1900_v44 = vld [vmem:[#allocation2 + $0x220] ss:$0 sm:$0xff] }
 0x85c   :  { %v1922_v30 = vadd.f32 %v1921_v28, %v1900_v44  ;;  %v2273_v44 = vld [vmem:[#allocation2 + $0x320] sm:$0xff]  ;;  %v2272_v28 = vld [vmem:[#allocation2 + $0x310] sm:$0xff] }
 0x86e   :  { %v1774_v55 = vpop.f32.mrf.mxu3 }
 0x86f   :  { %v1778_v47 = vadd.f32 %v1774_v55, %v1582_v32  ;;  %v1926_v32 = vperm.slane %v1922_v30, 0 }
 0x871   :  { %v1781_v18 = vadd.f32 %v1779_v0, %v1778_v47 }
 0x873   :  { %v1788_v5 = vsel %vm1784_vm5, %v1781_v18, 0.0 }
 0x874   :  { %1789 = vadd.xlane.f32.xlu1 %v1788_v5  ;;  %v1925_v5 = vrot.slane %v1922_v30, 1  ;;  %v2271_v30 = vld [vmem:[#allocation2 + $0x300] sm:$0xff] }
 0x876   :  { %v1927_v56 = vperm.slane %v1925_v5, 0  ;;  %v2301_v5 = vld [vmem:[#allocation2 + $0x370] sm:$0xff] }
 0x8ce   :  { %v1787_v36 = vpop.xlane.xlu1 %1786 }
 0x8cf   :  { %v1798_v61 = vmul.f32 %v5296_v46, %v1787_v36 }
 0x8d1   :  { %v1800_v63 = vsub.f32 %v1780_v1, %v1798_v61 }
 0x8d3   :  { %v1802_v51 = vmul.f32 %v1800_v63, %v1800_v63 }
 0x8d5   :  { %v1804_v10 = vsel %vm1784_vm5, %v1802_v51, 0.0 }
 0x8d6   :  { %1805 = vadd.xlane.f32.xlu0 %v1804_v10 }
 0x8e7   :  { %v1790_v52 = vpop.xlane.xlu1 %1789 }
 0x8e8   :  { %v1799_v53 = vmul.f32 %v5296_v46, %v1790_v52 }
 0x8ea   :  { %v1801_v50 = vsub.f32 %v1781_v18, %v1799_v53 }
 0x8ec   :  { %v1803_v29 = vmul.f32 %v1801_v50, %v1801_v50 }
 0x8ee   :  { %v1807_v14 = vsel %vm1784_vm5, %v1803_v29, 0.0 }
 0x8ef   :  { %1808 = vadd.xlane.f32.xlu1 %v1807_v14 }
 0x908   :  { %1935 = vrot.lane.b32.xlu1 %v1934_v26, %s4849_s28 }
 0x949   :  { %v1806_v62 = vpop.xlane.xlu0 %1805 }
 0x94a   :  { %v1810_v37 = vmul.f32 %v1806_v62, %v5296_v46 }
 0x94c   :  { %v1812_v25 = vadd.f32 1e-05, %v1810_v37 }
 0x94e   :  { %4633 = vrsqrt.f32 %v1812_v25  ;;  %vm1820_vm8 = vweird.f32 %v1812_v25 }
 0x954   :  { %v4634_v3 = vpop.eup %4633 }
 0x955   :  { %v1815_v49 = vmul.f32 %v4634_v3, %v1812_v25  ;;  %vm1821_vm7 = vweird.f32 %v4634_v3 }
 0x956   :  { %vm1822_vm2 = vmor %vm1820_vm8, %vm1821_vm7 }
 0x957   :  { %v1816_v60 = vmul.f32 %v4634_v3, %v1815_v49 }
 0x959   :  { %v1817_v7 = vmul.f32 0.5, %v1816_v60 }
 0x95b   :  { %v1818_v6 = vsub.f32 1.5, %v1817_v7 }
 0x95d   :  { %v1819_v22 = vmul.f32 %v4634_v3, %v1818_v6 }
 0x95f   :  { %v1823_v9 = vsel %vm1822_vm2, %v4634_v3, %v1819_v22 }
 0x960   :  { %v1834_v57 = vmul.f32 %v1823_v9, %v1800_v63 }
 0x962   :  { %v1836_v12 = vmul.f32 %v1834_v57, %v1782_v24  ;;  %v1809_v13 = vpop.xlane.xlu1 %1808 }
 0x963   :  { %v1811_v59 = vmul.f32 %v1809_v13, %v5296_v46 }
 0x964   :  { %v5306_v15 = vadd.f32 %v1836_v12, %v1783_v11 }
 0x965   :  { %v1813_v16 = vadd.f32 1e-05, %v1811_v59 }
 0x966   :  { %4446 = vmatmul.msk.f32.vlgmr.msrb.gmra.mxu1 %vm1784_vm5, %v5306_v15 }
 0x967   :  { %4635 = vrsqrt.f32 %v1813_v16  ;;  %vm1830_vm6 = vweird.f32 %v1813_v16 }
 0x96d   :  { %v4636_v4 = vpop.eup %4635 }
 0x96e   :  { %v1825_v17 = vmul.f32 %v4636_v4, %v1813_v16  ;;  %vm1831_vm11 = vweird.f32 %v4636_v4 }
 0x96f   :  { %vm1832_vm1 = vmor %vm1830_vm6, %vm1831_vm11 }
 0x970   :  { %v1826_v23 = vmul.f32 %v4636_v4, %v1825_v17 }
 0x972   :  { %v1827_v19 = vmul.f32 0.5, %v1826_v23 }
 0x974   :  { %v1828_v20 = vsub.f32 1.5, %v1827_v19 }
 0x976   :  { %v1829_v21 = vmul.f32 %v4636_v4, %v1828_v20 }
 0x978   :  { %v1833_v34 = vsel %vm1832_vm1, %v4636_v4, %v1829_v21 }
 0x979   :  { %v1835_v0 = vmul.f32 %v1833_v34, %v1801_v50 }
 0x97a   :  { %v1936_v18 = vpop.permute.xlu1 %1935 }
 0x97b   :  { %v1837_v8 = vmul.f32 %v1835_v0, %v1782_v24 }
 0x97d   :  { %v5310_v1 = vadd.f32 %v1837_v8, %v1783_v11 }
 0x97f   :  { %4447 = vmatmul.msk.f32.gmra.mxu1 %vm1784_vm5, %v5310_v1 }
 0x9e3   :  { %v1893_v55 = vpop.f32.mrf.mxu1 }
 0x9e4   :  { %v1930_v47 = vadd.f32 %v1926_v32, %v1893_v55  ;;  %v2270_v32 = vld [vmem:[#allocation2 + $0x2f0] sm:$0xff]  ;;  %v2269_v55 = vld [vmem:[#allocation2 + $0x2e0] sm:$0xff] }
 0x9e6   :  { %4450 = vmatpush.xpose.msk.msra.mxu0 %vm948_vm9, %v1930_v47 }
 0x9e9   :  { %4451 = vmatmul.msk.f32.vlgmr.msra.gmra.mxu0 %vm948_vm9, %v1936_v18  ;;  %v2302_v18 = vld [vmem:[#allocation2 + $0x380] sm:$0xff] }
 0x9fc   :  { %v1896_v35 = vpop.f32.mrf.mxu1 }
 0x9fd   :  { %v1931_v39 = vadd.f32 %v1927_v56, %v1896_v35  ;;  %v2300_v56 = vld [vmem:[#allocation2 + $0x360] sm:$0xff]  ;;  %v2299_v35 = vld [vmem:[#allocation2 + $0x350] sm:$0xff] }
 0x9ff   :  { %4452 = vmatpush.xpose.msk.msrb.mxu2 %vm948_vm9, %v1931_v39 }
 0xa02   :  { %4453 = vmatmul.msk.f32.vlgmr.msrb.gmra.mxu2 %vm948_vm9, %v1964_v41 }
 0xa66   :  { %v1959_v42 = vpop.f32.mrf.mxu0 }
 0xa67   :  { %v1990_v43 = vmul.f32 0.37796447, %v1959_v42 }
 0xa69   :  { %v1992_v36 = vsel %vm1047_vm10, -1e+30, %v1990_v43 }
 0xa6a   :  { %v1995_v61 = vsel %vm1994_vm4, %v1992_v36, -inf }
 0xa6b   :  { %1996 = vmax.xlane.f32.xlu2 %v1995_v61  ;;  %v2096_v61 = vld [vmem:[#allocation2 + $0x240] ss:$0 sm:$0xff] }
 0xa83   :  { %2043 = vrot.lane.b32.xlu2 %v1930_v47, %s4849_s28  ;;  %v2095_v47 = vld [vmem:[#allocation2 + $0x230] sm:$0x7f] }
 0xa84   :  { %4456 = vmatpush.msk.msra.mxu1 %vm5637_vm3, %v2095_v47 }
 0xa85   :  { %v1987_v63 = vpop.f32.mrf.mxu2 }
 0xa86   :  { %v1991_v51 = vmul.f32 0.37796447, %v1987_v63  ;;  %2314 = vmatpush.msrb.mxu1 %v2302_v18 }
 0xa88   :  { %v1993_v10 = vsel %vm5636_vm14, -1e+30, %v1991_v51  ;;  %2315 = vmatpush.msrb.mxu1 %v2301_v5 }
 0xa89   :  { %v1998_v52 = vsel %vm1994_vm4, %v1993_v10, -inf }
 0xa8a   :  { %1999 = vmax.xlane.f32.xlu1 %v1998_v52  ;;  %2316 = vmatpush.msrb.mxu1 %v2300_v56 }
 0xa8c   :  { %2317 = vmatpush.msrb.mxu1 %v2299_v35 }
 0xade   :  { %v1997_v53 = vpop.xlane.xlu2 %1996 }
 0xadf   :  { %v2001_v50 = vsub.f32 %v1992_v36, %v1997_v53  ;;  %v4851_v53 = vmov 7.0  }
 0xae1   :  { %v2003_v29 = vmul.f32 1.442695, %v2001_v50 }
 0xae3   :  { %4637 = vpow2.f32 %v2003_v29 }
 0xae6   :  { %v2044_v14 = vpop.permute.xlu2 %2043 }
 0xae7   :  { %2064 = vmatpush.msra.mxu3 %v2044_v14 }
 0xae9   :  { %v4638_v26 = vpop.eup %4637 }
 0xaea   :  { %v2007_v48 = vsel %vm1994_vm4, %v4638_v26, 0.0 }
 0xaeb   :  { %2008 = vadd.xlane.f32.xlu0 %v2007_v48 }
 0xafd   :  { %v2000_v33 = vpop.xlane.xlu1 %1999 }
 0xafe   :  { %v2002_v38 = vsub.f32 %v1993_v10, %v2000_v33 }
 0xb00   :  { %v2005_v58 = vmul.f32 1.442695, %v2002_v38 }
 0xb02   :  { %4639 = vpow2.f32 %v2005_v58 }
 0xb08   :  { %v4640_v54 = vpop.eup %4639 }
 0xb09   :  { %v2010_v62 = vsel %vm1994_vm4, %v4640_v54, 0.0 }
 0xb0a   :  { %2011 = vadd.xlane.f32.xlu0 %v2010_v62 }
 0xb1e   :  { %2069 = vrot.lane.b32.xlu0 %v1931_v39, %s4849_s28  ;;  %v2298_v39 = vld [vmem:[#allocation2 + $0x340] sm:$0xff] }
 0xb1f   :  { %2318 = vmatpush.msrb.mxu1 %v2298_v39  ;;  %v2214_v39 = vld [vmem:[#allocation2 + $0x2d0] ss:$0 sm:$0xff] }
 0xb5e   :  { %v2009_v37 = vpop.xlane.xlu0 %2008 }
 0xb5f   :  { %4641 = vrcp.f32 %v2009_v37  ;;  %v2024_v60 = vand.u32 2147483648, %v2009_v37  ;;  %v2022_v6 = vand.u32 2147483647, %v2009_v37  ;;  %vm2018_vm7 = vweird.f32 %v2009_v37 }
 0xb61   :  { %v2025_v24 = vor.u32 1.1754944e-38, %v2024_v60  ;;  %vm2023_vm2 = vcmp.eq.f32.partialorder %v2022_v6, 8.507059e+37 }
 0xb65   :  { %v4642_v25 = vpop.eup %4641 }
 0xb66   :  { %v2014_v3 = vmul.f32 %v4642_v25, %v2009_v37  ;;  %vm2019_vm0 = vweird.f32 %v4642_v25 }
 0xb67   :  { %vm2020_vm8 = vmor %vm2018_vm7, %vm2019_vm0  ;;  %vm5635_vm7 = vcmask 1041409  }
 0xb68   :  { %v2015_v49 = vsub.f32 1.0, %v2014_v3 }
 0xb6a   :  { %v2016_v7 = vmul.f32 %v4642_v25, %v2015_v49 }
 0xb6c   :  { %v2017_v22 = vadd.f32 %v4642_v25, %v2016_v7 }
 0xb6e   :  { %v2021_v9 = vsel %vm2020_vm8, %v4642_v25, %v2017_v22  ;;  %vm5634_vm8 = vcmask 50176  }
 0xb6f   :  { %v2026_v57 = vsel %vm2023_vm2, %v2025_v24, %v2021_v9  ;;  %v2128_v24 = vld [vmem:[#allocation2 + $0x250] ss:$0 sm:$0xff] }
 0xb70   :  { %v2027_v11 = vmul.f32 %v4638_v26, %v2026_v57 }
 0xb72   :  { %4454 = vmatmul.msk.f32.vlgmr.msra.gmra.mxu3 %vm1057_vm13, %v2027_v11  ;;  %v2129_v11 = vld [vmem:[#allocation2 + $0x260] ss:$0 sm:$0xff] }
 0xb7d   :  { %v2012_v12 = vpop.xlane.xlu0 %2011 }
 0xb7e   :  { %4643 = vrcp.f32 %v2012_v12  ;;  %v2039_v4 = vand.u32 2147483648, %v2012_v12  ;;  %v2037_v23 = vand.u32 2147483647, %v2012_v12  ;;  %vm2033_vm6 = vweird.f32 %v2012_v12 }
 0xb7f   :  { %4645 = vrcp.f32 %v4851_v53 }
 0xb80   :  { %v2040_v20 = vor.u32 1.1754944e-38, %v2039_v4  ;;  %vm2038_vm0 = vcmp.eq.f32.partialorder %v2037_v23, 8.507059e+37  ;;  %v2163_v4 = vld [vmem:[#allocation2 + $0x280] ss:$0 sm:$0xff]  ;;  %v2210_v23 = vld [vmem:[#allocation2 + $0x290] sm:$0xff] }
 0xb84   :  { %v4644_v13 = vpop.eup %4643 }
 0xb85   :  { %v2029_v59 = vmul.f32 %v4644_v13, %v2012_v12  ;;  %vm2034_vm11 = vweird.f32 %v4644_v13  ;;  %v4646_v50 = vpop.eup %4645 }
 0xb86   :  { %vm2035_vm1 = vmor %vm2033_vm6, %vm2034_vm11  ;;  %v2135_v29 = vmul.f32 7.0, %v4646_v50  ;;  %vm2139_vm2 = vweird.f32 %v4646_v50 }
 0xb87   :  { %v2030_v16 = vsub.f32 1.0, %v2029_v59  ;;  %v2213_v59 = vld [vmem:[#allocation2 + $0x2c0] sm:$0xf] }
 0xb88   :  { %v2136_v14 = vsub.f32 1.0, %v2135_v29  ;;  %v2274_v29 = vld [vmem:[#allocation2 + $0x330] ss:$0 sm:$0xff] }
 0xb89   :  { %v2031_v17 = vmul.f32 %v4644_v13, %v2030_v16  ;;  %v2212_v16 = vld [vmem:[#allocation2 + $0x2b0] sm:$0xff] }
 0xb8b   :  { %v2032_v19 = vadd.f32 %v4644_v13, %v2031_v17  ;;  %v2211_v17 = vld [vmem:[#allocation2 + $0x2a0] sm:$0xff] }
 0xb8d   :  { %v2036_v21 = vsel %vm2035_vm1, %v4644_v13, %v2032_v19 }
 0xb8e   :  { %v2041_v34 = vsel %vm2038_vm0, %v2040_v20, %v2036_v21  ;;  %vm5644_vm0 = vcmask 1043456  }
 0xb8f   :  { %v2042_v0 = vmul.f32 %v4640_v54, %v2041_v34  ;;  %v2162_v54 = vld [vmem:[#allocation2 + $0x270] sm:$0x7f]  ;;  %4461 = vmatpush.msk.msrb.mxu3 %vm5644_vm0, %v2213_v59  ;;  %vm5633_vm0 = vcmask 228352  }
 0xb90   :  { %v2070_v8 = vpop.permute.xlu0 %2069  ;;  %4458 = vmatpush.msk.msra.mxu2 %vm5637_vm3, %v2162_v54 }
 0xb91   :  { %2090 = vmatpush.msrb.mxu0 %v2070_v8  ;;  %2235 = vmatpush.msrb.mxu3 %v2212_v16 }
 0xb92   :  { %4455 = vmatmul.msk.f32.vlgmr.msrb.gmra.mxu0 %vm1057_vm13, %v2042_v0 }
 0xb93   :  { %2286 = vmatpush.msra.mxu0 %v2273_v44  ;;  %2236 = vmatpush.msrb.mxu3 %v2211_v17 }
 0xb95   :  { %2287 = vmatpush.msra.mxu0 %v2272_v28  ;;  %2237 = vmatpush.msrb.mxu3 %v2210_v23 }
 0xb97   :  { %2288 = vmatpush.msra.mxu0 %v2271_v30 }
 0xb99   :  { %2289 = vmatpush.msra.mxu0 %v2270_v32 }
 0xb9b   :  { %2290 = vmatpush.msra.mxu0 %v2269_v55 }
 0xb9c   :  { %4463 = vmatmul.msk.f32.vlgmr.msra.gmra.mxu0 %vm1784_vm5, %v5306_v15 }
 0xba4   :  { %4464 = vmatmul.msk.f32.gmra.mxu0 %vm1784_vm5, %v5310_v1 }
 0xbf5   :  { %v2066_v43 = vpop.f32.mrf.mxu3 }
 0xc0f   :  { %v2092_v41 = vpop.f32.mrf.mxu0 }
 0xc10   :  { %v2099_v42 = vrot.slane %v2092_v41, 7 }
 0xc12   :  { %v2101_v36 = vsel %vm5635_vm7, %v2099_v42, %v2066_v43 }
 0xc13   :  { %4457 = vmatmul.msk.f32.vlgmr.msra.gmra.mxu1 %vm948_vm9, %v2101_v36 }
 0xc1b   :  { %4465 = vmatmul.msk.f32.vlgmr.msrb.gmra.mxu1 %vm1784_vm5, %v5306_v15  ;;  %v2137_v15 = vmul.f32 %v4646_v50, %v2136_v14 }
 0xc1d   :  { %v2138_v26 = vadd.f32 %v4646_v50, %v2137_v15 }
 0xc23   :  { %4466 = vmatmul.msk.f32.gmra.mxu1 %vm1784_vm5, %v5310_v1  ;;  %v5346_v1 = vsel %vm2139_vm2, %v4646_v50, %v2138_v26  ;;  %v2292_v50 = vpop.f32.mrf.mxu0  ;;  %v2326_v26 = vld [vmem:[#allocation2 + $0x390] sm:$0x7f] }
 0xc24   :  { %v5360_v14 = vadd.f32 %v2292_v50, %v2274_v29  ;;  %4467 = vmatpush.msk.msrb.mxu2 %vm5637_vm3, %v2326_v26 }
 0xc2b   :  { %v2295_v15 = vpop.f32.mrf.mxu0 }
 0xc90   :  { %v2124_v63 = vpop.f32.mrf.mxu1 }
 0xc91   :  { %v2125_v51 = vadd.f32 %v2124_v63, %v2096_v61 }
 0xc93   :  { %v5342_v10 = vadd.f32 %v2125_v51, %v5287_v2 }
 0xc95   :  { %v2131_v52 = vsel %vm5634_vm8, %v5342_v10, 0.0 }
 0xc96   :  { %2132 = vadd.xlane.f32.xlu0 %v2131_v52 }
 0xd09   :  { %v2133_v48 = vpop.xlane.xlu0 %2132 }
 0xd0a   :  { %v2141_v33 = vmul.f32 %v5346_v1, %v2133_v48 }
 0xd0c   :  { %v2142_v2 = vsub.f32 %v5342_v10, %v2141_v33 }
 0xd0e   :  { %v2143_v38 = vmul.f32 %v2142_v2, %v2142_v2 }
 0xd10   :  { %v2144_v58 = vsel %vm5634_vm8, %v2143_v38, 0.0 }
 0xd11   :  { %2145 = vadd.xlane.f32.xlu1 %v2144_v58 }
 0xd84   :  { %v2146_v62 = vpop.xlane.xlu1 %2145 }
 0xd85   :  { %v2147_v37 = vmul.f32 %v2146_v62, %v5346_v1 }
 0xd87   :  { %v2148_v25 = vadd.f32 1e-05, %v2147_v37 }
 0xd89   :  { %4647 = vrsqrt.f32 %v2148_v25  ;;  %vm2155_vm6 = vweird.f32 %v2148_v25 }
 0xd8f   :  { %v4648_v3 = vpop.eup %4647 }
 0xd90   :  { %v2150_v49 = vmul.f32 %v4648_v3, %v2148_v25  ;;  %vm2156_vm11 = vweird.f32 %v4648_v3 }
 0xd91   :  { %vm2157_vm1 = vmor %vm2155_vm6, %vm2156_vm11 }
 0xd92   :  { %v2151_v60 = vmul.f32 %v4648_v3, %v2150_v49 }
 0xd94   :  { %v2152_v7 = vmul.f32 0.5, %v2151_v60 }
 0xd96   :  { %v2153_v6 = vsub.f32 1.5, %v2152_v7  ;;  %v2244_v7 = vld [vmem:[#allocation2 + $0x190] ss:$0 sm:$0xff] }
 0xd98   :  { %v2154_v22 = vmul.f32 %v4648_v3, %v2153_v6 }
 0xd9a   :  { %v2158_v9 = vsel %vm2157_vm1, %v4648_v3, %v2154_v22  ;;  %v2243_v3 = vld [vmem:[#allocation2 + $0x180] ss:$0 sm:$0xff] }
 0xd9b   :  { %v2159_v57 = vmul.f32 %v2158_v9, %v2142_v2  ;;  %v2327_v9 = vld [vmem:[#allocation2 + $0x3a0] ss:$0 sm:$0xff] }
 0xd9d   :  { %v2160_v12 = vmul.f32 %v2159_v57, %v2128_v24  ;;  %v2320_v24 = vpop.f32.mrf.mxu1 }
 0xd9f   :  { %v2161_v13 = vadd.f32 %v2160_v12, %v2129_v11 }
 0xda1   :  { %4459 = vmatmul.msk.f32.vlgmr.msra.gmra.mxu2 %vm948_vm9, %v2161_v13 }
 0xda5   :  { %v2323_v17 = vpop.f32.mrf.mxu1 }
 0xe24   :  { %v2187_v19 = vpop.f32.mrf.mxu2 }
 0xe25   :  { %v2188_v20 = vadd.f32 %v2187_v19, %v2163_v4 }
 0xe27   :  { %v4460_v21 = vmul.f32 -1.442695, %v2188_v20 }
 0xe29   :  { %4649 = vpow2.f32 %v4460_v21 }
 0xe2f   :  { %v4650_v34 = vpop.eup %4649 }
 0xe30   :  { %v2193_v0 = vadd.f32 1.0, %v4650_v34 }
 0xe32   :  { %4651 = vrcp.f32 %v2193_v0  ;;  %v2205_v30 = vand.u32 2147483648, %v2193_v0  ;;  %v2203_v55 = vand.u32 2147483647, %v2193_v0  ;;  %vm2199_vm11 = vweird.f32 %v2193_v0 }
 0xe34   :  { %v2206_v18 = vor.u32 1.1754944e-38, %v2205_v30  ;;  %vm2204_vm1 = vcmp.eq.f32.partialorder %v2203_v55, 8.507059e+37 }
 0xe38   :  { %v4652_v8 = vpop.eup %4651 }
 0xe39   :  { %v2195_v44 = vmul.f32 %v4652_v8, %v2193_v0  ;;  %vm2200_vm2 = vweird.f32 %v4652_v8 }
 0xe3a   :  { %vm2201_vm6 = vmor %vm2199_vm11, %vm2200_vm2 }
 0xe3b   :  { %v2196_v28 = vsub.f32 1.0, %v2195_v44 }
 0xe3d   :  { %v2197_v32 = vmul.f32 %v4652_v8, %v2196_v28 }
 0xe3f   :  { %v2198_v47 = vadd.f32 %v4652_v8, %v2197_v32 }
 0xe41   :  { %v2202_v5 = vsel %vm2201_vm6, %v4652_v8, %v2198_v47 }
 0xe42   :  { %v2207_v56 = vsel %vm2204_vm1, %v2206_v18, %v2202_v5 }
 0xe43   :  { %v2209_v35 = vmul.f32 %v2207_v56, %v2188_v20 }
 0xe45   :  { %4462 = vmatmul.msk.f32.vlgmr.msrb.gmra.mxu3 %vm5633_vm0, %v2209_v35 }
 0xec8   :  { %v2239_v41 = vpop.f32.mrf.mxu3 }
 0xec9   :  { %v2240_v42 = vadd.f32 %v2239_v41, %v2214_v39 }
 0xecb   :  { %v2242_v43 = vadd.f32 %v2240_v42, %v5342_v10  ;;  %v5364_v10 = vadd.f32 %v2295_v15, %v2274_v29 }
 0xecd   :  { %v2245_v36 = vsel %vm5634_vm8, %v2242_v43, 0.0 }
 0xece   :  { %2246 = vadd.xlane.f32.xlu2 %v2245_v36  ;;  %v2526_v36 = vld [vmem:[#allocation2 + $0x3f0] sm:$0xff] }
 0xecf   :  { %2545 = vmatpush.msra.mxu1 %v2526_v36  ;;  %v2611_v36 = vld [vmem:[#allocation2 + $0x440] sm:$0xff] }
 0xf41   :  { %v2247_v61 = vpop.xlane.xlu2 %2246 }
 0xf42   :  { %v2248_v63 = vmul.f32 %v2247_v61, %v5346_v1  ;;  %v2525_v61 = vld [vmem:[#allocation2 + $0x3e0] sm:$0xff] }
 0xf43   :  { %2546 = vmatpush.msra.mxu1 %v2525_v61  ;;  %v2612_v61 = vld [vmem:[#allocation2 + $0x448] sm:$0xff] }
 0xf44   :  { %v2249_v51 = vsub.f32 %v2242_v43, %v2248_v63 }
 0xf46   :  { %v2250_v52 = vmul.f32 %v2249_v51, %v2249_v51 }
 0xf48   :  { %v2251_v53 = vsel %vm5634_vm8, %v2250_v52, 0.0 }
 0xf49   :  { %2252 = vadd.xlane.f32.xlu1 %v2251_v53 }
 0xf62   :  { %2363 = vrot.lane.b32.xlu1 %v5360_v14, %s4840_s15 }
 0xf6a   :  { %2391 = vrot.lane.b32.xlu1 %v5364_v10, %s4840_s15 }
 0xfbc   :  { %v2253_v48 = vpop.xlane.xlu1 %2252 }
 0xfbd   :  { %v2254_v33 = vmul.f32 %v2253_v48, %v5346_v1 }
 0xfbf   :  { %v2255_v2 = vadd.f32 1e-05, %v2254_v33 }
 0xfc1   :  { %4653 = vrsqrt.f32 %v2255_v2  ;;  %vm2262_vm11 = vweird.f32 %v2255_v2 }
 0xfc7   :  { %v4654_v38 = vpop.eup %4653 }
 0xfc8   :  { %v2257_v58 = vmul.f32 %v4654_v38, %v2255_v2  ;;  %vm2263_vm2 = vweird.f32 %v4654_v38 }
 0xfc9   :  { %vm2264_vm6 = vmor %vm2262_vm11, %vm2263_vm2 }
 0xfca   :  { %v2258_v54 = vmul.f32 %v4654_v38, %v2257_v58 }
 0xfcc   :  { %v2259_v62 = vmul.f32 0.5, %v2258_v54 }
 0xfce   :  { %v2260_v37 = vsub.f32 1.5, %v2259_v62 }
 0xfd0   :  { %v2261_v25 = vmul.f32 %v4654_v38, %v2260_v37 }
 0xfd2   :  { %v2265_v49 = vsel %vm2264_vm6, %v4654_v38, %v2261_v25 }
 0xfd3   :  { %v2266_v60 = vmul.f32 %v2265_v49, %v2249_v51 }
 0xfd4   :  { %v2364_v11 = vpop.permute.xlu1 %2363 }
 0xfd5   :  { %v2267_v6 = vmul.f32 %v2266_v60, %v2243_v3 }
 0xfd7   :  { %v5370_v22 = vadd.f32 %v2267_v6, %v2244_v7 }
 0xfd9   :  { %4468 = vmatmul.msk.f32.vlgmr.msrb.gmra.mxu2 %vm948_vm9, %v5370_v22 }
 0xfdc   :  { %v2392_v19 = vpop.permute.xlu1 %2391 }
0x105c   :  { %v2351_v57 = vpop.f32.mrf.mxu2 }
0x105d   :  { %v2352_v12 = vadd.f32 %v2351_v57, %v2327_v9 }
0x105f   :  { %v2355_v13 = vrot.slane %v2352_v12, 1  ;;  %v2356_v59 = vperm.slane %v2352_v12, 0  ;;  %v2523_v12 = vld [vmem:[#allocation2 + $0x3c0] sm:$0xff] }
0x1061   :  { %v2357_v16 = vperm.slane %v2355_v13, 0  ;;  %v2360_v4 = vadd.f32 %v2356_v59, %v2320_v24  ;;  %v2522_v13 = vld [vmem:[#allocation2 + $0x3b0] sm:$0xff] }
0x1063   :  { %v2361_v23 = vadd.f32 %v2357_v16, %v2323_v17  ;;  %4469 = vmatpush.xpose.msk.msra.mxu3 %vm1784_vm5, %v2360_v4 }
0x1065   :  { %4471 = vmatpush.xpose.msk.msra.mxu2 %vm1784_vm5, %v2361_v23 }
0x1066   :  { %4470 = vmatmul.msk.f32.vlgmr.msra.gmra.mxu3 %vm1784_vm5, %v2364_v11  ;;  %v2524_v11 = vld [vmem:[#allocation2 + $0x3d0] sm:$0xff] }
0x1067   :  { %2547 = vmatpush.msra.mxu1 %v2524_v11 }
0x1068   :  { %4472 = vmatmul.msk.f32.vlgmr.msra.gmra.mxu2 %vm1784_vm5, %v2392_v19 }
0x1069   :  { %2548 = vmatpush.msra.mxu1 %v2523_v12  ;;  %v2943_v12 = vld [vmem:[#allocation2 + $0x690] sm:$0x7f] }
0x106b   :  { %2549 = vmatpush.msra.mxu1 %v2522_v13 }
0x10e9   :  { %v2387_v20 = vpop.f32.mrf.mxu3 }
0x10ea   :  { %v2418_v21 = vmul.f32 0.15811388, %v2387_v20 }
0x10eb   :  { %v2415_v34 = vpop.f32.mrf.mxu2 }
0x10ec   :  { %v2419_v0 = vmul.f32 0.15811388, %v2415_v34  ;;  %v2420_v8 = vsel %vm5165_vm12, -1e+30, %v2418_v21 }
0x10ed   :  { %v2422_v44 = vsel %vm1057_vm13, %v2420_v8, -inf }
0x10ee   :  { %2423 = vmax.xlane.f32.xlu2 %v2422_v44  ;;  %v2421_v28 = vsel %vm5190_vm15, -1e+30, %v2419_v0 }
0x10ef   :  { %v2425_v30 = vsel %vm1057_vm13, %v2421_v28, -inf }
0x10f0   :  { %2426 = vmax.xlane.f32.xlu0 %v2425_v30 }
0x1104   :  { %2470 = vrot.lane.b32.xlu0 %v2360_v4, %s4840_s15  ;;  %v2527_v4 = vld [vmem:[#allocation2 + $0x400] ss:$0 sm:$0xff] }
0x1161   :  { %v2424_v32 = vpop.xlane.xlu2 %2423 }
0x1162   :  { %v2428_v55 = vsub.f32 %v2420_v8, %v2424_v32 }
0x1163   :  { %v2427_v47 = vpop.xlane.xlu0 %2426 }
0x1164   :  { %v2430_v18 = vmul.f32 1.442695, %v2428_v55  ;;  %v2429_v5 = vsub.f32 %v2421_v28, %v2427_v47 }
0x1166   :  { %4655 = vpow2.f32 %v2430_v18  ;;  %v2432_v56 = vmul.f32 1.442695, %v2429_v5 }
0x1168   :  { %4657 = vpow2.f32 %v2432_v56  ;;  %v2617_v56 = vld [vmem:[#allocation2 + $0x470] sm:$0xff] }
0x1169   :  { %2643 = vmatpush.msrb.mxu2 %v2617_v56  ;;  %v2777_v56 = vld [vmem:[#allocation2 + $0x5c0] sm:$0xff] }
0x116a   :  { %2821 = vmatpush.msrb.mxu1 %v2777_v56 }
0x116c   :  { %v4656_v35 = vpop.eup %4655 }
0x116d   :  { %v2434_v39 = vsel %vm1057_vm13, %v4656_v35, 0.0 }
0x116e   :  { %v4658_v41 = vpop.eup %4657  ;;  %2435 = vadd.xlane.f32.xlu1 %v2434_v39  ;;  %v2615_v39 = vld [vmem:[#allocation2 + $0x460] sm:$0xff] }
0x116f   :  { %v2437_v42 = vsel %vm1057_vm13, %v4658_v41, 0.0  ;;  %2644 = vmatpush.msrb.mxu2 %v2615_v39  ;;  %v2776_v39 = vld [vmem:[#allocation2 + $0x5b0] sm:$0xff] }
0x1170   :  { %2438 = vadd.xlane.f32.xlu2 %v2437_v42  ;;  %v2613_v42 = vld [vmem:[#allocation2 + $0x450] sm:$0xff]  ;;  %2822 = vmatpush.msrb.mxu1 %v2776_v39 }
0x1171   :  { %2645 = vmatpush.msrb.mxu2 %v2613_v42 }
0x1173   :  { %2646 = vmatpush.msrb.mxu2 %v2611_v36 }
0x1176   :  { %v2471_v43 = vpop.permute.xlu0 %2470 }
0x1177   :  { %2491 = vmatpush.msrb.mxu3 %v2471_v43  ;;  %v2614_v43 = vld [vmem:[#allocation2 + $0x458] sm:$0xff] }
0x1188   :  { %2496 = vrot.lane.b32.xlu2 %v2361_v23, %s4840_s15 }
0x11e1   :  { %v2436_v63 = vpop.xlane.xlu1 %2435 }
0x11e2   :  { %4659 = vrcp.f32 %v2436_v63  ;;  %v2451_v48 = vand.u32 2147483648, %v2436_v63  ;;  %v2449_v2 = vand.u32 2147483647, %v2436_v63  ;;  %vm2445_vm2 = vweird.f32 %v2436_v63 }
0x11e3   :  { %v2439_v51 = vpop.xlane.xlu2 %2438 }
0x11e4   :  { %4661 = vrcp.f32 %v2439_v51  ;;  %v2466_v58 = vand.u32 2147483648, %v2439_v51  ;;  %v2464_v37 = vand.u32 2147483647, %v2439_v51  ;;  %v2452_v25 = vor.u32 1.1754944e-38, %v2451_v48 }
0x11e5   :  { %vm2450_vm0 = vcmp.eq.f32.partialorder %v2449_v2, 8.507059e+37  ;;  %vm2460_vm8 = vweird.f32 %v2439_v51 }
0x11e6   :  { %v2467_v7 = vor.u32 1.1754944e-38, %v2466_v58  ;;  %vm2465_vm14 = vcmp.eq.f32.partialorder %v2464_v37, 8.507059e+37 }
0x11e8   :  { %v4660_v52 = vpop.eup %4659 }
0x11e9   :  { %v2441_v53 = vmul.f32 %v4660_v52, %v2436_v63  ;;  %vm2446_vm1 = vweird.f32 %v4660_v52  ;;  %v2609_v63 = vld [vmem:[#allocation2 + $0x430] sm:$0xff] }
0x11ea   :  { %v4662_v50 = vpop.eup %4661  ;;  %vm2447_vm6 = vmor %vm2445_vm2, %vm2446_vm1  ;;  %2647 = vmatpush.msrb.mxu2 %v2609_v63  ;;  %v2775_v63 = vld [vmem:[#allocation2 + $0x5a0] sm:$0xff] }
0x11eb   :  { %v2442_v29 = vsub.f32 1.0, %v2441_v53  ;;  %v2456_v15 = vmul.f32 %v4662_v50, %v2439_v51  ;;  %v2497_v26 = vpop.permute.xlu2 %2496  ;;  %vm2461_vm11 = vweird.f32 %v4662_v50  ;;  %v2610_v51 = vld [vmem:[#allocation2 + $0x438] sm:$0xff]  ;;  %2823 = vmatpush.msrb.mxu1 %v2775_v63 }
0x11ec   :  { %2517 = vmatpush.msrb.mxu0 %v2497_v26  ;;  %vm2462_vm7 = vmor %vm2460_vm8, %vm2461_vm11 }
0x11ed   :  { %v2443_v33 = vmul.f32 %v4660_v52, %v2442_v29  ;;  %v2457_v38 = vsub.f32 1.0, %v2456_v15  ;;  %v2884_v29 = vld [vmem:[#allocation2 + $0x620] sm:$0x7f] }
0x11ee   :  { %4487 = vmatpush.msk.msra.mxu2 %vm5637_vm3, %v2884_v29 }
0x11ef   :  { %v2444_v54 = vadd.f32 %v4660_v52, %v2443_v33  ;;  %v2458_v62 = vmul.f32 %v4662_v50, %v2457_v38 }
0x11f1   :  { %v2448_v3 = vsel %vm2447_vm6, %v4660_v52, %v2444_v54  ;;  %v2459_v49 = vadd.f32 %v4662_v50, %v2458_v62 }
0x11f2   :  { %v2453_v60 = vsel %vm2450_vm0, %v2452_v25, %v2448_v3  ;;  %v2559_v3 = vld [vmem:[#allocation2 + $0x410] ss:$0 sm:$0xff] }
0x11f3   :  { %v2463_v6 = vsel %vm2462_vm7, %v4662_v50, %v2459_v49  ;;  %v2454_v24 = vmul.f32 %v4656_v35, %v2453_v60  ;;  %v2618_v35 = vld [vmem:[#allocation2 + $0x478] sm:$0xff] }
0x11f4   :  { %v2468_v9 = vsel %vm2465_vm14, %v2467_v7, %v2463_v6  ;;  %2666 = vmatpush.msra.mxu3 %v2618_v35  ;;  %v2760_v35 = vld [vmem:[#allocation2 + $0x4b0] sm:$0xff] }
0x11f5   :  { %4473 = vmatmul.msk.f32.vlgmr.msrb.gmra.mxu3 %vm1057_vm13, %v2454_v24  ;;  %v2469_v57 = vmul.f32 %v4658_v41, %v2468_v9  ;;  %v2616_v41 = vld [vmem:[#allocation2 + $0x468] sm:$0xff]  ;;  %v2560_v24 = vld [vmem:[#allocation2 + $0x420] ss:$0 sm:$0xff] }
0x11f6   :  { %2667 = vmatpush.msra.mxu3 %v2616_v41 }
0x11f7   :  { %4474 = vmatmul.msk.f32.vlgmr.msrb.gmra.mxu0 %vm1057_vm13, %v2469_v57 }
0x11f8   :  { %2668 = vmatpush.msra.mxu3 %v2614_v43 }
0x11fa   :  { %2669 = vmatpush.msra.mxu3 %v2612_v61  ;;  %v2759_v61 = vld [vmem:[#allocation2 + $0x4a0] sm:$0xff] }
0x11fc   :  { %2670 = vmatpush.msra.mxu3 %v2610_v51 }
0x1274   :  { %v2519_v16 = vpop.f32.mrf.mxu0 }
0x1278   :  { %v2493_v59 = vpop.f32.mrf.mxu3 }
0x1279   :  { %4475 = vmatmul.msk.f32.vlgmr.msra.gmra.mxu1 %vm1784_vm5, %v2493_v59 }
0x1281   :  { %4476 = vmatmul.msk.f32.gmra.mxu1 %vm1784_vm5, %v2519_v16 }
0x12f6   :  { %v2551_v17 = vpop.f32.mrf.mxu1 }
0x12f7   :  { %v2552_v23 = vadd.f32 %v2551_v17, %v2527_v4 }
0x12f9   :  { %v5393_v19 = vadd.f32 %v2552_v23, %v5360_v14  ;;  %v2773_v23 = vld [vmem:[#allocation2 + $0x580] sm:$0xff] }
0x12fa   :  { %2786 = vmatpush.msra.mxu0 %v2773_v23 }
0x12fb   :  { %v2561_v20 = vsel %vm1784_vm5, %v5393_v19, 0.0 }
0x12fc   :  { %2562 = vadd.xlane.f32.xlu0 %v2561_v20  ;;  %v2772_v20 = vld [vmem:[#allocation2 + $0x570] sm:$0xff] }
0x12fd   :  { %2787 = vmatpush.msra.mxu0 %v2772_v20 }
0x12fe   :  { %v2554_v21 = vpop.f32.mrf.mxu1 }
0x12ff   :  { %v2555_v34 = vadd.f32 %v2554_v21, %v2527_v4  ;;  %v2771_v21 = vld [vmem:[#allocation2 + $0x560] sm:$0xff] }
0x1300   :  { %2788 = vmatpush.msra.mxu0 %v2771_v21 }
0x1301   :  { %v5398_v0 = vadd.f32 %v2555_v34, %v5364_v10  ;;  %v2770_v34 = vld [vmem:[#allocation2 + $0x550] sm:$0xff] }
0x1302   :  { %2789 = vmatpush.msra.mxu0 %v2770_v34 }
0x1303   :  { %v2564_v8 = vsel %vm1784_vm5, %v5398_v0, 0.0 }
0x1304   :  { %2565 = vadd.xlane.f32.xlu2 %v2564_v8  ;;  %v2769_v8 = vld [vmem:[#allocation2 + $0x540] sm:$0xff] }
0x1305   :  { %2790 = vmatpush.msra.mxu0 %v2769_v8 }
0x136f   :  { %v2563_v44 = vpop.xlane.xlu0 %2562 }
0x1370   :  { %v2567_v28 = vmul.f32 %v2563_v44, %v5296_v46  ;;  %v2768_v44 = vld [vmem:[#allocation2 + $0x530] sm:$0xff] }
0x1371   :  { %2791 = vmatpush.msra.mxu0 %v2768_v44 }
0x1372   :  { %v2569_v30 = vsub.f32 %v5393_v19, %v2567_v28  ;;  %v2767_v28 = vld [vmem:[#allocation2 + $0x520] sm:$0xff] }
0x1373   :  { %2792 = vmatpush.msra.mxu0 %v2767_v28 }
0x1374   :  { %v2571_v14 = vmul.f32 %v2569_v30, %v2569_v30 }
0x1376   :  { %v2573_v32 = vsel %vm1784_vm5, %v2571_v14, 0.0  ;;  %v2765_v14 = vld [vmem:[#allocation2 + $0x500] sm:$0xff] }
0x1377   :  { %v2566_v55 = vpop.xlane.xlu2 %2565  ;;  %2574 = vadd.xlane.f32.xlu1 %v2573_v32  ;;  %v2764_v32 = vld [vmem:[#allocation2 + $0x4f0] sm:$0xff] }
0x1378   :  { %v2568_v47 = vmul.f32 %v2566_v55, %v5296_v46  ;;  %v2620_v55 = vld [vmem:[#allocation2 + $0x480] ss:$8 sm:$0x3] }
0x137a   :  { %v5407_v18 = vsub.f32 %v5398_v0, %v2568_v47  ;;  %v2762_v47 = vld [vmem:[#allocation2 + $0x4d0] sm:$0xff] }
0x137c   :  { %v2572_v10 = vmul.f32 %v5407_v18, %v5407_v18 }
0x137e   :  { %v2576_v5 = vsel %vm1784_vm5, %v2572_v10, 0.0  ;;  %v2623_v10 = vperm.slane %v2620_v55, 1 }
0x137f   :  { %2577 = vadd.xlane.f32.xlu1 %v2576_v5  ;;  %v2761_v5 = vld [vmem:[#allocation2 + $0x4c0] sm:$0xff] }
0x13ea   :  { %v2575_v52 = vpop.xlane.xlu1 %2574 }
0x13eb   :  { %v2579_v53 = vmul.f32 %v2575_v52, %v5296_v46 }
0x13ed   :  { %v2581_v50 = vadd.f32 1e-05, %v2579_v53  ;;  %v2758_v53 = vld [vmem:[#allocation2 + $0x490] sm:$0xff] }
0x13ef   :  { %4663 = vrsqrt.f32 %v2581_v50  ;;  %vm2589_vm7 = vweird.f32 %v2581_v50 }
0x13f2   :  { %v2578_v15 = vpop.xlane.xlu1 %2577 }
0x13f3   :  { %v2580_v26 = vmul.f32 %v2578_v15, %v5296_v46 }
0x13f5   :  { %v4664_v48 = vpop.eup %4663  ;;  %v2582_v33 = vadd.f32 1e-05, %v2580_v26 }
0x13f6   :  { %v2584_v2 = vmul.f32 %v4664_v48, %v2581_v50  ;;  %vm2590_vm14 = vweird.f32 %v4664_v48  ;;  %v2774_v50 = vld [vmem:[#allocation2 + $0x590] sm:$0xff] }
0x13f7   :  { %4665 = vrsqrt.f32 %v2582_v33  ;;  %vm2591_vm8 = vmor %vm2589_vm7, %vm2590_vm14  ;;  %vm2599_vm1 = vweird.f32 %v2582_v33  ;;  %2824 = vmatpush.msrb.mxu1 %v2774_v50 }
0x13f8   :  { %v2585_v38 = vmul.f32 %v4664_v48, %v2584_v2 }
0x13fa   :  { %v2586_v58 = vmul.f32 0.5, %v2585_v38 }
0x13fc   :  { %v2587_v54 = vsub.f32 1.5, %v2586_v58 }
0x13fd   :  { %v4666_v62 = vpop.eup %4665 }
0x13fe   :  { %v2588_v37 = vmul.f32 %v4664_v48, %v2587_v54  ;;  %v2594_v25 = vmul.f32 %v4666_v62, %v2582_v33  ;;  %vm2600_vm0 = vweird.f32 %v4666_v62 }
0x13ff   :  { %vm2601_vm2 = vmor %vm2599_vm1, %vm2600_vm0 }
0x1400   :  { %v2592_v49 = vsel %vm2591_vm8, %v4664_v48, %v2588_v37  ;;  %v2595_v60 = vmul.f32 %v4666_v62, %v2594_v25  ;;  %v2885_v37 = vld [vmem:[#allocation2 + $0x630] ss:$0 sm:$0xff] }
0x1401   :  { %v2603_v7 = vmul.f32 %v2592_v49, %v2569_v30  ;;  %v2766_v30 = vld [vmem:[#allocation2 + $0x510] sm:$0xff] }
0x1402   :  { %v2596_v6 = vmul.f32 0.5, %v2595_v60  ;;  %2793 = vmatpush.msra.mxu0 %v2766_v30 }
0x1403   :  { %v2605_v9 = vmul.f32 %v2603_v7, %v2559_v3 }
0x1404   :  { %v2597_v57 = vsub.f32 1.5, %v2596_v6  ;;  %2794 = vmatpush.msra.mxu0 %v2765_v14 }
0x1405   :  { %v2607_v11 = vadd.f32 %v2605_v9, %v2560_v24 }
0x1406   :  { %v2598_v13 = vmul.f32 %v4666_v62, %v2597_v57  ;;  %2795 = vmatpush.msra.mxu0 %v2764_v32 }
0x1407   :  { %4477 = vmatmul.msk.f32.vlgmr.msrb.gmra.mxu2 %vm1784_vm5, %v2607_v11  ;;  %4479 = vmatmul.msk.f32.vlgmr.msra.gmra.mxu3 %vm1784_vm5, %v2607_v11 }
0x1408   :  { %v2602_v59 = vsel %vm2601_vm2, %v4666_v62, %v2598_v13  ;;  %4491 = vmatpush.msk.msrb.mxu2 %vm5637_vm3, %v2943_v12  ;;  %vm2779_vm3 = vcmask 261120  }
0x1409   :  { %v2604_v16 = vmul.f32 %v2602_v59, %v5407_v18  ;;  %v2622_v18 = vperm.slane %v2620_v55, 0 }
0x140b   :  { %v2606_v4 = vmul.f32 %v2604_v16, %v2559_v3 }
0x140d   :  { %v2608_v17 = vadd.f32 %v2606_v4, %v2560_v24 }
0x140f   :  { %4478 = vmatmul.msk.f32.gmra.mxu2 %vm1784_vm5, %v2608_v17  ;;  %4480 = vmatmul.msk.f32.gmra.mxu3 %vm1784_vm5, %v2608_v17 }
0x1417   :  { %4488 = vmatmul.msk.f32.vlgmr.msra.gmra.mxu2 %vm948_vm9, %v5370_v22 }
0x141f   :  { %4492 = vmatmul.msk.f32.vlgmr.msrb.gmra.mxu2 %vm948_vm9, %v5370_v22  ;;  %v2763_v22 = vld [vmem:[#allocation2 + $0x4e0] sm:$0xff] }
0x1420   :  { %2796 = vmatpush.msra.mxu0 %v2763_v22 }
0x1422   :  { %2797 = vmatpush.msra.mxu0 %v2762_v47 }
0x1424   :  { %2798 = vmatpush.msra.mxu0 %v2761_v5 }
0x1426   :  { %2799 = vmatpush.msra.mxu0 %v2760_v35 }
0x1428   :  { %2800 = vmatpush.msra.mxu0 %v2759_v61 }
0x142a   :  { %2801 = vmatpush.msra.mxu0 %v2758_v53 }
0x148a   :  { %v2649_v41 = vpop.f32.mrf.mxu2  ;;  %v2672_v42 = vpop.f32.mrf.mxu3 }
0x148b   :  { %v5425_v43 = vadd.f32 %v2649_v41, %v2622_v18  ;;  %v5427_v36 = vadd.f32 %v2672_v42, %v2623_v10 }
0x148d   :  { %v4481_v51 = vmul.f32 -1.442695, %v5425_v43  ;;  %v4482_v52 = vmul.f32 -1.442695, %v5427_v36 }
0x148f   :  { %4667 = vpow2.f32 %v4481_v51 }
0x1490   :  { %4669 = vpow2.f32 %v4482_v52 }
0x1492   :  { %v2652_v29 = vpop.f32.mrf.mxu2  ;;  %v2675_v15 = vpop.f32.mrf.mxu3 }
0x1493   :  { %v5431_v26 = vadd.f32 %v2652_v29, %v2622_v18  ;;  %v5433_v48 = vadd.f32 %v2675_v15, %v2623_v10 }
0x1495   :  { %v4668_v33 = vpop.eup %4667  ;;  %v4483_v2 = vmul.f32 -1.442695, %v5431_v26  ;;  %v4484_v54 = vmul.f32 -1.442695, %v5433_v48 }
0x1496   :  { %v4670_v38 = vpop.eup %4669  ;;  %v2690_v58 = vadd.f32 1.0, %v4668_v33 }
0x1497   :  { %v2691_v62 = vadd.f32 1.0, %v4670_v38  ;;  %4671 = vpow2.f32 %v4483_v2 }
0x1498   :  { %4673 = vrcp.f32 %v2690_v58  ;;  %v2703_v16 = vand.u32 2147483647, %v2690_v58  ;;  %v2705_v4 = vand.u32 2147483648, %v2690_v58  ;;  %vm2699_vm14 = vweird.f32 %v2690_v58 }
0x1499   :  { %4675 = vrcp.f32 %v2691_v62  ;;  %v2720_v20 = vand.u32 2147483648, %v2691_v62  ;;  %v2718_v34 = vand.u32 2147483647, %v2691_v62  ;;  %vm2714_vm8 = vweird.f32 %v2691_v62 }
0x149a   :  { %4677 = vpow2.f32 %v4484_v54  ;;  %v2906_v25 = vpop.f32.mrf.mxu2  ;;  %v2706_v28 = vor.u32 1.1754944e-38, %v2705_v4  ;;  %vm2704_vm0 = vcmp.eq.f32.partialorder %v2703_v16, 8.507059e+37 }
0x149b   :  { %v5437_v3 = vadd.f32 %v2906_v25, %v2885_v37  ;;  %v2721_v32 = vor.u32 1.1754944e-38, %v2720_v20  ;;  %vm2719_vm2 = vcmp.eq.f32.partialorder %v2718_v34, 8.507059e+37  ;;  %v2913_v34 = vld [vmem:[#allocation2 + $0x680] sm:$0xff] }
0x149c   :  { %2931 = vmatpush.msrb.mxu3 %v2913_v34 }
0x149d   :  { %v4672_v49 = vpop.eup %4671  ;;  %v2977_v60 = vrot.slane %v5437_v3, 1 }
0x149e   :  { %v4674_v7 = vpop.eup %4673  ;;  %v2692_v6 = vadd.f32 1.0, %v4672_v49 }
0x149f   :  { %v4676_v24 = vpop.eup %4675  ;;  %v2695_v9 = vmul.f32 %v4674_v7, %v2690_v58  ;;  %v3006_v57 = vperm.slane %v2977_v60, 0  ;;  %vm2700_vm11 = vweird.f32 %v4674_v7 }
0x14a0   :  { %v4678_v11 = vpop.eup %4677  ;;  %v2710_v12 = vmul.f32 %v4676_v24, %v2691_v62  ;;  %4679 = vrcp.f32 %v2692_v6  ;;  %vm2715_vm6 = vweird.f32 %v4676_v24  ;;  %vm2701_vm7 = vmor %vm2699_vm14, %vm2700_vm11  ;;  %v2735_v41 = vand.u32 2147483648, %v2692_v6  ;;  %v2778_v62 = vld [vmem:[#allocation2 + $0x5d0] ss:$0 sm:$0xff] }
0x14a1   :  { %v2696_v13 = vsub.f32 1.0, %v2695_v9  ;;  %v2693_v59 = vadd.f32 1.0, %v4678_v11  ;;  %3007 = vrot.lane.b32.xlu2 %v3006_v57, %s4849_s28  ;;  %vm2716_vm1 = vmor %vm2714_vm8, %vm2715_vm6  ;;  %v2733_v61 = vand.u32 2147483647, %v2692_v6  ;;  %vm2729_vm6 = vweird.f32 %v2692_v6 }
0x14a2   :  { %v2711_v17 = vsub.f32 1.0, %v2710_v12  ;;  %v2736_v50 = vor.u32 1.1754944e-38, %v2735_v41 }
0x14a3   :  { %v2697_v23 = vmul.f32 %v4674_v7, %v2696_v13  ;;  %4681 = vrcp.f32 %v2693_v59  ;;  %v2750_v51 = vand.u32 2147483648, %v2693_v59  ;;  %vm2734_vm8 = vcmp.eq.f32.partialorder %v2733_v61, 8.507059e+37 }
0x14a4   :  { %v2712_v21 = vmul.f32 %v4676_v24, %v2711_v17 }
0x14a5   :  { %v2698_v8 = vadd.f32 %v4674_v7, %v2697_v23  ;;  %v2751_v33 = vor.u32 1.1754944e-38, %v2750_v51 }
0x14a6   :  { %v4680_v44 = vpop.eup %4679  ;;  %v2713_v30 = vadd.f32 %v4676_v24, %v2712_v21 }
0x14a7   :  { %v2702_v14 = vsel %vm2701_vm7, %v4674_v7, %v2698_v8  ;;  %v2725_v22 = vmul.f32 %v4680_v44, %v2692_v6  ;;  %vm2730_vm11 = vweird.f32 %v4680_v44  ;;  %v2912_v8 = vld [vmem:[#allocation2 + $0x670] sm:$0xff] }
0x14a8   :  { %v2707_v55 = vsel %vm2704_vm0, %v2706_v28, %v2702_v14  ;;  %v2717_v47 = vsel %vm2716_vm1, %v4676_v24, %v2713_v30  ;;  %vm2731_vm7 = vmor %vm2729_vm6, %vm2730_vm11  ;;  %vm2744_vm0 = vweird.f32 %v2693_v59  ;;  %2932 = vmatpush.msrb.mxu3 %v2912_v8  ;;  %v2910_v28 = vld [vmem:[#allocation2 + $0x650] sm:$0xff]  ;;  %v2909_v30 = vld [vmem:[#allocation2 + $0x640] sm:$0xff] }
0x14a9   :  { %v4682_v18 = vpop.eup %4681  ;;  %v2754_v10 = vmul.f32 %v2707_v55, %v5425_v43  ;;  %v2722_v5 = vsel %vm2719_vm2, %v2721_v32, %v2717_v47  ;;  %v2726_v56 = vsub.f32 1.0, %v2725_v22  ;;  %v2748_v43 = vand.u32 2147483647, %v2693_v59 }
0x14aa   :  { %v2755_v35 = vmul.f32 %v2722_v5, %v5427_v36  ;;  %v2740_v39 = vmul.f32 %v4682_v18, %v2693_v59  ;;  %vm2745_vm14 = vweird.f32 %v4682_v18 }
0x14ab   :  { %2802 = vmatmul.f32.vlgmr.msra.gmra.mxu0 %v2754_v10  ;;  %v2727_v42 = vmul.f32 %v4680_v44, %v2726_v56  ;;  %vm2746_vm1 = vmor %vm2744_vm0, %vm2745_vm14  ;;  %vm2749_vm2 = vcmp.eq.f32.partialorder %v2748_v43, 8.507059e+37  ;;  %v2835_v43 = vld [vmem:[#allocation2 + $0x5f0] ss:$0 sm:$0xff] }
0x14ac   :  { %v2741_v63 = vsub.f32 1.0, %v2740_v39  ;;  %4485 = vmatmul.msk.f32.vlgmr.msrb.gmra.mxu1 %vm2779_vm3, %v2755_v35 }
0x14ad   :  { %v2728_v52 = vadd.f32 %v4680_v44, %v2727_v42 }
0x14ae   :  { %v2742_v53 = vmul.f32 %v4682_v18, %v2741_v63  ;;  %v2834_v63 = vld [vmem:[#allocation2 + $0x5e0] ss:$0 sm:$0xff] }
0x14af   :  { %v2732_v29 = vsel %vm2731_vm7, %v4680_v44, %v2728_v52  ;;  %v2911_v44 = vld [vmem:[#allocation2 + $0x660] sm:$0xff] }
0x14b0   :  { %v2743_v36 = vadd.f32 %v4682_v18, %v2742_v53  ;;  %v2737_v15 = vsel %vm2734_vm8, %v2736_v50, %v2732_v29  ;;  %2933 = vmatpush.msrb.mxu3 %v2911_v44 }
0x14b1   :  { %v2756_v2 = vmul.f32 %v2737_v15, %v5431_v26 }
0x14b2   :  { %v2747_v38 = vsel %vm2746_vm1, %v4682_v18, %v2743_v36  ;;  %2934 = vmatpush.msrb.mxu3 %v2910_v28  ;;  %vm5645_vm1 = vcmp.gt.f32.partialorder %v5184_v40, 0.5 }
0x14b3   :  { %v2752_v58 = vsel %vm2749_vm2, %v2751_v33, %v2747_v38  ;;  %2805 = vmatmul.f32.gmra.mxu0 %v2756_v2 }
0x14b4   :  { %v2757_v54 = vmul.f32 %v2752_v58, %v5433_v48  ;;  %2935 = vmatpush.msrb.mxu3 %v2909_v30 }
0x14b6   :  { %4486 = vmatmul.msk.f32.gmra.mxu1 %vm2779_vm3, %v2757_v54 }
0x1528   :  { %v2803_v37 = vpop.f32.mrf.mxu0 }
0x1529   :  { %v2804_v25 = vadd.f32 %v2803_v37, %v2778_v62  ;;  %v2826_v49 = vpop.f32.mrf.mxu1  ;;  %v2965_v37 = vpop.f32.mrf.mxu2 }
0x152b   :  { %v2827_v60 = vadd.f32 %v2826_v49, %v2804_v25 }
0x152d   :  { %v2832_v7 = vadd.f32 %v2827_v60, %v5393_v19 }
0x152f   :  { %v2836_v6 = vsel %vm1784_vm5, %v2832_v7, 0.0 }
0x1530   :  { %2837 = vadd.xlane.f32.xlu1 %v2836_v6  ;;  %v2806_v24 = vpop.f32.mrf.mxu0 }
0x1531   :  { %v2807_v26 = vadd.f32 %v2806_v24, %v2778_v62  ;;  %v2944_v62 = vld [vmem:[#allocation2 + $0x6a0] ss:$0 sm:$0xff] }
0x1532   :  { %v2966_v25 = vadd.f32 %v2965_v37, %v2944_v62 }
0x1533   :  { %v2829_v9 = vpop.f32.mrf.mxu1 }
0x1534   :  { %v2830_v57 = vadd.f32 %v2829_v9, %v2807_v26  ;;  %v2970_v49 = vperm.slane %v2966_v25, 0  ;;  %v2969_v6 = vrot.slane %v2966_v25, 1 }
0x1536   :  { %v2833_v11 = vadd.f32 %v2830_v57, %v5398_v0  ;;  %v2978_v0 = vperm.slane %v5437_v3, 0  ;;  %v2971_v26 = vperm.slane %v2969_v6, 0  ;;  %v3334_v6 = vld [vmem:[#allocation2 + $0x7f0] sm:$0xff] }
0x1538   :  { %v2839_v48 = vsel %vm1784_vm5, %v2833_v11, 0.0 }
0x1539   :  { %2840 = vadd.xlane.f32.xlu0 %v2839_v48 }
0x15a3   :  { %v2838_v12 = vpop.xlane.xlu1 %2837 }
0x15a4   :  { %v2842_v13 = vmul.f32 %v2838_v12, %v5296_v46 }
0x15a6   :  { %v2844_v59 = vsub.f32 %v2832_v7, %v2842_v13 }
0x15a8   :  { %v2846_v16 = vmul.f32 %v2844_v59, %v2844_v59 }
0x15aa   :  { %v2848_v4 = vsel %vm1784_vm5, %v2846_v16, 0.0 }
0x15ab   :  { %2849 = vadd.xlane.f32.xlu1 %v2848_v4 }
0x15ac   :  { %v2841_v19 = vpop.xlane.xlu0 %2840 }
0x15ad   :  { %v2843_v17 = vmul.f32 %v2841_v19, %v5296_v46 }
0x15af   :  { %v2845_v23 = vsub.f32 %v2833_v11, %v2843_v17  ;;  %v3008_v11 = vpop.permute.xlu2 %3007 }
0x15b1   :  { %v2847_v20 = vmul.f32 %v2845_v23, %v2845_v23 }
0x15b3   :  { %v2851_v21 = vsel %vm1784_vm5, %v2847_v20, 0.0 }
0x15b4   :  { %2852 = vadd.xlane.f32.xlu0 %v2851_v21 }
0x15c4   :  { %2979 = vrot.lane.b32.xlu1 %v2978_v0, %s4849_s28 }
0x161e   :  { %v2850_v14 = vpop.xlane.xlu1 %2849 }
0x161f   :  { %v2854_v32 = vmul.f32 %v2850_v14, %v5296_v46 }
0x1621   :  { %v2856_v22 = vadd.f32 1e-05, %v2854_v32 }
0x1623   :  { %4683 = vrsqrt.f32 %v2856_v22  ;;  %vm2864_vm6 = vweird.f32 %v2856_v22 }
0x1627   :  { %v2853_v55 = vpop.xlane.xlu0 %2852 }
0x1628   :  { %v2855_v47 = vmul.f32 %v2853_v55, %v5296_v46 }
0x1629   :  { %v4684_v18 = vpop.eup %4683 }
0x162a   :  { %v2859_v10 = vmul.f32 %v4684_v18, %v2856_v22  ;;  %v2857_v5 = vadd.f32 1e-05, %v2855_v47  ;;  %vm2865_vm11 = vweird.f32 %v4684_v18 }
0x162b   :  { %vm2866_vm14 = vmor %vm2864_vm6, %vm2865_vm11 }
0x162c   :  { %v2860_v56 = vmul.f32 %v4684_v18, %v2859_v10  ;;  %4685 = vrsqrt.f32 %v2857_v5  ;;  %vm2874_vm8 = vweird.f32 %v2857_v5 }
0x162e   :  { %v2861_v35 = vmul.f32 0.5, %v2860_v56 }
0x1630   :  { %v2862_v39 = vsub.f32 1.5, %v2861_v35 }
0x1632   :  { %v4686_v41 = vpop.eup %4685  ;;  %v2863_v42 = vmul.f32 %v4684_v18, %v2862_v39 }
0x1633   :  { %v2869_v61 = vmul.f32 %v4686_v41, %v2857_v5  ;;  %vm2875_vm7 = vweird.f32 %v4686_v41 }
0x1634   :  { %v2867_v51 = vsel %vm2866_vm14, %v4684_v18, %v2863_v42  ;;  %vm2876_vm0 = vmor %vm2874_vm8, %vm2875_vm7 }
0x1635   :  { %v2878_v52 = vmul.f32 %v2867_v51, %v2844_v59  ;;  %v2870_v53 = vmul.f32 %v4686_v41, %v2869_v61  ;;  %v3306_v61 = vld [vmem:[#allocation2 + $0x7a0] sm:$0xff]  ;;  %v3305_v51 = vld [vmem:[#allocation2 + $0x790] sm:$0xff] }
0x1636   :  { %v2980_v24 = vpop.permute.xlu1 %2979 }
0x1637   :  { %v2880_v50 = vmul.f32 %v2878_v52, %v2834_v63  ;;  %v2871_v29 = vmul.f32 0.5, %v2870_v53  ;;  %v3304_v53 = vld [vmem:[#allocation2 + $0x780] sm:$0xff] }
0x1639   :  { %v2872_v36 = vsub.f32 1.5, %v2871_v29  ;;  %v5459_v15 = vadd.f32 %v2880_v50, %v2835_v43  ;;  %v3303_v50 = vld [vmem:[#allocation2 + $0x770] sm:$0xff] }
0x163b   :  { %v2873_v33 = vmul.f32 %v4686_v41, %v2872_v36  ;;  %4489 = vmatmul.msk.f32.vlgmr.msrb.gmra.mxu3 %vm1784_vm5, %v5459_v15 }
0x163d   :  { %v2877_v2 = vsel %vm2876_vm0, %v4686_v41, %v2873_v33  ;;  %v3302_v33 = vld [vmem:[#allocation2 + $0x760] sm:$0xff]  ;;  %vm5646_vm0 = vcmask 1046528  }
0x163e   :  { %v2879_v38 = vmul.f32 %v2877_v2, %v2845_v23 }
0x1640   :  { %v2881_v58 = vmul.f32 %v2879_v38, %v2834_v63 }
0x1642   :  { %v5463_v54 = vadd.f32 %v2881_v58, %v2835_v43 }
0x1644   :  { %4490 = vmatmul.msk.f32.gmra.mxu3 %vm1784_vm5, %v5463_v54 }
0x16be   :  { %v2937_v60 = vpop.f32.mrf.mxu3 }
0x16bf   :  { %v2974_v7 = vadd.f32 %v2970_v49, %v2937_v60  ;;  %v3138_v60 = vld [vmem:[#allocation2 + $0x6b0] sm:$0x7f] }
0x16c1   :  { %3086 = vrot.lane.b32.xlu1 %v2974_v7, %s4849_s28  ;;  %4493 = vmatpush.xpose.msk.msra.mxu1 %vm948_vm9, %v2974_v7  ;;  %v3335_v7 = vld [vmem:[#allocation2 + $0x800] sm:$0xff] }
0x16c4   :  { %4494 = vmatmul.msk.f32.vlgmr.msra.gmra.mxu1 %vm948_vm9, %v2980_v24  ;;  %v3333_v24 = vld [vmem:[#allocation2 + $0x7e0] sm:$0xff] }
0x16c7   :  { %v2940_v9 = vpop.f32.mrf.mxu3 }
0x16c8   :  { %v2975_v57 = vadd.f32 %v2971_v26, %v2940_v9  ;;  %v3332_v26 = vld [vmem:[#allocation2 + $0x7d0] sm:$0xff]  ;;  %v3331_v9 = vld [vmem:[#allocation2 + $0x7c0] sm:$0xff] }
0x16ca   :  { %4495 = vmatpush.xpose.msk.msra.mxu2 %vm948_vm9, %v2975_v57 }
0x16cd   :  { %4496 = vmatmul.msk.f32.vlgmr.msra.gmra.mxu2 %vm948_vm9, %v3008_v11 }
0x16ce   :  { %4499 = vmatpush.msk.msrb.mxu2 %vm5646_vm0, %v3138_v60 }
0x16d0   :  { %3347 = vmatpush.msra.mxu2 %v3335_v7 }
0x16d2   :  { %3348 = vmatpush.msra.mxu2 %v3334_v6  ;;  %v3248_v6 = vld [vmem:[#allocation2 + $0x750] ss:$0 sm:$0xff] }
0x16d4   :  { %3349 = vmatpush.msra.mxu2 %v3333_v24 }
0x16d6   :  { %3350 = vmatpush.msra.mxu2 %v3332_v26 }
0x16d8   :  { %3351 = vmatpush.msra.mxu2 %v3331_v9 }
0x1733   :  { %v3087_v48 = vpop.permute.xlu1 %3086 }
0x1734   :  { %3107 = vmatpush.msra.mxu3 %v3087_v48 }
0x1741   :  { %v3003_v12 = vpop.f32.mrf.mxu1 }
0x1742   :  { %v3034_v13 = vmul.f32 0.37796447, %v3003_v12 }
0x1744   :  { %v3036_v59 = vsel %vm1047_vm10, -1e+30, %v3034_v13  ;;  %v3307_v13 = vld [vmem:[#allocation2 + $0x7b0] ss:$0 sm:$0xff] }
0x1745   :  { %v3038_v16 = vsel %vm1994_vm4, %v3036_v59, -inf }
0x1746   :  { %3039 = vmax.xlane.f32.xlu0 %v3038_v16 }
0x1750   :  { %v3031_v4 = vpop.f32.mrf.mxu2 }
0x1751   :  { %v3035_v19 = vmul.f32 0.37796447, %v3031_v4  ;;  %v3139_v4 = vld [vmem:[#allocation2 + $0x6c0] ss:$0 sm:$0xff] }
0x1753   :  { %v3037_v17 = vsel %vm5645_vm1, -1e+30, %v3035_v19  ;;  %vm5647_vm1 = vcmask 1041409  }
0x1754   :  { %v3041_v23 = vsel %vm1994_vm4, %v3037_v17, -inf }
0x1755   :  { %3042 = vmax.xlane.f32.xlu0 %v3041_v23 }
0x17b9   :  { %v3040_v20 = vpop.xlane.xlu0 %3039 }
0x17ba   :  { %v3044_v21 = vsub.f32 %v3036_v59, %v3040_v20 }
0x17bc   :  { %v3046_v0 = vmul.f32 1.442695, %v3044_v21 }
0x17be   :  { %4687 = vpow2.f32 %v3046_v0 }
0x17c4   :  { %v4688_v34 = vpop.eup %4687 }
0x17c5   :  { %v3050_v8 = vsel %vm1994_vm4, %v4688_v34, 0.0 }
0x17c6   :  { %3051 = vadd.xlane.f32.xlu0 %v3050_v8 }
0x17c8   :  { %v3043_v27 = vpop.xlane.xlu0 %3042 }
0x17c9   :  { %v3045_v44 = vsub.f32 %v3037_v17, %v3043_v27 }
0x17cb   :  { %v3048_v28 = vmul.f32 1.442695, %v3045_v44 }
0x17cd   :  { %4689 = vpow2.f32 %v3048_v28 }
0x17d3   :  { %v4690_v30 = vpop.eup %4689 }
0x17d4   :  { %v3053_v14 = vsel %vm1994_vm4, %v4690_v30, 0.0 }
0x17d5   :  { %3054 = vadd.xlane.f32.xlu2 %v3053_v14 }
0x17da   :  { %3112 = vrot.lane.b32.xlu0 %v2975_v57, %s4849_s28 }
0x1839   :  { %v3052_v40 = vpop.xlane.xlu0 %3051 }
0x183a   :  { %4691 = vrcp.f32 %v3052_v40  ;;  %v3067_v47 = vand.u32 2147483648, %v3052_v40  ;;  %v3065_v10 = vand.u32 2147483647, %v3052_v40  ;;  %vm3061_vm2 = vweird.f32 %v3052_v40 }
0x183c   :  { %v3068_v56 = vor.u32 1.1754944e-38, %v3067_v47  ;;  %vm3066_vm6 = vcmp.eq.f32.partialorder %v3065_v10, 8.507059e+37 }
0x1840   :  { %v4692_v32 = vpop.eup %4691 }
0x1841   :  { %v3057_v22 = vmul.f32 %v4692_v32, %v3052_v40  ;;  %vm3062_vm10 = vweird.f32 %v4692_v32 }
0x1842   :  { %vm3063_vm11 = vmor %vm3061_vm2, %vm3062_vm10  ;;  %vm5648_vm10 = vcmask 50176  }
0x1843   :  { %v3058_v55 = vsub.f32 1.0, %v3057_v22  ;;  %vm5649_vm2 = vmmov %vm5648_vm10 }
0x1845   :  { %v3059_v18 = vmul.f32 %v4692_v32, %v3058_v55 }
0x1847   :  { %v3060_v5 = vadd.f32 %v4692_v32, %v3059_v18  ;;  %v3170_v18 = vld [vmem:[#allocation2 + $0x6d0] ss:$0 sm:$0xff] }
0x1848   :  { %v3055_v35 = vpop.xlane.xlu2 %3054 }
0x1849   :  { %v3064_v39 = vsel %vm3063_vm11, %v4692_v32, %v3060_v5  ;;  %4693 = vrcp.f32 %v3055_v35  ;;  %v3082_v36 = vand.u32 2147483648, %v3055_v35  ;;  %v3080_v38 = vand.u32 2147483647, %v3055_v35  ;;  %vm5650_vm11 = vmmov %vm5646_vm0 }
0x184a   :  { %v3069_v41 = vsel %vm3066_vm6, %v3068_v56, %v3064_v39  ;;  %vm3076_vm14 = vweird.f32 %v3055_v35  ;;  %v3171_v56 = vld [vmem:[#allocation2 + $0x6e0] ss:$0 sm:$0xff] }
0x184b   :  { %v3070_v42 = vmul.f32 %v4688_v34, %v3069_v41  ;;  %v3083_v62 = vor.u32 1.1754944e-38, %v3082_v36  ;;  %vm3081_vm8 = vcmp.eq.f32.partialorder %v3080_v38, 8.507059e+37  ;;  %v3247_v41 = vld [vmem:[#allocation2 + $0x740] sm:$0xf] }
0x184c   :  { %v3113_v63 = vpop.permute.xlu0 %3112 }
0x184d   :  { %4497 = vmatmul.msk.f32.vlgmr.msra.gmra.mxu3 %vm1057_vm13, %v3070_v42  ;;  %3133 = vmatpush.msrb.mxu1 %v3113_v63  ;;  %v3197_v42 = vld [vmem:[#allocation2 + $0x700] ss:$0 sm:$0xff] }
0x184e   :  { %v3245_v63 = vld [vmem:[#allocation2 + $0x720] sm:$0xff] }
0x184f   :  { %3319 = vmatpush.msra.mxu1 %v3306_v61  ;;  %v4694_v52 = vpop.eup %4693  ;;  %v3246_v61 = vld [vmem:[#allocation2 + $0x730] sm:$0xff] }
0x1850   :  { %v3072_v43 = vmul.f32 %v4694_v52, %v3055_v35  ;;  %vm3077_vm4 = vweird.f32 %v4694_v52 }
0x1851   :  { %3320 = vmatpush.msra.mxu1 %v3305_v51  ;;  %vm3078_vm7 = vmor %vm3076_vm14, %vm3077_vm4 }
0x1852   :  { %v3073_v29 = vsub.f32 1.0, %v3072_v43 }
0x1853   :  { %3321 = vmatpush.msra.mxu1 %v3304_v53 }
0x1854   :  { %v3074_v2 = vmul.f32 %v4694_v52, %v3073_v29 }
0x1855   :  { %3322 = vmatpush.msra.mxu1 %v3303_v50 }
0x1856   :  { %v3075_v58 = vadd.f32 %v4694_v52, %v3074_v2 }
0x1857   :  { %3323 = vmatpush.msra.mxu1 %v3302_v33 }
0x1858   :  { %v3079_v37 = vsel %vm3078_vm7, %v4694_v52, %v3075_v58  ;;  %vm5651_vm7 = vcmask 1043456   ;;  %v3244_v52 = vld [vmem:[#allocation2 + $0x710] sm:$0xff] }
0x1859   :  { %v3084_v25 = vsel %vm3081_vm8, %v3083_v62, %v3079_v37  ;;  %4504 = vmatpush.msk.msrb.mxu0 %vm5651_vm7, %v3247_v41 }
0x185a   :  { %v3085_v49 = vmul.f32 %v4690_v30, %v3084_v25 }
0x185b   :  { %3268 = vmatpush.msrb.mxu0 %v3246_v61 }
0x185c   :  { %4498 = vmatmul.msk.f32.vlgmr.msrb.gmra.mxu1 %vm1057_vm13, %v3085_v49 }
0x185d   :  { %3269 = vmatpush.msrb.mxu0 %v3245_v63 }
0x185f   :  { %3270 = vmatpush.msrb.mxu0 %v3244_v52 }
0x1864   :  { %4506 = vmatmul.msk.f32.vlgmr.msra.gmra.mxu1 %vm1784_vm5, %v5459_v15 }
0x186c   :  { %4507 = vmatmul.msk.f32.gmra.mxu1 %vm1784_vm5, %v5463_v54 }
0x18d0   :  { %v3109_v48 = vpop.f32.mrf.mxu3 }
0x18d9   :  { %v3135_v57 = vpop.f32.mrf.mxu1 }
0x18da   :  { %v3142_v11 = vrot.slane %v3135_v57, 7 }
0x18dc   :  { %v3143_v12 = vsel %vm5647_vm1, %v3142_v11, %v3109_v48 }
0x18dd   :  { %4500 = vmatmul.msk.f32.vlgmr.msrb.gmra.mxu2 %vm948_vm9, %v3143_v12 }
0x18e1   :  { %v3325_v59 = vpop.f32.mrf.mxu1 }
0x18e2   :  { %v5490_v16 = vadd.f32 %v3325_v59, %v3307_v13 }
0x18e5   :  { %4508 = vmatmul.msk.f32.vlgmr.msra.gmra.mxu2 %vm1784_vm5, %v5459_v15 }
0x18e9   :  { %v3328_v21 = vpop.f32.mrf.mxu1 }
0x18ea   :  { %v5501_v0 = vadd.f32 %v3328_v21, %v3307_v13 }
0x18ed   :  { %4509 = vmatmul.msk.f32.gmra.mxu2 %vm1784_vm5, %v5463_v54 }
0x1960   :  { %v3166_v19 = vpop.f32.mrf.mxu2 }
0x1961   :  { %v3167_v17 = vadd.f32 %v3166_v19, %v3139_v4  ;;  %v3359_v4 = vld [vmem:[#allocation2 + $0x810] sm:$0x7f] }
0x1963   :  { %v5497_v23 = vadd.f32 %v3167_v17, %v5437_v3  ;;  %v3196_v3 = vld [vmem:[#allocation2 + $0x6f0] sm:$0x7f] }
0x1964   :  { %4501 = vmatpush.msk.msrb.mxu3 %vm5650_vm11, %v3196_v3  ;;  %vm5653_vm11 = vcmask 50176  }
0x1965   :  { %v3172_v20 = vsel %vm5648_vm10, %v5497_v23, 0.0 }
0x1966   :  { %3173 = vadd.xlane.f32.xlu1 %v3172_v20 }
0x197f   :  { %3424 = vrot.lane.b32.xlu1 %v5501_v0, %s4840_s15 }
0x19d9   :  { %v3174_v15 = vpop.xlane.xlu1 %3173 }
0x19da   :  { %v3175_v34 = vmul.f32 %v3174_v15, %v5346_v1 }
0x19dc   :  { %v3176_v54 = vsub.f32 %v5497_v23, %v3175_v34 }
0x19de   :  { %v3177_v8 = vmul.f32 %v3176_v54, %v3176_v54 }
0x19e0   :  { %v3178_v27 = vsel %vm5649_vm2, %v3177_v8, 0.0  ;;  %vm5652_vm2 = vcmask 228352  }
0x19e1   :  { %3179 = vadd.xlane.f32.xlu0 %v3178_v27  ;;  %v3276_v27 = vld [vmem:[#allocation2 + $0x600] ss:$0 sm:$0xff] }
0x19f1   :  { %v3425_v41 = vpop.permute.xlu1 %3424 }
0x1a54   :  { %v3180_v44 = vpop.xlane.xlu0 %3179 }
0x1a55   :  { %v3181_v28 = vmul.f32 %v3180_v44, %v5346_v1 }
0x1a57   :  { %v3182_v30 = vadd.f32 1e-05, %v3181_v28  ;;  %v3277_v28 = vld [vmem:[#allocation2 + $0x610] ss:$0 sm:$0xff] }
0x1a59   :  { %4695 = vrsqrt.f32 %v3182_v30  ;;  %vm3189_vm4 = vweird.f32 %v3182_v30 }
0x1a5f   :  { %v4696_v14 = vpop.eup %4695 }
0x1a60   :  { %v3184_v40 = vmul.f32 %v4696_v14, %v3182_v30  ;;  %vm3190_vm6 = vweird.f32 %v4696_v14 }
0x1a61   :  { %vm3191_vm14 = vmor %vm3189_vm4, %vm3190_vm6  ;;  %vm5655_vm4 = vcmask 1046528  }
0x1a62   :  { %v3185_v32 = vmul.f32 %v4696_v14, %v3184_v40  ;;  %vm5654_vm6 = vmmov %vm5653_vm11  ;;  %4510 = vmatpush.msk.msra.mxu3 %vm5655_vm4, %v3359_v4  ;;  %v3360_v40 = vld [vmem:[#allocation2 + $0x820] ss:$0 sm:$0xff] }
0x1a64   :  { %v3186_v22 = vmul.f32 0.5, %v3185_v32 }
0x1a66   :  { %v3187_v55 = vsub.f32 1.5, %v3186_v22 }
0x1a68   :  { %v3188_v47 = vmul.f32 %v4696_v14, %v3187_v55 }
0x1a6a   :  { %v3192_v10 = vsel %vm3191_vm14, %v4696_v14, %v3188_v47 }
0x1a6b   :  { %v3193_v5 = vmul.f32 %v3192_v10, %v3176_v54 }
0x1a6d   :  { %v3194_v35 = vmul.f32 %v3193_v5, %v3170_v18 }
0x1a6f   :  { %v3195_v39 = vadd.f32 %v3194_v35, %v3171_v56 }
0x1a71   :  { %4502 = vmatmul.msk.f32.vlgmr.msrb.gmra.mxu3 %vm948_vm9, %v3195_v39 }
0x1af4   :  { %v3221_v51 = vpop.f32.mrf.mxu3 }
0x1af5   :  { %v3222_v53 = vadd.f32 %v3221_v51, %v3197_v42 }
0x1af7   :  { %v4503_v43 = vmul.f32 -1.442695, %v3222_v53 }
0x1af9   :  { %4697 = vpow2.f32 %v4503_v43 }
0x1aff   :  { %v4698_v50 = vpop.eup %4697 }
0x1b00   :  { %v3227_v29 = vadd.f32 1.0, %v4698_v50 }
0x1b02   :  { %4699 = vrcp.f32 %v3227_v29  ;;  %v3239_v38 = vand.u32 2147483648, %v3227_v29  ;;  %v3237_v62 = vand.u32 2147483647, %v3227_v29  ;;  %vm3233_vm0 = vweird.f32 %v3227_v29 }
0x1b04   :  { %v3240_v25 = vor.u32 1.1754944e-38, %v3239_v38  ;;  %vm3238_vm10 = vcmp.eq.f32.partialorder %v3237_v62, 8.507059e+37 }
0x1b08   :  { %v4700_v36 = vpop.eup %4699 }
0x1b09   :  { %v3229_v33 = vmul.f32 %v4700_v36, %v3227_v29  ;;  %vm3234_vm8 = vweird.f32 %v4700_v36 }
0x1b0a   :  { %vm3235_vm1 = vmor %vm3233_vm0, %vm3234_vm8 }
0x1b0b   :  { %v3230_v2 = vsub.f32 1.0, %v3229_v33 }
0x1b0d   :  { %v3231_v58 = vmul.f32 %v4700_v36, %v3230_v2 }
0x1b0f   :  { %v3232_v37 = vadd.f32 %v4700_v36, %v3231_v58 }
0x1b11   :  { %v3236_v49 = vsel %vm3235_vm1, %v4700_v36, %v3232_v37 }
0x1b12   :  { %v3241_v60 = vsel %vm3238_vm10, %v3240_v25, %v3236_v49 }
0x1b13   :  { %v3243_v7 = vmul.f32 %v3241_v60, %v3222_v53 }
0x1b15   :  { %4505 = vmatmul.msk.f32.vlgmr.msrb.gmra.mxu0 %vm5652_vm2, %v3243_v7  ;;  %v3559_v7 = vld [vmem:[#allocation2 + $0x870] sm:$0xff] }
0x1b16   :  { %3578 = vmatpush.msrb.mxu1 %v3559_v7 }
0x1b92   :  { %v3272_v24 = vpop.f32.mrf.mxu0 }
0x1b93   :  { %v3273_v26 = vadd.f32 %v3272_v24, %v3248_v6  ;;  %v3558_v6 = vld [vmem:[#allocation2 + $0x860] sm:$0xff]  ;;  %v3557_v24 = vld [vmem:[#allocation2 + $0x850] sm:$0xff] }
0x1b94   :  { %3579 = vmatpush.msrb.mxu1 %v3558_v6 }
0x1b95   :  { %v3275_v9 = vadd.f32 %v3273_v26, %v5497_v23 }
0x1b96   :  { %3580 = vmatpush.msrb.mxu1 %v3557_v24 }
0x1b97   :  { %v3278_v57 = vsel %vm5653_vm11, %v3275_v9, 0.0 }
0x1b98   :  { %3279 = vadd.xlane.f32.xlu2 %v3278_v57 }
0x1c0b   :  { %v3280_v11 = vpop.xlane.xlu2 %3279 }
0x1c0c   :  { %v3281_v48 = vmul.f32 %v3280_v11, %v5346_v1 }
0x1c0e   :  { %v3282_v12 = vsub.f32 %v3275_v9, %v3281_v48  ;;  %v3556_v9 = vld [vmem:[#allocation2 + $0x840] sm:$0xff] }
0x1c0f   :  { %3581 = vmatpush.msrb.mxu1 %v3556_v9 }
0x1c10   :  { %v3283_v13 = vmul.f32 %v3282_v12, %v3282_v12 }
0x1c12   :  { %v3284_v59 = vsel %vm5654_vm6, %v3283_v13, 0.0 }
0x1c13   :  { %3285 = vadd.xlane.f32.xlu2 %v3284_v59 }
0x1c2b   :  { %3396 = vrot.lane.b32.xlu2 %v5490_v16, %s4840_s15 }
0x1c86   :  { %v3286_v19 = vpop.xlane.xlu2 %3285 }
0x1c87   :  { %v3287_v17 = vmul.f32 %v3286_v19, %v5346_v1  ;;  %v3353_v1 = vpop.f32.mrf.mxu2 }
0x1c89   :  { %v3288_v23 = vadd.f32 1e-05, %v3287_v17 }
0x1c8b   :  { %4701 = vrsqrt.f32 %v3288_v23  ;;  %vm3295_vm7 = vweird.f32 %v3288_v23 }
0x1c8e   :  { %v3397_v35 = vpop.permute.xlu2 %3396 }
0x1c8f   :  { %v3356_v5 = vpop.f32.mrf.mxu2 }
0x1c91   :  { %v4702_v20 = vpop.eup %4701 }
0x1c92   :  { %v3290_v21 = vmul.f32 %v4702_v20, %v3288_v23  ;;  %vm3296_vm14 = vweird.f32 %v4702_v20 }
0x1c93   :  { %vm3297_vm8 = vmor %vm3295_vm7, %vm3296_vm14 }
0x1c94   :  { %v3291_v15 = vmul.f32 %v4702_v20, %v3290_v21 }
0x1c96   :  { %v3292_v34 = vmul.f32 0.5, %v3291_v15 }
0x1c98   :  { %v3293_v54 = vsub.f32 1.5, %v3292_v34 }
0x1c9a   :  { %v3294_v8 = vmul.f32 %v4702_v20, %v3293_v54 }
0x1c9c   :  { %v3298_v3 = vsel %vm3297_vm8, %v4702_v20, %v3294_v8 }
0x1c9d   :  { %v3299_v44 = vmul.f32 %v3298_v3, %v3282_v12 }
0x1c9f   :  { %v3300_v30 = vmul.f32 %v3299_v44, %v3276_v27 }
0x1ca1   :  { %v5521_v14 = vadd.f32 %v3300_v30, %v3277_v28 }
0x1ca3   :  { %4511 = vmatmul.msk.f32.vlgmr.msra.gmra.mxu3 %vm948_vm9, %v5521_v14 }
0x1d26   :  { %v3384_v32 = vpop.f32.mrf.mxu3 }
0x1d27   :  { %v3385_v22 = vadd.f32 %v3384_v32, %v3360_v40  ;;  %v3555_v32 = vld [vmem:[#allocation2 + $0x830] sm:$0xff] }
0x1d28   :  { %3582 = vmatpush.msrb.mxu1 %v3555_v32  ;;  %v3803_v32 = vld [vmem:[#allocation2 + $0x9d0] sm:$0xff] }
0x1d29   :  { %v3388_v55 = vrot.slane %v3385_v22, 1  ;;  %v3389_v47 = vperm.slane %v3385_v22, 0 }
0x1d2b   :  { %v3390_v18 = vperm.slane %v3388_v55, 0  ;;  %v3393_v10 = vadd.f32 %v3389_v47, %v3353_v1  ;;  %v3560_v47 = vld [vmem:[#allocation2 + $0x880] ss:$0 sm:$0xff] }
0x1d2d   :  { %v3394_v56 = vadd.f32 %v3390_v18, %v3356_v5  ;;  %4512 = vmatpush.xpose.msk.msra.mxu0 %vm1784_vm5, %v3393_v10 }
0x1d2f   :  { %4514 = vmatpush.xpose.msk.msrb.mxu3 %vm1784_vm5, %v3394_v56  ;;  %v4584_v39 = vpack.i.bf16 %v3394_v56, %v3393_v10 }
0x1d30   :  { %4513 = vmatmul.msk.f32.vlgmr.msra.gmra.mxu0 %vm1784_vm5, %v3397_v35 }
0x1d32   :  { %4515 = vmatmul.msk.f32.vlgmr.msrb.gmra.mxu3 %vm1784_vm5, %v3425_v41 }
0x1dad   :  { %v3420_v42 = vpop.f32.mrf.mxu0 }
0x1dae   :  { %v3451_v61 = vmul.f32 0.15811388, %v3420_v42 }
0x1db0   :  { %v3453_v63 = vsel %vm5165_vm12, -1e+30, %v3451_v61 }
0x1db1   :  { %v3455_v51 = vsel %vm1057_vm13, %v3453_v63, -inf }
0x1db2   :  { %3456 = vmax.xlane.f32.xlu0 %v3455_v51 }
0x1db5   :  { %v3448_v52 = vpop.f32.mrf.mxu3 }
0x1db6   :  { %v3452_v53 = vmul.f32 0.15811388, %v3448_v52 }
0x1db8   :  { %v3454_v43 = vsel %vm5190_vm15, -1e+30, %v3452_v53 }
0x1db9   :  { %v3458_v50 = vsel %vm1057_vm13, %v3454_v43, -inf }
0x1dba   :  { %3459 = vmax.xlane.f32.xlu0 %v3458_v50 }
0x1dce   :  { %4585 = vrot.lane.b32.xlu0 %v4584_v39, %s4840_s15 }
0x1e25   :  { %v3457_v29 = vpop.xlane.xlu0 %3456 }
0x1e26   :  { %v3461_v36 = vsub.f32 %v3453_v63, %v3457_v29 }
0x1e28   :  { %v3463_v33 = vmul.f32 1.442695, %v3461_v36  ;;  %v3650_v36 = vld [vmem:[#allocation2 + $0x8f0] sm:$0xff] }
0x1e29   :  { %3676 = vmatpush.msrb.mxu2 %v3650_v36  ;;  %v3793_v36 = vld [vmem:[#allocation2 + $0x930] sm:$0xff] }
0x1e2a   :  { %4703 = vpow2.f32 %v3463_v33  ;;  %v3651_v33 = vld [vmem:[#allocation2 + $0x8f8] sm:$0xff] }
0x1e2d   :  { %v3460_v2 = vpop.xlane.xlu0 %3459 }
0x1e2e   :  { %v3462_v31 = vsub.f32 %v3454_v43, %v3460_v2  ;;  %v3648_v2 = vld [vmem:[#allocation2 + $0x8e0] sm:$0xff] }
0x1e2f   :  { %3677 = vmatpush.msrb.mxu2 %v3648_v2  ;;  %v3792_v2 = vld [vmem:[#allocation2 + $0x920] sm:$0xff] }
0x1e30   :  { %v4704_v38 = vpop.eup %4703  ;;  %v3465_v58 = vmul.f32 1.442695, %v3462_v31  ;;  %v3649_v31 = vld [vmem:[#allocation2 + $0x8e8] sm:$0xff] }
0x1e31   :  { %v3467_v62 = vsel %vm1057_vm13, %v4704_v38, 0.0 }
0x1e32   :  { %4705 = vpow2.f32 %v3465_v58  ;;  %3468 = vadd.xlane.f32.xlu1 %v3467_v62  ;;  %v3647_v58 = vld [vmem:[#allocation2 + $0x8d8] sm:$0xff]  ;;  %v3644_v62 = vld [vmem:[#allocation2 + $0x8c0] sm:$0xff] }
0x1e38   :  { %v4706_v37 = vpop.eup %4705 }
0x1e39   :  { %v3470_v45 = vsel %vm1057_vm13, %v4706_v37, 0.0 }
0x1e3a   :  { %3471 = vadd.xlane.f32.xlu2 %v3470_v45  ;;  %v3642_v45 = vld [vmem:[#allocation2 + $0x8b0] sm:$0xff] }
0x1e40   :  { %v4586_v25 = vpop.permute.xlu0 %4585 }
0x1e41   :  { %v4588_v49 = vunpack.i.h.bf16 %v4586_v25  ;;  %v4587_v60 = vunpack.i.l.bf16 %v4586_v25  ;;  %v3643_v25 = vld [vmem:[#allocation2 + $0x8b8] sm:$0xff] }
0x1e43   :  { %3524 = vmatpush.msrb.mxu0 %v4587_v60  ;;  %3550 = vmatpush.msra.mxu3 %v4588_v49 }
0x1e45   :  { %3699 = vmatpush.msra.mxu0 %v3651_v33 }
0x1e47   :  { %3700 = vmatpush.msra.mxu0 %v3649_v31 }
0x1e49   :  { %3701 = vmatpush.msra.mxu0 %v3647_v58 }
0x1ea5   :  { %v3469_v26 = vpop.xlane.xlu1 %3468 }
0x1ea6   :  { %4707 = vrcp.f32 %v3469_v26  ;;  %v3484_v13 = vand.u32 2147483648, %v3469_v26  ;;  %v3482_v4 = vand.u32 2147483647, %v3469_v26  ;;  %vm3478_vm15 = vweird.f32 %v3469_v26 }
0x1ea8   :  { %v3485_v23 = vor.u32 1.1754944e-38, %v3484_v13  ;;  %vm3483_vm1 = vcmp.eq.f32.partialorder %v3482_v4, 8.507059e+37 }
0x1eac   :  { %v4708_v57 = vpop.eup %4707 }
0x1ead   :  { %v3474_v11 = vmul.f32 %v4708_v57, %v3469_v26  ;;  %v3472_v48 = vpop.xlane.xlu2 %3471  ;;  %vm3479_vm12 = vweird.f32 %v4708_v57 }
0x1eae   :  { %4709 = vrcp.f32 %v3472_v48  ;;  %vm3480_vm0 = vmor %vm3478_vm15, %vm3479_vm12  ;;  %v3499_v8 = vand.u32 2147483648, %v3472_v48  ;;  %v3497_v3 = vand.u32 2147483647, %v3472_v48  ;;  %vm3493_vm2 = vweird.f32 %v3472_v48 }
0x1eaf   :  { %v3475_v12 = vsub.f32 1.0, %v3474_v11 }
0x1eb0   :  { %v3500_v28 = vor.u32 1.1754944e-38, %v3499_v8  ;;  %vm3498_vm6 = vcmp.eq.f32.partialorder %v3497_v3, 8.507059e+37 }
0x1eb1   :  { %v3476_v59 = vmul.f32 %v4708_v57, %v3475_v12 }
0x1eb3   :  { %v3477_v19 = vadd.f32 %v4708_v57, %v3476_v59  ;;  %v3592_v59 = vld [vmem:[#allocation2 + $0x890] ss:$0 sm:$0xff] }
0x1eb4   :  { %v4710_v17 = vpop.eup %4709 }
0x1eb5   :  { %v3481_v20 = vsel %vm3480_vm0, %v4708_v57, %v3477_v19  ;;  %v3489_v21 = vmul.f32 %v4710_v17, %v3472_v48  ;;  %vm3494_vm10 = vweird.f32 %v4710_v17 }
0x1eb6   :  { %v3486_v15 = vsel %vm3483_vm1, %v3485_v23, %v3481_v20  ;;  %vm3495_vm11 = vmor %vm3493_vm2, %vm3494_vm10 }
0x1eb7   :  { %v3490_v34 = vsub.f32 1.0, %v3489_v21  ;;  %v3487_v54 = vmul.f32 %v4704_v38, %v3486_v15  ;;  %v3646_v38 = vld [vmem:[#allocation2 + $0x8d0] sm:$0xff] }
0x1eb8   :  { %3678 = vmatpush.msrb.mxu2 %v3646_v38  ;;  %v3791_v38 = vld [vmem:[#allocation2 + $0x910] sm:$0xff] }
0x1eb9   :  { %v3491_v27 = vmul.f32 %v4710_v17, %v3490_v34  ;;  %4516 = vmatmul.msk.f32.vlgmr.msrb.gmra.mxu0 %vm1057_vm13, %v3487_v54 }
0x1eba   :  { %3679 = vmatpush.msrb.mxu2 %v3644_v62 }
0x1ebb   :  { %v3492_v44 = vadd.f32 %v4710_v17, %v3491_v27 }
0x1ebc   :  { %3680 = vmatpush.msrb.mxu2 %v3642_v45 }
0x1ebd   :  { %v3496_v30 = vsel %vm3495_vm11, %v4710_v17, %v3492_v44  ;;  %v3593_v17 = vld [vmem:[#allocation2 + $0x8a0] ss:$0 sm:$0xff] }
0x1ebe   :  { %v3501_v1 = vsel %vm3498_vm6, %v3500_v28, %v3496_v30  ;;  %v3806_v30 = vld [vmem:[#allocation2 + $0xa00] sm:$0xff] }
0x1ebf   :  { %v3502_v40 = vmul.f32 %v4706_v37, %v3501_v1  ;;  %v3645_v37 = vld [vmem:[#allocation2 + $0x8c8] sm:$0xff]  ;;  %3818 = vmatpush.msrb.mxu3 %v3806_v30  ;;  %v3805_v1 = vld [vmem:[#allocation2 + $0x9f0] sm:$0xff] }
0x1ec0   :  { %3702 = vmatpush.msra.mxu0 %v3645_v37 }
0x1ec1   :  { %4517 = vmatmul.msk.f32.vlgmr.msra.gmra.mxu3 %vm1057_vm13, %v3502_v40  ;;  %v3804_v40 = vld [vmem:[#allocation2 + $0x9e0] sm:$0xff] }
0x1ec2   :  { %3703 = vmatpush.msra.mxu0 %v3643_v25  ;;  %3819 = vmatpush.msrb.mxu3 %v3805_v1 }
0x1ec4   :  { %3820 = vmatpush.msrb.mxu3 %v3804_v40 }
0x1ec6   :  { %3821 = vmatpush.msrb.mxu3 %v3803_v32 }
0x1f36   :  { %v3526_v22 = vpop.f32.mrf.mxu0 }
0x1f37   :  { %4518 = vmatmul.msk.f32.vlgmr.msrb.gmra.mxu1 %vm1784_vm5, %v3526_v22  ;;  %v3802_v22 = vld [vmem:[#allocation2 + $0x9c0] sm:$0xff] }
0x1f38   :  { %3822 = vmatpush.msrb.mxu3 %v3802_v22 }
0x1f44   :  { %v3552_v55 = vpop.f32.mrf.mxu3 }
0x1f45   :  { %4519 = vmatmul.msk.f32.gmra.mxu1 %vm1784_vm5, %v3552_v55  ;;  %v3801_v55 = vld [vmem:[#allocation2 + $0x9b0] sm:$0xff] }
0x1f46   :  { %3823 = vmatpush.msrb.mxu3 %v3801_v55 }
0x1fb4   :  { %v3584_v18 = vpop.f32.mrf.mxu1 }
0x1fb5   :  { %v3585_v10 = vadd.f32 %v3584_v18, %v3560_v47  ;;  %v3799_v18 = vld [vmem:[#allocation2 + $0x990] sm:$0xff] }
0x1fb7   :  { %v5543_v5 = vadd.f32 %v3585_v10, %v5490_v16  ;;  %v3653_v10 = vld [vmem:[#allocation2 + $0x900] ss:$8 sm:$0x3] }
0x1fb9   :  { %v3594_v56 = vsel %vm1784_vm5, %v5543_v5, 0.0 }
0x1fba   :  { %3595 = vadd.xlane.f32.xlu0 %v3594_v56  ;;  %v3798_v56 = vld [vmem:[#allocation2 + $0x980] sm:$0xff] }
0x1fc2   :  { %v3587_v35 = vpop.f32.mrf.mxu1 }
0x1fc3   :  { %v3588_v39 = vadd.f32 %v3587_v35, %v3560_v47  ;;  %v3800_v47 = vld [vmem:[#allocation2 + $0x9a0] sm:$0xff]  ;;  %v3797_v35 = vld [vmem:[#allocation2 + $0x970] sm:$0xff] }
0x1fc4   :  { %3824 = vmatpush.msrb.mxu3 %v3800_v47 }
0x1fc5   :  { %v5548_v41 = vadd.f32 %v3588_v39, %v5501_v0  ;;  %v3810_v39 = vld [vmem:[#allocation2 + $0xa40] sm:$0xff] }
0x1fc6   :  { %3825 = vmatpush.msrb.mxu3 %v3799_v18  ;;  %3853 = vmatpush.msra.mxu1 %v3810_v39 }
0x1fc7   :  { %v3597_v42 = vsel %vm1784_vm5, %v5548_v41, 0.0 }
0x1fc8   :  { %3598 = vadd.xlane.f32.xlu1 %v3597_v42  ;;  %3826 = vmatpush.msrb.mxu3 %v3798_v56  ;;  %v3656_v42 = vperm.slane %v3653_v10, 1 }
0x1fca   :  { %3827 = vmatpush.msrb.mxu3 %v3797_v35 }
0x202d   :  { %v3596_v61 = vpop.xlane.xlu0 %3595 }
0x202e   :  { %v3600_v63 = vmul.f32 %v3596_v61, %v5296_v46  ;;  %v3796_v61 = vld [vmem:[#allocation2 + $0x960] sm:$0xff] }
0x202f   :  { %3828 = vmatpush.msrb.mxu3 %v3796_v61 }
0x2030   :  { %v3602_v51 = vsub.f32 %v5543_v5, %v3600_v63  ;;  %v3809_v63 = vld [vmem:[#allocation2 + $0xa30] sm:$0xff] }
0x2031   :  { %3854 = vmatpush.msra.mxu1 %v3809_v63 }
0x2032   :  { %v3604_v16 = vmul.f32 %v3602_v51, %v3602_v51 }
0x2034   :  { %v3606_v52 = vsel %vm1784_vm5, %v3604_v16, 0.0  ;;  %v3795_v16 = vld [vmem:[#allocation2 + $0x950] sm:$0xff] }
0x2035   :  { %3607 = vadd.xlane.f32.xlu2 %v3606_v52  ;;  %v3808_v52 = vld [vmem:[#allocation2 + $0xa20] sm:$0xff]  ;;  %3829 = vmatpush.msrb.mxu3 %v3795_v16 }
0x2036   :  { %3855 = vmatpush.msra.mxu1 %v3808_v52 }
0x203b   :  { %v3599_v53 = vpop.xlane.xlu1 %3598 }
0x203c   :  { %v3601_v43 = vmul.f32 %v3599_v53, %v5296_v46 }
0x203e   :  { %v3603_v50 = vsub.f32 %v5548_v41, %v3601_v43  ;;  %v3794_v43 = vld [vmem:[#allocation2 + $0x940] sm:$0xff] }
0x203f   :  { %3830 = vmatpush.msrb.mxu3 %v3794_v43 }
0x2040   :  { %v3605_v0 = vmul.f32 %v3603_v50, %v3603_v50 }
0x2041   :  { %3831 = vmatpush.msrb.mxu3 %v3793_v36 }
0x2042   :  { %v3609_v29 = vsel %vm1784_vm5, %v3605_v0, 0.0 }
0x2043   :  { %3610 = vadd.xlane.f32.xlu1 %v3609_v29  ;;  %v3655_v29 = vperm.slane %v3653_v10, 0  ;;  %3832 = vmatpush.msrb.mxu3 %v3792_v2 }
0x2045   :  { %3833 = vmatpush.msrb.mxu3 %v3791_v38  ;;  %v3869_v38 = vld [vmem:[#allocation2 + $0xa90] sm:$0xff] }
0x20a8   :  { %v3608_v49 = vpop.xlane.xlu2 %3607 }
0x20a9   :  { %v3612_v60 = vmul.f32 %v3608_v49, %v5296_v46 }
0x20ab   :  { %v3614_v7 = vadd.f32 1e-05, %v3612_v60 }
0x20ad   :  { %4711 = vrsqrt.f32 %v3614_v7  ;;  %vm3622_vm4 = vweird.f32 %v3614_v7 }
0x20b3   :  { %v4712_v6 = vpop.eup %4711 }
0x20b4   :  { %v3617_v24 = vmul.f32 %v4712_v6, %v3614_v7  ;;  %vm3623_vm13 = vweird.f32 %v4712_v6 }
0x20b5   :  { %vm3624_vm14 = vmor %vm3622_vm4, %vm3623_vm13 }
0x20b6   :  { %v3618_v26 = vmul.f32 %v4712_v6, %v3617_v24  ;;  %v3611_v9 = vpop.xlane.xlu1 %3610 }
0x20b7   :  { %v3613_v57 = vmul.f32 %v3611_v9, %v5296_v46 }
0x20b8   :  { %v3619_v11 = vmul.f32 0.5, %v3618_v26 }
0x20b9   :  { %v3615_v48 = vadd.f32 1e-05, %v3613_v57 }
0x20ba   :  { %v3620_v12 = vsub.f32 1.5, %v3619_v11 }
0x20bb   :  { %4713 = vrsqrt.f32 %v3615_v48  ;;  %vm3632_vm8 = vweird.f32 %v3615_v48 }
0x20bc   :  { %v3621_v13 = vmul.f32 %v4712_v6, %v3620_v12 }
0x20be   :  { %v3625_v4 = vsel %vm3624_vm14, %v4712_v6, %v3621_v13 }
0x20bf   :  { %v3636_v19 = vmul.f32 %v3625_v4, %v3602_v51 }
0x20c1   :  { %v4714_v23 = vpop.eup %4713  ;;  %v3638_v20 = vmul.f32 %v3636_v19, %v3592_v59 }
0x20c2   :  { %v3627_v21 = vmul.f32 %v4714_v23, %v3615_v48  ;;  %vm3633_vm7 = vweird.f32 %v4714_v23 }
0x20c3   :  { %v3640_v15 = vadd.f32 %v3638_v20, %v3593_v17  ;;  %vm3634_vm12 = vmor %vm3632_vm8, %vm3633_vm7 }
0x20c4   :  { %v3628_v34 = vmul.f32 %v4714_v23, %v3627_v21 }
0x20c5   :  { %4520 = vmatmul.msk.f32.vlgmr.msrb.gmra.mxu2 %vm1784_vm5, %v3640_v15  ;;  %4522 = vmatmul.msk.f32.vlgmr.msra.gmra.mxu0 %vm1784_vm5, %v3640_v15 }
0x20c6   :  { %v3629_v46 = vmul.f32 0.5, %v3628_v34 }
0x20c8   :  { %v3630_v54 = vsub.f32 1.5, %v3629_v46 }
0x20ca   :  { %v3631_v8 = vmul.f32 %v4714_v23, %v3630_v54 }
0x20cc   :  { %v3635_v27 = vsel %vm3634_vm12, %v4714_v23, %v3631_v8 }
0x20cd   :  { %v3637_v3 = vmul.f32 %v3635_v27, %v3603_v50  ;;  %v3807_v50 = vld [vmem:[#allocation2 + $0xa10] sm:$0xff] }
0x20ce   :  { %3856 = vmatpush.msra.mxu1 %v3807_v50 }
0x20cf   :  { %v3639_v44 = vmul.f32 %v3637_v3, %v3592_v59 }
0x20d1   :  { %v3641_v28 = vadd.f32 %v3639_v44, %v3593_v17 }
0x20d3   :  { %4521 = vmatmul.msk.f32.gmra.mxu2 %vm1784_vm5, %v3641_v28  ;;  %4523 = vmatmul.msk.f32.gmra.mxu0 %vm1784_vm5, %v3641_v28 }
0x2142   :  { %v3705_v51 = vpop.f32.mrf.mxu0 }
0x2143   :  { %v3706_v53 = vadd.f32 %v3705_v51, %v3656_v42 }
0x2145   :  { %v4525_v0 = vmul.f32 -1.442695, %v3706_v53 }
0x2147   :  { %4715 = vpow2.f32 %v4525_v0 }
0x2148   :  { %v3682_v33 = vpop.f32.mrf.mxu2 }
0x2149   :  { %v3683_v31 = vadd.f32 %v3682_v33, %v3655_v29 }
0x214b   :  { %v4524_v58 = vmul.f32 -1.442695, %v3683_v31 }
0x214d   :  { %v4716_v62 = vpop.eup %4715  ;;  %4717 = vpow2.f32 %v4524_v58  ;;  %v3868_v58 = vld [vmem:[#allocation2 + $0xa80] sm:$0xff] }
0x214e   :  { %v3724_v37 = vadd.f32 1.0, %v4716_v62  ;;  %v3867_v62 = vld [vmem:[#allocation2 + $0xa70] sm:$0xff] }
0x2150   :  { %4719 = vrcp.f32 %v3724_v37  ;;  %v3708_v45 = vpop.f32.mrf.mxu0  ;;  %v3753_v48 = vand.u32 2147483648, %v3724_v37  ;;  %v3751_v59 = vand.u32 2147483647, %v3724_v37  ;;  %vm3747_vm0 = vweird.f32 %v3724_v37 }
0x2151   :  { %v5564_v25 = vadd.f32 %v3708_v45, %v3656_v42  ;;  %v3811_v45 = vld [vmem:[#allocation2 + $0xa50] ss:$0 sm:$0xff] }
0x2152   :  { %v3754_v20 = vor.u32 1.1754944e-38, %v3753_v48  ;;  %vm3752_vm10 = vcmp.eq.f32.partialorder %v3751_v59, 8.507059e+37  ;;  %v3871_v48 = vld [vmem:[#allocation2 + $0xab0] ss:$0 sm:$0xff] }
0x2153   :  { %v4718_v49 = vpop.eup %4717  ;;  %v4527_v60 = vmul.f32 -1.442695, %v5564_v25 }
0x2154   :  { %v3723_v7 = vadd.f32 1.0, %v4718_v49 }
0x2155   :  { %4721 = vpow2.f32 %v4527_v60 }
0x2156   :  { %v4720_v6 = vpop.eup %4719  ;;  %4723 = vrcp.f32 %v3723_v7  ;;  %v3685_v24 = vpop.f32.mrf.mxu2  ;;  %v3738_v46 = vand.u32 2147483648, %v3723_v7  ;;  %v3736_v3 = vand.u32 2147483647, %v3723_v7  ;;  %vm3732_vm11 = vweird.f32 %v3723_v7 }
0x2157   :  { %v3743_v26 = vmul.f32 %v4720_v6, %v3724_v37  ;;  %v5567_v9 = vadd.f32 %v3685_v24, %v3655_v29  ;;  %vm3748_vm15 = vweird.f32 %v4720_v6  ;;  %v3866_v37 = vld [vmem:[#allocation2 + $0xa60] sm:$0xff] }
0x2158   :  { %vm3749_vm1 = vmor %vm3747_vm0, %vm3748_vm15  ;;  %v3739_v1 = vor.u32 1.1754944e-38, %v3738_v46  ;;  %vm3737_vm13 = vcmp.eq.f32.partialorder %v3736_v3, 8.507059e+37 }
0x2159   :  { %v3744_v57 = vsub.f32 1.0, %v3743_v26  ;;  %v4526_v11 = vmul.f32 -1.442695, %v5567_v9 }
0x215b   :  { %v4722_v12 = vpop.eup %4721  ;;  %v3745_v13 = vmul.f32 %v4720_v6, %v3744_v57  ;;  %4725 = vpow2.f32 %v4526_v11 }
0x215c   :  { %v4724_v4 = vpop.eup %4723  ;;  %v3726_v19 = vadd.f32 1.0, %v4722_v12 }
0x215d   :  { %v3746_v17 = vadd.f32 %v4720_v6, %v3745_v13  ;;  %v3728_v23 = vmul.f32 %v4724_v4, %v3723_v7  ;;  %vm3733_vm2 = vweird.f32 %v4724_v4 }
0x215e   :  { %4727 = vrcp.f32 %v3726_v19  ;;  %vm3734_vm6 = vmor %vm3732_vm11, %vm3733_vm2  ;;  %v3783_v18 = vand.u32 2147483648, %v3726_v19  ;;  %v3781_v56 = vand.u32 2147483647, %v3726_v19  ;;  %vm3777_vm14 = vweird.f32 %v3726_v19 }
0x215f   :  { %v3750_v21 = vsel %vm3749_vm1, %v4720_v6, %v3746_v17  ;;  %v3729_v15 = vsub.f32 1.0, %v3728_v23 }
0x2160   :  { %v3755_v34 = vsel %vm3752_vm10, %v3754_v20, %v3750_v21  ;;  %v3784_v61 = vor.u32 1.1754944e-38, %v3783_v18  ;;  %vm3782_vm8 = vcmp.eq.f32.partialorder %v3781_v56, 8.507059e+37 }
0x2161   :  { %v4726_v54 = vpop.eup %4725  ;;  %v3788_v8 = vmul.f32 %v3755_v34, %v3706_v53  ;;  %v3730_v27 = vmul.f32 %v4724_v4, %v3729_v15 }
0x2162   :  { %v3725_v44 = vadd.f32 1.0, %v4726_v54 }
0x2163   :  { %v3731_v28 = vadd.f32 %v4724_v4, %v3730_v27  ;;  %4528 = vmatmul.msk.f32.vlgmr.msra.gmra.mxu1 %vm2779_vm3, %v3788_v8 }
0x2164   :  { %v4728_v30 = vpop.eup %4727  ;;  %4729 = vrcp.f32 %v3725_v44  ;;  %v3768_v52 = vand.u32 2147483648, %v3725_v44  ;;  %v3766_v50 = vand.u32 2147483647, %v3725_v44  ;;  %vm3762_vm15 = vweird.f32 %v3725_v44 }
0x2165   :  { %v3735_v40 = vsel %vm3734_vm6, %v4724_v4, %v3731_v28  ;;  %v3773_v32 = vmul.f32 %v4728_v30, %v3726_v19  ;;  %vm3778_vm4 = vweird.f32 %v4728_v30 }
0x2166   :  { %v3740_v22 = vsel %vm3737_vm13, %v3739_v1, %v3735_v40  ;;  %vm3779_vm7 = vmor %vm3777_vm14, %vm3778_vm4  ;;  %v3769_v29 = vor.u32 1.1754944e-38, %v3768_v52  ;;  %vm3767_vm1 = vcmp.eq.f32.partialorder %v3766_v50, 8.507059e+37 }
0x2167   :  { %v3787_v55 = vmul.f32 %v3740_v22, %v3683_v31  ;;  %v3774_v47 = vsub.f32 1.0, %v3773_v32  ;;  %v3870_v31 = vld [vmem:[#allocation2 + $0xaa0] sm:$0xff] }
0x2168   :  { %3889 = vmatpush.msra.mxu2 %v3870_v31 }
0x2169   :  { %v3775_v10 = vmul.f32 %v4728_v30, %v3774_v47  ;;  %3834 = vmatmul.f32.vlgmr.msrb.gmra.mxu3 %v3787_v55 }
0x216a   :  { %v4730_v35 = vpop.eup %4729  ;;  %3890 = vmatpush.msra.mxu2 %v3869_v38 }
0x216b   :  { %v3776_v39 = vadd.f32 %v4728_v30, %v3775_v10  ;;  %v3758_v42 = vmul.f32 %v4730_v35, %v3725_v44  ;;  %vm3763_vm12 = vweird.f32 %v4730_v35 }
0x216c   :  { %vm3764_vm0 = vmor %vm3762_vm15, %vm3763_vm12  ;;  %3891 = vmatpush.msra.mxu2 %v3868_v58 }
0x216d   :  { %v3780_v63 = vsel %vm3779_vm7, %v4728_v30, %v3776_v39  ;;  %v3759_v51 = vsub.f32 1.0, %v3758_v42 }
0x216e   :  { %v3785_v16 = vsel %vm3782_vm8, %v3784_v61, %v3780_v63  ;;  %3892 = vmatpush.msra.mxu2 %v3867_v62  ;;  %v4852_v63 = vmov 32.0   ;;  %vm5656_vm8 = vcmask 1046528  }
0x216f   :  { %v3790_v53 = vmul.f32 %v3785_v16, %v5564_v25  ;;  %v3760_v43 = vmul.f32 %v4730_v35, %v3759_v51 }
0x2170   :  { %3893 = vmatpush.msra.mxu2 %v3866_v37 }
0x2171   :  { %v3761_v0 = vadd.f32 %v4730_v35, %v3760_v43  ;;  %4529 = vmatmul.msk.f32.gmra.mxu1 %vm2779_vm3, %v3790_v53 }
0x2173   :  { %v3765_v36 = vsel %vm3764_vm0, %v4730_v35, %v3761_v0 }
0x2174   :  { %v3770_v33 = vsel %vm3767_vm1, %v3769_v29, %v3765_v36 }
0x2175   :  { %v3789_v2 = vmul.f32 %v3770_v33, %v5567_v9 }
0x2177   :  { %3837 = vmatmul.f32.gmra.mxu3 %v3789_v2 }
0x21e0   :  { %v3858_v60 = vpop.f32.mrf.mxu1 }
0x21ec   :  { %v3835_v25 = vpop.f32.mrf.mxu3 }
0x21ed   :  { %v3836_v49 = vadd.f32 %v3835_v25, %v3811_v45  ;;  %v4000_v25 = vld [vmem:[#allocation2 + $0xb00] sm:$0xff] }
0x21ee   :  { %v3861_v9 = vpop.f32.mrf.mxu1 }
0x21ef   :  { %v3859_v7 = vadd.f32 %v3858_v60, %v3836_v49  ;;  %v3999_v49 = vld [vmem:[#allocation2 + $0xaf0] sm:$0xff]  ;;  %v3998_v60 = vld [vmem:[#allocation2 + $0xae0] sm:$0xff] }
0x21f1   :  { %v3864_v6 = vadd.f32 %v3859_v7, %v5543_v5 }
0x21f3   :  { %4530 = vmatmul.msk.f32.vlgmr.msra.gmra.mxu2 %vm1784_vm5, %v3864_v6 }
0x21fa   :  { %v3838_v24 = vpop.f32.mrf.mxu3 }
0x21fb   :  { %v3839_v26 = vadd.f32 %v3838_v24, %v3811_v45  ;;  %v4001_v45 = vld [vmem:[#allocation2 + $0xb10] sm:$0xff] }
0x21fc   :  { %4021 = vmatpush.msrb.mxu0 %v4001_v45 }
0x21fd   :  { %v3862_v57 = vadd.f32 %v3861_v9, %v3839_v26  ;;  %v4282_v9 = vld [vmem:[#allocation2 + $0xc10] sm:$0x7f] }
0x21fe   :  { %4022 = vmatpush.msrb.mxu0 %v4000_v25 }
0x21ff   :  { %v3865_v11 = vadd.f32 %v3862_v57, %v5548_v41 }
0x2200   :  { %4023 = vmatpush.msrb.mxu0 %v3999_v49 }
0x2201   :  { %4531 = vmatmul.msk.f32.gmra.mxu2 %vm1784_vm5, %v3865_v11 }
0x2202   :  { %4024 = vmatpush.msrb.mxu0 %v3998_v60 }
0x2204   :  { %4544 = vmatpush.msk.msra.mxu0 %vm5656_vm8, %v4282_v9  ;;  %v4331_v9 = vld [vmem:[#allocation2 + $0xc70] ss:$0 sm:$0xff] }
0x2276   :  { %v3895_v12 = vpop.f32.mrf.mxu2 }
0x2277   :  { %v3896_v13 = vadd.f32 %v3895_v12, %v3871_v48 }
0x2279   :  { %v4532_v59 = vmul.f32 -1.442695, %v3896_v13 }
0x227b   :  { %4731 = vpow2.f32 %v4532_v59 }
0x2281   :  { %v4732_v4 = vpop.eup %4731 }
0x2282   :  { %v3907_v19 = vadd.f32 1.0, %v4732_v4 }
0x2284   :  { %4733 = vrcp.f32 %v3907_v19  ;;  %v3898_v17 = vpop.f32.mrf.mxu2  ;;  %v3920_v34 = vand.u32 2147483648, %v3907_v19  ;;  %v3918_v54 = vand.u32 2147483647, %v3907_v19  ;;  %vm3914_vm5 = vweird.f32 %v3907_v19 }
0x2285   :  { %v3899_v5 = vadd.f32 %v3898_v17, %v3871_v48  ;;  %v3941_v17 = vld [vmem:[#allocation2 + $0xac0] ss:$0 sm:$0xff] }
0x2286   :  { %v3921_v3 = vor.u32 1.1754944e-38, %v3920_v34  ;;  %vm3919_vm11 = vcmp.eq.f32.partialorder %v3918_v54, 8.507059e+37 }
0x2287   :  { %v4533_v23 = vmul.f32 -1.442695, %v3899_v5 }
0x2289   :  { %4735 = vpow2.f32 %v4533_v23 }
0x228a   :  { %v4734_v20 = vpop.eup %4733 }
0x228b   :  { %v3910_v21 = vmul.f32 %v4734_v20, %v3907_v19  ;;  %vm3915_vm10 = vweird.f32 %v4734_v20 }
0x228c   :  { %vm3916_vm2 = vmor %vm3914_vm5, %vm3915_vm10 }
0x228d   :  { %v3911_v15 = vsub.f32 1.0, %v3910_v21 }
0x228f   :  { %v4736_v46 = vpop.eup %4735  ;;  %v3912_v41 = vmul.f32 %v4734_v20, %v3911_v15 }
0x2290   :  { %v3908_v8 = vadd.f32 1.0, %v4736_v46 }
0x2291   :  { %v3913_v27 = vadd.f32 %v4734_v20, %v3912_v41 }
0x2292   :  { %4737 = vrcp.f32 %v3908_v8  ;;  %v3935_v55 = vand.u32 2147483648, %v3908_v8  ;;  %v3933_v18 = vand.u32 2147483647, %v3908_v8  ;;  %vm3929_vm13 = vweird.f32 %v3908_v8 }
0x2293   :  { %v3917_v44 = vsel %vm3916_vm2, %v4734_v20, %v3913_v27  ;;  %4739 = vrcp.f32 %v4852_v63  ;;  %v3942_v20 = vld [vmem:[#allocation2 + $0xad0] ss:$0 sm:$0xff] }
0x2294   :  { %v3922_v28 = vsel %vm3919_vm11, %v3921_v3, %v3917_v44  ;;  %v3936_v56 = vor.u32 1.1754944e-38, %v3935_v55  ;;  %vm3934_vm14 = vcmp.eq.f32.partialorder %v3933_v18, 8.507059e+37 }
0x2295   :  { %v3939_v30 = vmul.f32 %v3922_v28, %v3896_v13 }
0x2297   :  { %v3943_v1 = vsel %vm2779_vm3, %v3939_v30, 0.0 }
0x2298   :  { %v4738_v40 = vpop.eup %4737  ;;  %3944 = vadd.xlane.f32.xlu2 %v3943_v1  ;;  %v4002_v1 = vld [vmem:[#allocation2 + $0xb20] ss:$0 sm:$0xff] }
0x2299   :  { %v3925_v32 = vmul.f32 %v4738_v40, %v3908_v8  ;;  %vm3930_vm6 = vweird.f32 %v4738_v40  ;;  %v4740_v51 = vpop.eup %4739 }
0x229a   :  { %vm3931_vm4 = vmor %vm3929_vm13, %vm3930_vm6  ;;  %v3950_v16 = vmul.f32 32.0, %v4740_v51  ;;  %vm3954_vm7 = vweird.f32 %v4740_v51 }
0x229b   :  { %v3926_v22 = vsub.f32 1.0, %v3925_v32 }
0x229c   :  { %v3951_v52 = vsub.f32 1.0, %v3950_v16 }
0x229d   :  { %v3927_v47 = vmul.f32 %v4738_v40, %v3926_v22 }
0x229e   :  { %v3952_v53 = vmul.f32 %v4740_v51, %v3951_v52 }
0x229f   :  { %v3928_v10 = vadd.f32 %v4738_v40, %v3927_v47 }
0x22a0   :  { %v3953_v43 = vadd.f32 %v4740_v51, %v3952_v53 }
0x22a1   :  { %v3932_v35 = vsel %vm3931_vm4, %v4738_v40, %v3928_v10  ;;  %v4330_v10 = vld [vmem:[#allocation2 + $0xc60] sm:$0xff] }
0x22a2   :  { %v3937_v39 = vsel %vm3934_vm14, %v3936_v56, %v3932_v35  ;;  %v5580_v50 = vsel %vm3954_vm7, %v4740_v51, %v3953_v43  ;;  %v4283_v56 = vld [vmem:[#allocation2 + $0xc20] ss:$0 sm:$0xff]  ;;  %v4329_v35 = vld [vmem:[#allocation2 + $0xc50] sm:$0xff] }
0x22a3   :  { %v3940_v42 = vmul.f32 %v3937_v39, %v3899_v5  ;;  %v4328_v39 = vld [vmem:[#allocation2 + $0xc40] sm:$0xff] }
0x22a5   :  { %v3946_v61 = vsel %vm2779_vm3, %v3940_v42, 0.0 }
0x22a6   :  { %3947 = vadd.xlane.f32.xlu1 %v3946_v61  ;;  %v4327_v61 = vld [vmem:[#allocation2 + $0xc30] sm:$0xff] }
0x230b   :  { %v3945_v0 = vpop.xlane.xlu2 %3944 }
0x230c   :  { %v3956_v29 = vmul.f32 %v5580_v50, %v3945_v0 }
0x230e   :  { %v3958_v36 = vsub.f32 %v3939_v30, %v3956_v29 }
0x2310   :  { %v3960_v33 = vmul.f32 %v3958_v36, %v3958_v36 }
0x2312   :  { %v3962_v2 = vsel %vm2779_vm3, %v3960_v33, 0.0 }
0x2313   :  { %3963 = vadd.xlane.f32.xlu2 %v3962_v2 }
0x2319   :  { %v3948_v31 = vpop.xlane.xlu1 %3947 }
0x231a   :  { %v3957_v38 = vmul.f32 %v5580_v50, %v3948_v31 }
0x231c   :  { %v3959_v58 = vsub.f32 %v3940_v42, %v3957_v38 }
0x231e   :  { %v3961_v62 = vmul.f32 %v3959_v58, %v3959_v58 }
0x2320   :  { %v3965_v37 = vsel %vm2779_vm3, %v3961_v62, 0.0 }
0x2321   :  { %3966 = vadd.xlane.f32.xlu1 %v3965_v37 }
0x2386   :  { %v3964_v7 = vpop.xlane.xlu2 %3963 }
0x2387   :  { %v3968_v6 = vmul.f32 %v3964_v7, %v5580_v50 }
0x2389   :  { %v3970_v24 = vadd.f32 1e-05, %v3968_v6 }
0x238b   :  { %4741 = vrsqrt.f32 %v3970_v24  ;;  %vm3978_vm15 = vweird.f32 %v3970_v24 }
0x2391   :  { %v4742_v26 = vpop.eup %4741 }
0x2392   :  { %v3973_v57 = vmul.f32 %v4742_v26, %v3970_v24  ;;  %vm3979_vm12 = vweird.f32 %v4742_v26 }
0x2393   :  { %vm3980_vm0 = vmor %vm3978_vm15, %vm3979_vm12 }
0x2394   :  { %v3974_v11 = vmul.f32 %v4742_v26, %v3973_v57  ;;  %v3967_v48 = vpop.xlane.xlu1 %3966 }
0x2395   :  { %v3969_v12 = vmul.f32 %v3967_v48, %v5580_v50 }
0x2396   :  { %v3975_v13 = vmul.f32 0.5, %v3974_v11 }
0x2397   :  { %v3971_v59 = vadd.f32 1e-05, %v3969_v12 }
0x2398   :  { %v3976_v4 = vsub.f32 1.5, %v3975_v13 }
0x2399   :  { %4743 = vrsqrt.f32 %v3971_v59  ;;  %vm3988_vm10 = vweird.f32 %v3971_v59 }
0x239a   :  { %v3977_v19 = vmul.f32 %v4742_v26, %v3976_v4 }
0x239c   :  { %v3981_v5 = vsel %vm3980_vm0, %v4742_v26, %v3977_v19 }
0x239d   :  { %v3992_v23 = vmul.f32 %v3981_v5, %v3958_v36 }
0x239f   :  { %v4744_v21 = vpop.eup %4743  ;;  %v3994_v15 = vmul.f32 %v3992_v23, %v3941_v17 }
0x23a0   :  { %v3983_v34 = vmul.f32 %v4744_v21, %v3971_v59  ;;  %vm3989_vm1 = vweird.f32 %v4744_v21 }
0x23a1   :  { %v3996_v46 = vadd.f32 %v3994_v15, %v3942_v20  ;;  %vm3990_vm5 = vmor %vm3988_vm10, %vm3989_vm1 }
0x23a2   :  { %v3984_v41 = vmul.f32 %v4744_v21, %v3983_v34 }
0x23a3   :  { %4534 = vmatmul.msk.f32.vlgmr.msrb.gmra.mxu0 %vm2779_vm3, %v3996_v46  ;;  %v4032_v46 = vld [vmem:[#allocation2 + $0xb30] ss:$0 sm:$0xff] }
0x23a4   :  { %v3985_v54 = vmul.f32 0.5, %v3984_v41  ;;  %4347 = vmatpush.msrb.mxu0 %v4330_v10 }
0x23a6   :  { %v3986_v8 = vsub.f32 1.5, %v3985_v54  ;;  %4348 = vmatpush.msrb.mxu0 %v4329_v35  ;;  %v4125_v54 = vld [vmem:[#allocation2 + $0xb80] sm:$0xff] }
0x23a7   :  { %4145 = vmatpush.msrb.mxu1 %v4125_v54 }
0x23a8   :  { %v3987_v27 = vmul.f32 %v4744_v21, %v3986_v8  ;;  %4349 = vmatpush.msrb.mxu0 %v4328_v39 }
0x23aa   :  { %v3991_v3 = vsel %vm3990_vm5, %v4744_v21, %v3987_v27  ;;  %4350 = vmatpush.msrb.mxu0 %v4327_v61  ;;  %v4033_v27 = vld [vmem:[#allocation2 + $0xb40] ss:$0 sm:$0xff] }
0x23ab   :  { %v3993_v44 = vmul.f32 %v3991_v3, %v3959_v58  ;;  %v4124_v3 = vld [vmem:[#allocation2 + $0xb70] sm:$0xff] }
0x23ac   :  { %4146 = vmatpush.msrb.mxu1 %v4124_v3 }
0x23ad   :  { %v3995_v28 = vmul.f32 %v3993_v44, %v3941_v17 }
0x23af   :  { %v3997_v30 = vadd.f32 %v3995_v28, %v3942_v20 }
0x23b1   :  { %4535 = vmatmul.msk.f32.gmra.mxu0 %vm2779_vm3, %v3997_v30  ;;  %v4123_v30 = vld [vmem:[#allocation2 + $0xb60] sm:$0xff] }
0x23b2   :  { %4147 = vmatpush.msrb.mxu1 %v4123_v30 }
0x23b9   :  { %4545 = vmatmul.msk.f32.vlgmr.msra.gmra.mxu0 %vm948_vm9, %v5521_v14 }
0x2420   :  { %v4026_v40 = vpop.f32.mrf.mxu0 }
0x2421   :  { %v4027_v32 = vadd.f32 %v4026_v40, %v4002_v1  ;;  %v4122_v40 = vld [vmem:[#allocation2 + $0xb50] sm:$0xff] }
0x2422   :  { %4148 = vmatpush.msrb.mxu1 %v4122_v40 }
0x2423   :  { %v4034_v22 = vsel %vm2779_vm3, %v4027_v32, 0.0 }
0x2424   :  { %4035 = vadd.xlane.f32.xlu0 %v4034_v22 }
0x242e   :  { %v4029_v55 = vpop.f32.mrf.mxu0 }
0x242f   :  { %v4030_v47 = vadd.f32 %v4029_v55, %v4002_v1 }
0x2431   :  { %v4037_v18 = vsel %vm2779_vm3, %v4030_v47, 0.0 }
0x2432   :  { %4038 = vadd.xlane.f32.xlu2 %v4037_v18 }
0x2436   :  { %v4304_v42 = vpop.f32.mrf.mxu0 }
0x2437   :  { %v4305_v14 = vadd.f32 %v4304_v42, %v4283_v56 }
0x2439   :  { %v4546_v63 = vmul.f32 -1.442695, %v4305_v14 }
0x243b   :  { %4745 = vpow2.f32 %v4546_v63 }
0x2441   :  { %v4746_v51 = vpop.eup %4745 }
0x2442   :  { %v4310_v16 = vadd.f32 1.0, %v4746_v51 }
0x2444   :  { %4747 = vrcp.f32 %v4310_v16  ;;  %v4322_v0 = vand.u32 2147483648, %v4310_v16  ;;  %v4320_v36 = vand.u32 2147483647, %v4310_v16  ;;  %vm4316_vm2 = vweird.f32 %v4310_v16 }
0x2446   :  { %v4323_v2 = vor.u32 1.1754944e-38, %v4322_v0  ;;  %vm4321_vm6 = vcmp.eq.f32.partialorder %v4320_v36, 8.507059e+37 }
0x244a   :  { %v4748_v52 = vpop.eup %4747 }
0x244b   :  { %v4312_v53 = vmul.f32 %v4748_v52, %v4310_v16  ;;  %vm4317_vm9 = vweird.f32 %v4748_v52 }
0x244c   :  { %vm4318_vm11 = vmor %vm4316_vm2, %vm4317_vm9 }
0x244d   :  { %v4313_v43 = vsub.f32 1.0, %v4312_v53 }
0x244f   :  { %v4314_v29 = vmul.f32 %v4748_v52, %v4313_v43 }
0x2451   :  { %v4315_v33 = vadd.f32 %v4748_v52, %v4314_v29 }
0x2453   :  { %v4319_v31 = vsel %vm4318_vm11, %v4748_v52, %v4315_v33 }
0x2454   :  { %v4324_v38 = vsel %vm4321_vm6, %v4323_v2, %v4319_v31 }
0x2455   :  { %v4326_v58 = vmul.f32 %v4324_v38, %v4305_v14 }
0x2457   :  { %4547 = vmatmul.msk.f32.vlgmr.msrb.gmra.mxu0 %vm2779_vm3, %v4326_v58 }
0x2497   :  { %v4036_v62 = vpop.xlane.xlu0 %4035 }
0x2498   :  { %v4040_v37 = vmul.f32 %v4036_v62, %v5580_v50 }
0x249a   :  { %v4042_v45 = vsub.f32 %v4027_v32, %v4040_v37 }
0x249c   :  { %v4044_v25 = vmul.f32 %v4042_v45, %v4042_v45 }
0x249e   :  { %v4046_v49 = vsel %vm2779_vm3, %v4044_v25, 0.0 }
0x249f   :  { %4047 = vadd.xlane.f32.xlu1 %v4046_v49 }
0x24a5   :  { %v4039_v60 = vpop.xlane.xlu2 %4038 }
0x24a6   :  { %v4041_v7 = vmul.f32 %v4039_v60, %v5580_v50 }
0x24a8   :  { %v4043_v6 = vsub.f32 %v4030_v47, %v4041_v7 }
0x24aa   :  { %v4045_v24 = vmul.f32 %v4043_v6, %v4043_v6 }
0x24ac   :  { %v4049_v26 = vsel %vm2779_vm3, %v4045_v24, 0.0 }
0x24ad   :  { %4050 = vadd.xlane.f32.xlu0 %v4049_v26 }
0x24d4   :  { %v4352_v57 = vpop.f32.mrf.mxu0 }
0x24d5   :  { %v4353_v11 = vadd.f32 %v4352_v57, %v4331_v9  ;;  %v4126_v57 = vld [vmem:[#allocation2 + $0xb90] ss:$0 sm:$0xff] }
0x24d7   :  { %v4356_v48 = vrot.slane %v4353_v11, 1  ;;  %4358 = vst [vmem:[#allocation5] sm:$0x1] %v4353_v11 }
0x24d9   :  { %4359 = vst [vmem:[#allocation5 + $0x1] sm:$0x1] %v4356_v48 }
0x24da   :  { %4374 = dma.vmem_to_hbm [thread:$0]  %s4367_s8, 32, %s4369_s7, [#allocation4], %s4827_s27, %s4827_s27, %s4854_s9  }
0x2512   :  { %v4048_v12 = vpop.xlane.xlu1 %4047 }
0x2513   :  { %v4052_v13 = vmul.f32 %v4048_v12, %v5580_v50 }
0x2515   :  { %v4054_v59 = vadd.f32 1e-05, %v4052_v13 }
0x2517   :  { %4749 = vrsqrt.f32 %v4054_v59  ;;  %vm4062_vm4 = vweird.f32 %v4054_v59 }
0x251d   :  { %v4750_v4 = vpop.eup %4749 }
0x251e   :  { %v4057_v19 = vmul.f32 %v4750_v4, %v4054_v59  ;;  %vm4063_vm13 = vweird.f32 %v4750_v4 }
0x251f   :  { %vm4064_vm14 = vmor %vm4062_vm4, %vm4063_vm13 }
0x2520   :  { %v4058_v17 = vmul.f32 %v4750_v4, %v4057_v19  ;;  %v4051_v5 = vpop.xlane.xlu0 %4050 }
0x2521   :  { %v4053_v23 = vmul.f32 %v4051_v5, %v5580_v50 }
0x2522   :  { %v4059_v20 = vmul.f32 0.5, %v4058_v17 }
0x2523   :  { %v4055_v21 = vadd.f32 1e-05, %v4053_v23 }
0x2524   :  { %v4060_v15 = vsub.f32 1.5, %v4059_v20 }
0x2525   :  { %4751 = vrsqrt.f32 %v4055_v21  ;;  %vm4072_vm8 = vweird.f32 %v4055_v21 }
0x2526   :  { %v4061_v34 = vmul.f32 %v4750_v4, %v4060_v15 }
0x2528   :  { %v4065_v41 = vsel %vm4064_vm14, %v4750_v4, %v4061_v34 }
0x2529   :  { %v4076_v8 = vmul.f32 %v4065_v41, %v4042_v45 }
0x252b   :  { %v4752_v44 = vpop.eup %4751  ;;  %v4078_v28 = vmul.f32 %v4076_v8, %v4032_v46 }
0x252c   :  { %v4067_v1 = vmul.f32 %v4752_v44, %v4055_v21  ;;  %vm4073_vm7 = vweird.f32 %v4752_v44 }
0x252d   :  { %v4080_v32 = vadd.f32 %v4078_v28, %v4033_v27  ;;  %vm4074_vm12 = vmor %vm4072_vm8, %vm4073_vm7 }
0x252e   :  { %v4068_v22 = vmul.f32 %v4752_v44, %v4067_v1 }
0x252f   :  { %v4536_v55 = vmul.f32 -1.442695, %v4080_v32 }
0x2530   :  { %v4069_v47 = vmul.f32 0.5, %v4068_v22 }
0x2531   :  { %4753 = vpow2.f32 %v4536_v55 }
0x2532   :  { %v4070_v18 = vsub.f32 1.5, %v4069_v47  ;;  %v4156_v47 = vld [vmem:[#allocation2 + $0xba0] ss:$0 sm:$0xff] }
0x2534   :  { %v4071_v10 = vmul.f32 %v4752_v44, %v4070_v18 }
0x2536   :  { %v4075_v56 = vsel %vm4074_vm12, %v4752_v44, %v4071_v10  ;;  %v4249_v10 = vld [vmem:[#allocation2 + $0xbf0] sm:$0xff] }
0x2537   :  { %v4754_v35 = vpop.eup %4753  ;;  %v4077_v39 = vmul.f32 %v4075_v56, %v4043_v6  ;;  %4269 = vmatpush.msrb.mxu2 %v4249_v10 }
0x2538   :  { %v4088_v42 = vadd.f32 1.0, %v4754_v35  ;;  %v4157_v35 = vld [vmem:[#allocation2 + $0xbb0] ss:$0 sm:$0xff] }
0x2539   :  { %v4079_v61 = vmul.f32 %v4077_v39, %v4032_v46  ;;  %v4248_v39 = vld [vmem:[#allocation2 + $0xbe0] sm:$0xff] }
0x253a   :  { %4755 = vrcp.f32 %v4088_v42  ;;  %v4101_v53 = vand.u32 2147483648, %v4088_v42  ;;  %v4099_v29 = vand.u32 2147483647, %v4088_v42  ;;  %vm4095_vm0 = vweird.f32 %v4088_v42  ;;  %4270 = vmatpush.msrb.mxu2 %v4248_v39 }
0x253b   :  { %v4081_v14 = vadd.f32 %v4079_v61, %v4033_v27 }
0x253c   :  { %v4102_v2 = vor.u32 1.1754944e-38, %v4101_v53  ;;  %vm4100_vm10 = vcmp.eq.f32.partialorder %v4099_v29, 8.507059e+37 }
0x253d   :  { %v4537_v63 = vmul.f32 -1.442695, %v4081_v14 }
0x253f   :  { %4757 = vpow2.f32 %v4537_v63  ;;  %v4246_v63 = vld [vmem:[#allocation2 + $0xbc0] sm:$0xff] }
0x2540   :  { %v4756_v51 = vpop.eup %4755 }
0x2541   :  { %v4091_v16 = vmul.f32 %v4756_v51, %v4088_v42  ;;  %vm4096_vm15 = vweird.f32 %v4756_v51 }
0x2542   :  { %vm4097_vm1 = vmor %vm4095_vm0, %vm4096_vm15 }
0x2543   :  { %v4092_v52 = vsub.f32 1.0, %v4091_v16 }
0x2545   :  { %v4758_v43 = vpop.eup %4757  ;;  %v4093_v0 = vmul.f32 %v4756_v51, %v4092_v52 }
0x2546   :  { %v4089_v36 = vadd.f32 1.0, %v4758_v43 }
0x2547   :  { %v4094_v33 = vadd.f32 %v4756_v51, %v4093_v0 }
0x2548   :  { %4759 = vrcp.f32 %v4089_v36  ;;  %v4116_v25 = vand.u32 2147483648, %v4089_v36  ;;  %v4114_v60 = vand.u32 2147483647, %v4089_v36  ;;  %vm4110_vm9 = vweird.f32 %v4089_v36 }
0x2549   :  { %v4098_v31 = vsel %vm4097_vm1, %v4756_v51, %v4094_v33 }
0x254a   :  { %v4103_v38 = vsel %vm4100_vm10, %v4102_v2, %v4098_v31  ;;  %v4117_v6 = vor.u32 1.1754944e-38, %v4116_v25  ;;  %vm4115_vm11 = vcmp.eq.f32.partialorder %v4114_v60, 8.507059e+37 }
0x254b   :  { %v4120_v58 = vmul.f32 %v4103_v38, %v4080_v32 }
0x254d   :  { %4538 = vmatmul.msk.f32.vlgmr.msrb.gmra.mxu1 %vm2779_vm3, %v4120_v58 }
0x254e   :  { %v4760_v62 = vpop.eup %4759 }
0x254f   :  { %v4106_v37 = vmul.f32 %v4760_v62, %v4089_v36  ;;  %vm4111_vm5 = vweird.f32 %v4760_v62 }
0x2550   :  { %vm4112_vm2 = vmor %vm4110_vm9, %vm4111_vm5 }
0x2551   :  { %v4107_v45 = vsub.f32 1.0, %v4106_v37 }
0x2553   :  { %v4108_v49 = vmul.f32 %v4760_v62, %v4107_v45 }
0x2555   :  { %v4109_v7 = vadd.f32 %v4760_v62, %v4108_v49 }
0x2557   :  { %v4113_v24 = vsel %vm4112_vm2, %v4760_v62, %v4109_v7 }
0x2558   :  { %v4118_v26 = vsel %vm4115_vm11, %v4117_v6, %v4113_v24 }
0x2559   :  { %v4121_v9 = vmul.f32 %v4118_v26, %v4081_v14  ;;  %v4247_v14 = vld [vmem:[#allocation2 + $0xbd0] sm:$0xff] }
0x255a   :  { %4271 = vmatpush.msrb.mxu2 %v4247_v14 }
0x255b   :  { %4539 = vmatmul.msk.f32.gmra.mxu1 %vm2779_vm3, %v4121_v9 }
0x255c   :  { %4272 = vmatpush.msrb.mxu2 %v4246_v63 }
0x25ca   :  { %v4150_v11 = vpop.f32.mrf.mxu1 }
0x25cb   :  { %v4151_v48 = vadd.f32 %v4150_v11, %v4126_v57 }
0x25cd   :  { %v4158_v12 = vsel %vm2779_vm3, %v4151_v48, 0.0 }
0x25ce   :  { %4159 = vadd.xlane.f32.xlu2 %v4158_v12 }
0x25d8   :  { %v4153_v13 = vpop.f32.mrf.mxu1 }
0x25d9   :  { %v4154_v59 = vadd.f32 %v4153_v13, %v4126_v57 }
0x25db   :  { %v4161_v4 = vsel %vm2779_vm3, %v4154_v59, 0.0 }
0x25dc   :  { %4162 = vadd.xlane.f32.xlu1 %v4161_v4 }
0x2641   :  { %v4160_v19 = vpop.xlane.xlu2 %4159 }
0x2642   :  { %v4164_v17 = vmul.f32 %v4160_v19, %v5580_v50 }
0x2644   :  { %v4166_v5 = vsub.f32 %v4151_v48, %v4164_v17 }
0x2646   :  { %v4168_v23 = vmul.f32 %v4166_v5, %v4166_v5 }
0x2648   :  { %v4170_v20 = vsel %vm2779_vm3, %v4168_v23, 0.0 }
0x2649   :  { %4171 = vadd.xlane.f32.xlu0 %v4170_v20 }
0x264f   :  { %v4163_v21 = vpop.xlane.xlu1 %4162 }
0x2650   :  { %v4165_v15 = vmul.f32 %v4163_v21, %v5580_v50 }
0x2652   :  { %v4167_v34 = vsub.f32 %v4154_v59, %v4165_v15  ;;  %v4250_v15 = vld [vmem:[#allocation2 + $0xc00] ss:$0 sm:$0xff] }
0x2654   :  { %v4169_v46 = vmul.f32 %v4167_v34, %v4167_v34 }
0x2656   :  { %v4173_v41 = vsel %vm2779_vm3, %v4169_v46, 0.0 }
0x2657   :  { %4174 = vadd.xlane.f32.xlu2 %v4173_v41 }
0x26bc   :  { %v4172_v54 = vpop.xlane.xlu0 %4171 }
0x26bd   :  { %v4176_v8 = vmul.f32 %v4172_v54, %v5580_v50 }
0x26bf   :  { %v4178_v27 = vadd.f32 1e-05, %v4176_v8 }
0x26c1   :  { %4761 = vrsqrt.f32 %v4178_v27  ;;  %vm4186_vm13 = vweird.f32 %v4178_v27 }
0x26c7   :  { %v4762_v3 = vpop.eup %4761 }
0x26c8   :  { %v4181_v44 = vmul.f32 %v4762_v3, %v4178_v27  ;;  %vm4187_vm6 = vweird.f32 %v4762_v3 }
0x26c9   :  { %vm4188_vm4 = vmor %vm4186_vm13, %vm4187_vm6 }
0x26ca   :  { %v4182_v28 = vmul.f32 %v4762_v3, %v4181_v44  ;;  %v4175_v30 = vpop.xlane.xlu2 %4174 }
0x26cb   :  { %v4177_v1 = vmul.f32 %v4175_v30, %v5580_v50 }
0x26cc   :  { %v4183_v40 = vmul.f32 0.5, %v4182_v28 }
0x26cd   :  { %v4179_v32 = vadd.f32 1e-05, %v4177_v1 }
0x26ce   :  { %v4184_v22 = vsub.f32 1.5, %v4183_v40 }
0x26cf   :  { %4763 = vrsqrt.f32 %v4179_v32  ;;  %vm4196_vm7 = vweird.f32 %v4179_v32 }
0x26d0   :  { %v4185_v55 = vmul.f32 %v4762_v3, %v4184_v22 }
0x26d2   :  { %v4189_v18 = vsel %vm4188_vm4, %v4762_v3, %v4185_v55 }
0x26d3   :  { %v4200_v56 = vmul.f32 %v4189_v18, %v4166_v5 }
0x26d5   :  { %v4764_v42 = vpop.eup %4763  ;;  %v4202_v61 = vmul.f32 %v4200_v56, %v4156_v47 }
0x26d6   :  { %v4191_v50 = vmul.f32 %v4764_v42, %v4179_v32  ;;  %vm4197_vm14 = vweird.f32 %v4764_v42 }
0x26d7   :  { %v4204_v51 = vadd.f32 %v4202_v61, %v4157_v35  ;;  %vm4198_vm8 = vmor %vm4196_vm7, %vm4197_vm14 }
0x26d8   :  { %v4192_v16 = vmul.f32 %v4764_v42, %v4191_v50 }
0x26d9   :  { %v4540_v52 = vmul.f32 -1.442695, %v4204_v51 }
0x26da   :  { %v4193_v53 = vmul.f32 0.5, %v4192_v16 }
0x26db   :  { %4765 = vpow2.f32 %v4540_v52 }
0x26dc   :  { %v4194_v43 = vsub.f32 1.5, %v4193_v53 }
0x26de   :  { %v4195_v0 = vmul.f32 %v4764_v42, %v4194_v43 }
0x26e0   :  { %v4199_v29 = vsel %vm4198_vm8, %v4764_v42, %v4195_v0 }
0x26e1   :  { %v4766_v36 = vpop.eup %4765  ;;  %v4201_v33 = vmul.f32 %v4199_v29, %v4167_v34 }
0x26e2   :  { %v4212_v2 = vadd.f32 1.0, %v4766_v36 }
0x26e3   :  { %v4203_v31 = vmul.f32 %v4201_v33, %v4156_v47 }
0x26e4   :  { %4767 = vrcp.f32 %v4212_v2  ;;  %v4225_v25 = vand.u32 2147483648, %v4212_v2  ;;  %v4223_v7 = vand.u32 2147483647, %v4212_v2  ;;  %vm4219_vm15 = vweird.f32 %v4212_v2 }
0x26e5   :  { %v4205_v38 = vadd.f32 %v4203_v31, %v4157_v35 }
0x26e6   :  { %v4226_v26 = vor.u32 1.1754944e-38, %v4225_v25  ;;  %vm4224_vm1 = vcmp.eq.f32.partialorder %v4223_v7, 8.507059e+37 }
0x26e7   :  { %v4541_v58 = vmul.f32 -1.442695, %v4205_v38 }
0x26e9   :  { %4769 = vpow2.f32 %v4541_v58 }
0x26ea   :  { %v4768_v62 = vpop.eup %4767 }
0x26eb   :  { %v4215_v37 = vmul.f32 %v4768_v62, %v4212_v2  ;;  %vm4220_vm12 = vweird.f32 %v4768_v62 }
0x26ec   :  { %vm4221_vm0 = vmor %vm4219_vm15, %vm4220_vm12 }
0x26ed   :  { %v4216_v45 = vsub.f32 1.0, %v4215_v37 }
0x26ef   :  { %v4770_v49 = vpop.eup %4769  ;;  %v4217_v60 = vmul.f32 %v4768_v62, %v4216_v45 }
0x26f0   :  { %v4213_v6 = vadd.f32 1.0, %v4770_v49 }
0x26f1   :  { %v4218_v24 = vadd.f32 %v4768_v62, %v4217_v60 }
0x26f2   :  { %4771 = vrcp.f32 %v4213_v6  ;;  %v4240_v59 = vand.u32 2147483648, %v4213_v6  ;;  %v4238_v19 = vand.u32 2147483647, %v4213_v6  ;;  %vm4234_vm5 = vweird.f32 %v4213_v6 }
0x26f3   :  { %v4222_v9 = vsel %vm4221_vm0, %v4768_v62, %v4218_v24 }
0x26f4   :  { %v4227_v57 = vsel %vm4224_vm1, %v4226_v26, %v4222_v9  ;;  %v4241_v5 = vor.u32 1.1754944e-38, %v4240_v59  ;;  %vm4239_vm2 = vcmp.eq.f32.partialorder %v4238_v19, 8.507059e+37 }
0x26f5   :  { %v4244_v11 = vmul.f32 %v4227_v57, %v4204_v51 }
0x26f7   :  { %4542 = vmatmul.msk.f32.vlgmr.msrb.gmra.mxu2 %vm2779_vm3, %v4244_v11 }
0x26f8   :  { %v4772_v48 = vpop.eup %4771 }
0x26f9   :  { %v4230_v12 = vmul.f32 %v4772_v48, %v4213_v6  ;;  %vm4235_vm10 = vweird.f32 %v4772_v48 }
0x26fa   :  { %vm4236_vm9 = vmor %vm4234_vm5, %vm4235_vm10 }
0x26fb   :  { %v4231_v13 = vsub.f32 1.0, %v4230_v12 }
0x26fd   :  { %v4232_v4 = vmul.f32 %v4772_v48, %v4231_v13 }
0x26ff   :  { %v4233_v17 = vadd.f32 %v4772_v48, %v4232_v4 }
0x2701   :  { %v4237_v23 = vsel %vm4236_vm9, %v4772_v48, %v4233_v17 }
0x2702   :  { %v4242_v20 = vsel %vm4239_vm2, %v4241_v5, %v4237_v23 }
0x2703   :  { %v4245_v21 = vmul.f32 %v4242_v20, %v4205_v38 }
0x2705   :  { %4543 = vmatmul.msk.f32.gmra.mxu2 %vm2779_vm3, %v4245_v21 }
0x277a   :  { %v4274_v34 = vpop.f32.mrf.mxu2 }
0x277b   :  { %v4275_v46 = vadd.f32 %v4274_v34, %v4250_v15 }
0x277d   :  { %4280 = vst [vmem:[%s5630_s5] sm:$0xff] %v4275_v46 }
0x2788   :  { %v4277_v41 = vpop.f32.mrf.mxu2 }
0x2789   :  { %v4278_v54 = vadd.f32 %v4277_v41, %v4250_v15 }
0x278b   :  { %4281 = vst [vmem:[%s5630_s5 + $0x8] sm:$0xff] %v4278_v54 }
0x278c   :  { %4823 = dma.done.wait [#allocation4], 32  }
0x278d   :  { %4824 = vsyncadd [#allocation4], 4294967264 }
0x278e   :  { %4381 = vsyncpa [#allocation3], 1 }
0x278f   :  { %4382 = vsyncpa [#allocation4], 1 }

</bundles_post_ra>
